<compile_context>
chip_gen: v7x
topology: tpu7x:2x2x1
jax: 0.10.0
libtpu: 0.0.40
codegen_flags: <defaults>
</compile_context>

<pallas_src>
import functools

import jax
import jax.numpy as jnp
from jax import lax
from jax.experimental import pallas as pl
from jax.experimental.pallas import tpu as pltpu


def _ppeg_kernel(xp_ref, w_ref, b_ref, o_ref):
    # xp_ref: (1, H+6, W+6, Ct)  zero-padded NHWC feature block (pad=3 each side)
    # w_ref : (49, Ct)           folded effective 7x7 depthwise weights
    #                            (w7 + pad(w5) + pad(w3) + identity at center)
    # b_ref : (1, Ct)            combined bias (b7 + b5 + b3)
    # o_ref : (1, H, W, Ct)
    H = o_ref.shape[1]
    W = o_ref.shape[2]
    Ct = o_ref.shape[3]

    xp = xp_ref[0].astype(jnp.float32)          # (H+6, W+6, Ct)
    w = w_ref[...].astype(jnp.float32)          # (49, Ct), loaded/cast once
    bias = b_ref[0, :].astype(jnp.float32)      # (Ct,)

    # Two partial accumulators to break the serial dependence chain.
    accs = [jnp.zeros((H, W, Ct), jnp.float32),
            jnp.zeros((H, W, Ct), jnp.float32)]

    for dw in range(7):
        # One sublane (W-direction) shift per column offset, reused for all 7
        # row offsets; leading-axis slices below are free vreg-row selection.
        xw = xp[:, dw:dw + W, :]                # (H+6, W, Ct)
        for dh in range(7):
            tap = dh * 7 + dw
            accs[tap % 2] = accs[tap % 2] + xw[dh:dh + H, :, :] * w[tap, :]

    o_ref[0] = (accs[0] + accs[1] + bias).astype(o_ref.dtype)


def _fold_weights(w7, w5, w3):
    """Fold 7x7 + 5x5 + 3x3 depthwise kernels + identity into one (49, C) table."""
    C = w7.shape[0]
    w_eff = w7.astype(jnp.float32)
    w_eff = w_eff + jnp.pad(w5.astype(jnp.float32), ((0, 0), (1, 1), (1, 1)))
    w_eff = w_eff + jnp.pad(w3.astype(jnp.float32), ((0, 0), (2, 2), (2, 2)))
    ident = jnp.zeros((7, 7), jnp.float32).at[3, 3].set(1.0)   # "+ cnn_feat" term
    w_eff = w_eff + ident[None, :, :]
    return jnp.transpose(w_eff.reshape(C, 49), (1, 0))          # (49, C)


@functools.partial(jax.jit, static_argnames=("H", "W"))
def ppeg_forward(x, H, W, w7, b7, w5, b5, w3, b3):
    """x: (B, 1+H*W, C); weights wK: (C, K, K); biases bK: (C,)."""
    B, N, C = x.shape
    assert N == 1 + H * W

    cls_token = x[:, :1, :]                       # (B, 1, C)
    feat = x[:, 1:, :].reshape(B, H, W, C)        # NHWC, same spatial ordering
                                                  # as torch .view(B, C, H, W)
    # TODO(synk): fold the zero-pad into the kernel (masked halo in VMEM) and
    # write rows 1..N of the final (B, 1+H*W, C) buffer directly to save an
    # extra HBM read+write of the feature map.
    xp = jnp.pad(feat, ((0, 0), (3, 3), (3, 3), (0, 0)))   # (B, H+6, W+6, C)

    w_eff = _fold_weights(w7, w5, w3)                       # (49, C)
    bias = (b7 + b5 + b3).astype(jnp.float32).reshape(1, C)

    # Channel tile: bounds VMEM at production sizes (C=512) and provides a
    # parallel grid axis for v7x's 2 TensorCores even when B == 1.
    Ct = 128 if (C % 128 == 0) else C
    grid = (B, C // Ct)

    # TODO(synk): for C < 128 (lane-sparse output, as in this demo) a wrapper
    # side (W, C) -> W*C fold of the output would give unmasked lane-dense
    # stores; production C=512 is already lane-dense so it is not applied.
    out = pl.pallas_call(
        _ppeg_kernel,
        out_shape=jax.ShapeDtypeStruct((B, H, W, C), x.dtype),
        grid_spec=pltpu.PrefetchScalarGridSpec(
            num_scalar_prefetch=0,
            grid=grid,
            in_specs=[
                pl.BlockSpec((1, H + 6, W + 6, Ct), lambda b, c: (b, 0, 0, c)),
                pl.BlockSpec((49, Ct), lambda b, c: (0, c)),
                pl.BlockSpec((1, Ct), lambda b, c: (0, c)),
            ],
            out_specs=pl.BlockSpec((1, H, W, Ct), lambda b, c: (b, 0, 0, c)),
        ),
        compiler_params=pltpu.CompilerParams(
            dimension_semantics=("parallel", "parallel"),
            vmem_limit_bytes=48 * 1024 * 1024),
    )(xp, w_eff, bias)

    y = out.reshape(B, H * W, C)
    return jnp.concatenate([cls_token, y], axis=1)


def _ppeg_reference(x, H, W, w7, b7, w5, b5, w3, b3):
    """Pure-JAX reference mirroring the PyTorch NCHW semantics."""
    B, N, C = x.shape
    cls_token = x[:, :1, :]
    cnn = jnp.transpose(x[:, 1:, :], (0, 2, 1)).reshape(B, C, H, W)  # NCHW

    def dwconv(inp, w, b, k):
        out = lax.conv_general_dilated(
            inp, w.reshape(C, 1, k, k),
            window_strides=(1, 1), padding=[(k // 2, k // 2)] * 2,
            dimension_numbers=("NCHW", "OIHW", "NCHW"),
            feature_group_count=C)
        return out + b.reshape(1, C, 1, 1)

    y = dwconv(cnn, w7, b7, 7) + cnn + dwconv(cnn, w5, b5, 5) + dwconv(cnn, w3, b3, 3)
    y = jnp.transpose(y.reshape(B, C, H * W), (0, 2, 1))
    return jnp.concatenate([cls_token, y], axis=1)


if __name__ == "__main__":
    # Small, deterministic shapes consistent with the module: dim=C=32,
    # sequence = 1 cls token + H*W patch tokens.
    B, C, H, W = 2, 32, 8, 8
    N = 1 + H * W

    key = jax.random.PRNGKey(0)
    kx, k7w, k7b, k5w, k5b, k3w, k3b = jax.random.split(key, 7)

    x = jax.random.normal(kx, (B, N, C), dtype=jnp.float32)
    # Depthwise conv params: PyTorch weight shape (C, 1, k, k) -> store (C, k, k).
    w7 = 0.05 * jax.random.normal(k7w, (C, 7, 7), dtype=jnp.float32)
    b7 = 0.05 * jax.random.normal(k7b, (C,), dtype=jnp.float32)
    w5 = 0.05 * jax.random.normal(k5w, (C, 5, 5), dtype=jnp.float32)
    b5 = 0.05 * jax.random.normal(k5b, (C,), dtype=jnp.float32)
    w3 = 0.05 * jax.random.normal(k3w, (C, 3, 3), dtype=jnp.float32)
    b3 = 0.05 * jax.random.normal(k3b, (C,), dtype=jnp.float32)

    out = ppeg_forward(x, H, W, w7, b7, w5, b5, w3, b3)
    out = jax.block_until_ready(out)

    ref = _ppeg_reference(x, H, W, w7, b7, w5, b5, w3, b3)
    assert out.shape == (B, N, C), out.shape
    assert jnp.allclose(out, ref, atol=1e-4, rtol=1e-4), "mismatch vs reference"

    print("KERNEL_OK")
</pallas_src>

<mosaic_0001>
module attributes {stable_mosaic.version = 11 : i64} {
  func.func @_ppeg_kernel(%arg0: i32, %arg1: i32, %arg2: memref<1x14x14x32xf32, #tpu.memory_space<vmem>>, %arg3: memref<49x32xf32, #tpu.memory_space<vmem>>, %arg4: memref<1x32xf32, #tpu.memory_space<vmem>>, %arg5: memref<1x8x8x32xf32, #tpu.memory_space<vmem>>) attributes {dimension_semantics = [#tpu.dimension_semantics<parallel>, #tpu.dimension_semantics<parallel>], iteration_bounds = array<i64: 2, 1>, scalar_prefetch = 0 : i64, scratch_operands = 0 : i64, tpu.core_type = #tpu.core_type<tc>, window_params = [{transform_indices = @transform_0, window_bounds = array<i64: 1, 14, 14, 32>}, {transform_indices = @transform_1, window_bounds = array<i64: 49, 32>}, {transform_indices = @transform_2, window_bounds = array<i64: 1, 32>}, {transform_indices = @transform_3, window_bounds = array<i64: 1, 8, 8, 32>}]} {
    %c0 = arith.constant 0 : index
    %c0_0 = arith.constant 0 : index
    %c0_1 = arith.constant 0 : index
    %c0_2 = arith.constant 0 : index
    %0 = vector.load %arg2[%c0, %c0_0, %c0_1, %c0_2] : memref<1x14x14x32xf32, #tpu.memory_space<vmem>>, vector<1x14x14x32xf32>
    %1 = vector.shape_cast %0 : vector<1x14x14x32xf32> to vector<14x14x32xf32>
    %c0_3 = arith.constant 0 : index
    %c0_4 = arith.constant 0 : index
    %2 = vector.load %arg3[%c0_3, %c0_4] : memref<49x32xf32, #tpu.memory_space<vmem>>, vector<49x32xf32>
    %c0_5 = arith.constant 0 : index
    %c0_6 = arith.constant 0 : index
    %3 = vector.load %arg4[%c0_5, %c0_6] : memref<1x32xf32, #tpu.memory_space<vmem>>, vector<1x32xf32>
    %4 = vector.shape_cast %3 : vector<1x32xf32> to vector<32xf32>
    %cst = arith.constant 0.000000e+00 : f32
    %5 = vector.broadcast %cst : f32 to vector<8x8x32xf32>
    %cst_7 = arith.constant 0.000000e+00 : f32
    %6 = vector.broadcast %cst_7 : f32 to vector<8x8x32xf32>
    %7 = vector.extract_strided_slice %1 {offsets = [0, 0, 0], sizes = [14, 8, 32], strides = [1, 1, 1]} : vector<14x14x32xf32> to vector<14x8x32xf32>
    %8 = vector.extract_strided_slice %7 {offsets = [0, 0, 0], sizes = [8, 8, 32], strides = [1, 1, 1]} : vector<14x8x32xf32> to vector<8x8x32xf32>
    %9 = vector.extract_strided_slice %2 {offsets = [0, 0], sizes = [1, 32], strides = [1, 1]} : vector<49x32xf32> to vector<1x32xf32>
    %10 = vector.shape_cast %9 : vector<1x32xf32> to vector<32xf32>
    %11 = vector.shape_cast %10 : vector<32xf32> to vector<1x1x32xf32>
    %12 = vector.broadcast %11 : vector<1x1x32xf32> to vector<8x8x32xf32>
    %13 = arith.mulf %8, %12 : vector<8x8x32xf32>
    %14 = arith.addf %5, %13 : vector<8x8x32xf32>
    %15 = vector.extract_strided_slice %7 {offsets = [1, 0, 0], sizes = [8, 8, 32], strides = [1, 1, 1]} : vector<14x8x32xf32> to vector<8x8x32xf32>
    %16 = vector.extract_strided_slice %2 {offsets = [7, 0], sizes = [1, 32], strides = [1, 1]} : vector<49x32xf32> to vector<1x32xf32>
    %17 = vector.shape_cast %16 : vector<1x32xf32> to vector<32xf32>
    %18 = vector.shape_cast %17 : vector<32xf32> to vector<1x1x32xf32>
    %19 = vector.broadcast %18 : vector<1x1x32xf32> to vector<8x8x32xf32>
    %20 = arith.mulf %15, %19 : vector<8x8x32xf32>
    %21 = arith.addf %6, %20 : vector<8x8x32xf32>
    %22 = vector.extract_strided_slice %7 {offsets = [2, 0, 0], sizes = [8, 8, 32], strides = [1, 1, 1]} : vector<14x8x32xf32> to vector<8x8x32xf32>
    %23 = vector.extract_strided_slice %2 {offsets = [14, 0], sizes = [1, 32], strides = [1, 1]} : vector<49x32xf32> to vector<1x32xf32>
    %24 = vector.shape_cast %23 : vector<1x32xf32> to vector<32xf32>
    %25 = vector.shape_cast %24 : vector<32xf32> to vector<1x1x32xf32>
    %26 = vector.broadcast %25 : vector<1x1x32xf32> to vector<8x8x32xf32>
    %27 = arith.mulf %22, %26 : vector<8x8x32xf32>
    %28 = arith.addf %14, %27 : vector<8x8x32xf32>
    %29 = vector.extract_strided_slice %7 {offsets = [3, 0, 0], sizes = [8, 8, 32], strides = [1, 1, 1]} : vector<14x8x32xf32> to vector<8x8x32xf32>
    %30 = vector.extract_strided_slice %2 {offsets = [21, 0], sizes = [1, 32], strides = [1, 1]} : vector<49x32xf32> to vector<1x32xf32>
    %31 = vector.shape_cast %30 : vector<1x32xf32> to vector<32xf32>
    %32 = vector.shape_cast %31 : vector<32xf32> to vector<1x1x32xf32>
    %33 = vector.broadcast %32 : vector<1x1x32xf32> to vector<8x8x32xf32>
    %34 = arith.mulf %29, %33 : vector<8x8x32xf32>
    %35 = arith.addf %21, %34 : vector<8x8x32xf32>
    %36 = vector.extract_strided_slice %7 {offsets = [4, 0, 0], sizes = [8, 8, 32], strides = [1, 1, 1]} : vector<14x8x32xf32> to vector<8x8x32xf32>
    %37 = vector.extract_strided_slice %2 {offsets = [28, 0], sizes = [1, 32], strides = [1, 1]} : vector<49x32xf32> to vector<1x32xf32>
    %38 = vector.shape_cast %37 : vector<1x32xf32> to vector<32xf32>
    %39 = vector.shape_cast %38 : vector<32xf32> to vector<1x1x32xf32>
    %40 = vector.broadcast %39 : vector<1x1x32xf32> to vector<8x8x32xf32>
    %41 = arith.mulf %36, %40 : vector<8x8x32xf32>
    %42 = arith.addf %28, %41 : vector<8x8x32xf32>
    %43 = vector.extract_strided_slice %7 {offsets = [5, 0, 0], sizes = [8, 8, 32], strides = [1, 1, 1]} : vector<14x8x32xf32> to vector<8x8x32xf32>
    %44 = vector.extract_strided_slice %2 {offsets = [35, 0], sizes = [1, 32], strides = [1, 1]} : vector<49x32xf32> to vector<1x32xf32>
    %45 = vector.shape_cast %44 : vector<1x32xf32> to vector<32xf32>
    %46 = vector.shape_cast %45 : vector<32xf32> to vector<1x1x32xf32>
    %47 = vector.broadcast %46 : vector<1x1x32xf32> to vector<8x8x32xf32>
    %48 = arith.mulf %43, %47 : vector<8x8x32xf32>
    %49 = arith.addf %35, %48 : vector<8x8x32xf32>
    %50 = vector.extract_strided_slice %7 {offsets = [6, 0, 0], sizes = [8, 8, 32], strides = [1, 1, 1]} : vector<14x8x32xf32> to vector<8x8x32xf32>
    %51 = vector.extract_strided_slice %2 {offsets = [42, 0], sizes = [1, 32], strides = [1, 1]} : vector<49x32xf32> to vector<1x32xf32>
    %52 = vector.shape_cast %51 : vector<1x32xf32> to vector<32xf32>
    %53 = vector.shape_cast %52 : vector<32xf32> to vector<1x1x32xf32>
    %54 = vector.broadcast %53 : vector<1x1x32xf32> to vector<8x8x32xf32>
    %55 = arith.mulf %50, %54 : vector<8x8x32xf32>
    %56 = arith.addf %42, %55 : vector<8x8x32xf32>
    %57 = vector.extract_strided_slice %1 {offsets = [0, 1, 0], sizes = [14, 8, 32], strides = [1, 1, 1]} : vector<14x14x32xf32> to vector<14x8x32xf32>
    %58 = vector.extract_strided_slice %57 {offsets = [0, 0, 0], sizes = [8, 8, 32], strides = [1, 1, 1]} : vector<14x8x32xf32> to vector<8x8x32xf32>
    %59 = vector.extract_strided_slice %2 {offsets = [1, 0], sizes = [1, 32], strides = [1, 1]} : vector<49x32xf32> to vector<1x32xf32>
    %60 = vector.shape_cast %59 : vector<1x32xf32> to vector<32xf32>
    %61 = vector.shape_cast %60 : vector<32xf32> to vector<1x1x32xf32>
    %62 = vector.broadcast %61 : vector<1x1x32xf32> to vector<8x8x32xf32>
    %63 = arith.mulf %58, %62 : vector<8x8x32xf32>
    %64 = arith.addf %49, %63 : vector<8x8x32xf32>
    %65 = vector.extract_strided_slice %57 {offsets = [1, 0, 0], sizes = [8, 8, 32], strides = [1, 1, 1]} : vector<14x8x32xf32> to vector<8x8x32xf32>
    %66 = vector.extract_strided_slice %2 {offsets = [8, 0], sizes = [1, 32], strides = [1, 1]} : vector<49x32xf32> to vector<1x32xf32>
    %67 = vector.shape_cast %66 : vector<1x32xf32> to vector<32xf32>
    %68 = vector.shape_cast %67 : vector<32xf32> to vector<1x1x32xf32>
    %69 = vector.broadcast %68 : vector<1x1x32xf32> to vector<8x8x32xf32>
    %70 = arith.mulf %65, %69 : vector<8x8x32xf32>
    %71 = arith.addf %56, %70 : vector<8x8x32xf32>
    %72 = vector.extract_strided_slice %57 {offsets = [2, 0, 0], sizes = [8, 8, 32], strides = [1, 1, 1]} : vector<14x8x32xf32> to vector<8x8x32xf32>
    %73 = vector.extract_strided_slice %2 {offsets = [15, 0], sizes = [1, 32], strides = [1, 1]} : vector<49x32xf32> to vector<1x32xf32>
    %74 = vector.shape_cast %73 : vector<1x32xf32> to vector<32xf32>
    %75 = vector.shape_cast %74 : vector<32xf32> to vector<1x1x32xf32>
    %76 = vector.broadcast %75 : vector<1x1x32xf32> to vector<8x8x32xf32>
    %77 = arith.mulf %72, %76 : vector<8x8x32xf32>
    %78 = arith.addf %64, %77 : vector<8x8x32xf32>
    %79 = vector.extract_strided_slice %57 {offsets = [3, 0, 0], sizes = [8, 8, 32], strides = [1, 1, 1]} : vector<14x8x32xf32> to vector<8x8x32xf32>
    %80 = vector.extract_strided_slice %2 {offsets = [22, 0], sizes = [1, 32], strides = [1, 1]} : vector<49x32xf32> to vector<1x32xf32>
    %81 = vector.shape_cast %80 : vector<1x32xf32> to vector<32xf32>
    %82 = vector.shape_cast %81 : vector<32xf32> to vector<1x1x32xf32>
    %83 = vector.broadcast %82 : vector<1x1x32xf32> to vector<8x8x32xf32>
    %84 = arith.mulf %79, %83 : vector<8x8x32xf32>
    %85 = arith.addf %71, %84 : vector<8x8x32xf32>
    %86 = vector.extract_strided_slice %57 {offsets = [4, 0, 0], sizes = [8, 8, 32], strides = [1, 1, 1]} : vector<14x8x32xf32> to vector<8x8x32xf32>
    %87 = vector.extract_strided_slice %2 {offsets = [29, 0], sizes = [1, 32], strides = [1, 1]} : vector<49x32xf32> to vector<1x32xf32>
    %88 = vector.shape_cast %87 : vector<1x32xf32> to vector<32xf32>
    %89 = vector.shape_cast %88 : vector<32xf32> to vector<1x1x32xf32>
    %90 = vector.broadcast %89 : vector<1x1x32xf32> to vector<8x8x32xf32>
    %91 = arith.mulf %86, %90 : vector<8x8x32xf32>
    %92 = arith.addf %78, %91 : vector<8x8x32xf32>
    %93 = vector.extract_strided_slice %57 {offsets = [5, 0, 0], sizes = [8, 8, 32], strides = [1, 1, 1]} : vector<14x8x32xf32> to vector<8x8x32xf32>
    %94 = vector.extract_strided_slice %2 {offsets = [36, 0], sizes = [1, 32], strides = [1, 1]} : vector<49x32xf32> to vector<1x32xf32>
    %95 = vector.shape_cast %94 : vector<1x32xf32> to vector<32xf32>
    %96 = vector.shape_cast %95 : vector<32xf32> to vector<1x1x32xf32>
    %97 = vector.broadcast %96 : vector<1x1x32xf32> to vector<8x8x32xf32>
    %98 = arith.mulf %93, %97 : vector<8x8x32xf32>
    %99 = arith.addf %85, %98 : vector<8x8x32xf32>
    %100 = vector.extract_strided_slice %57 {offsets = [6, 0, 0], sizes = [8, 8, 32], strides = [1, 1, 1]} : vector<14x8x32xf32> to vector<8x8x32xf32>
    %101 = vector.extract_strided_slice %2 {offsets = [43, 0], sizes = [1, 32], strides = [1, 1]} : vector<49x32xf32> to vector<1x32xf32>
    %102 = vector.shape_cast %101 : vector<1x32xf32> to vector<32xf32>
    %103 = vector.shape_cast %102 : vector<32xf32> to vector<1x1x32xf32>
    %104 = vector.broadcast %103 : vector<1x1x32xf32> to vector<8x8x32xf32>
    %105 = arith.mulf %100, %104 : vector<8x8x32xf32>
    %106 = arith.addf %92, %105 : vector<8x8x32xf32>
    %107 = vector.extract_strided_slice %1 {offsets = [0, 2, 0], sizes = [14, 8, 32], strides = [1, 1, 1]} : vector<14x14x32xf32> to vector<14x8x32xf32>
    %108 = vector.extract_strided_slice %107 {offsets = [0, 0, 0], sizes = [8, 8, 32], strides = [1, 1, 1]} : vector<14x8x32xf32> to vector<8x8x32xf32>
    %109 = vector.extract_strided_slice %2 {offsets = [2, 0], sizes = [1, 32], strides = [1, 1]} : vector<49x32xf32> to vector<1x32xf32>
    %110 = vector.shape_cast %109 : vector<1x32xf32> to vector<32xf32>
    %111 = vector.shape_cast %110 : vector<32xf32> to vector<1x1x32xf32>
    %112 = vector.broadcast %111 : vector<1x1x32xf32> to vector<8x8x32xf32>
    %113 = arith.mulf %108, %112 : vector<8x8x32xf32>
    %114 = arith.addf %99, %113 : vector<8x8x32xf32>
    %115 = vector.extract_strided_slice %107 {offsets = [1, 0, 0], sizes = [8, 8, 32], strides = [1, 1, 1]} : vector<14x8x32xf32> to vector<8x8x32xf32>
    %116 = vector.extract_strided_slice %2 {offsets = [9, 0], sizes = [1, 32], strides = [1, 1]} : vector<49x32xf32> to vector<1x32xf32>
    %117 = vector.shape_cast %116 : vector<1x32xf32> to vector<32xf32>
    %118 = vector.shape_cast %117 : vector<32xf32> to vector<1x1x32xf32>
    %119 = vector.broadcast %118 : vector<1x1x32xf32> to vector<8x8x32xf32>
    %120 = arith.mulf %115, %119 : vector<8x8x32xf32>
    %121 = arith.addf %106, %120 : vector<8x8x32xf32>
    %122 = vector.extract_strided_slice %107 {offsets = [2, 0, 0], sizes = [8, 8, 32], strides = [1, 1, 1]} : vector<14x8x32xf32> to vector<8x8x32xf32>
    %123 = vector.extract_strided_slice %2 {offsets = [16, 0], sizes = [1, 32], strides = [1, 1]} : vector<49x32xf32> to vector<1x32xf32>
    %124 = vector.shape_cast %123 : vector<1x32xf32> to vector<32xf32>
    %125 = vector.shape_cast %124 : vector<32xf32> to vector<1x1x32xf32>
    %126 = vector.broadcast %125 : vector<1x1x32xf32> to vector<8x8x32xf32>
    %127 = arith.mulf %122, %126 : vector<8x8x32xf32>
    %128 = arith.addf %114, %127 : vector<8x8x32xf32>
    %129 = vector.extract_strided_slice %107 {offsets = [3, 0, 0], sizes = [8, 8, 32], strides = [1, 1, 1]} : vector<14x8x32xf32> to vector<8x8x32xf32>
    %130 = vector.extract_strided_slice %2 {offsets = [23, 0], sizes = [1, 32], strides = [1, 1]} : vector<49x32xf32> to vector<1x32xf32>
    %131 = vector.shape_cast %130 : vector<1x32xf32> to vector<32xf32>
    %132 = vector.shape_cast %131 : vector<32xf32> to vector<1x1x32xf32>
    %133 = vector.broadcast %132 : vector<1x1x32xf32> to vector<8x8x32xf32>
    %134 = arith.mulf %129, %133 : vector<8x8x32xf32>
    %135 = arith.addf %121, %134 : vector<8x8x32xf32>
    %136 = vector.extract_strided_slice %107 {offsets = [4, 0, 0], sizes = [8, 8, 32], strides = [1, 1, 1]} : vector<14x8x32xf32> to vector<8x8x32xf32>
    %137 = vector.extract_strided_slice %2 {offsets = [30, 0], sizes = [1, 32], strides = [1, 1]} : vector<49x32xf32> to vector<1x32xf32>
    %138 = vector.shape_cast %137 : vector<1x32xf32> to vector<32xf32>
    %139 = vector.shape_cast %138 : vector<32xf32> to vector<1x1x32xf32>
    %140 = vector.broadcast %139 : vector<1x1x32xf32> to vector<8x8x32xf32>
    %141 = arith.mulf %136, %140 : vector<8x8x32xf32>
    %142 = arith.addf %128, %141 : vector<8x8x32xf32>
    %143 = vector.extract_strided_slice %107 {offsets = [5, 0, 0], sizes = [8, 8, 32], strides = [1, 1, 1]} : vector<14x8x32xf32> to vector<8x8x32xf32>
    %144 = vector.extract_strided_slice %2 {offsets = [37, 0], sizes = [1, 32], strides = [1, 1]} : vector<49x32xf32> to vector<1x32xf32>
    %145 = vector.shape_cast %144 : vector<1x32xf32> to vector<32xf32>
    %146 = vector.shape_cast %145 : vector<32xf32> to vector<1x1x32xf32>
    %147 = vector.broadcast %146 : vector<1x1x32xf32> to vector<8x8x32xf32>
    %148 = arith.mulf %143, %147 : vector<8x8x32xf32>
    %149 = arith.addf %135, %148 : vector<8x8x32xf32>
    %150 = vector.extract_strided_slice %107 {offsets = [6, 0, 0], sizes = [8, 8, 32], strides = [1, 1, 1]} : vector<14x8x32xf32> to vector<8x8x32xf32>
    %151 = vector.extract_strided_slice %2 {offsets = [44, 0], sizes = [1, 32], strides = [1, 1]} : vector<49x32xf32> to vector<1x32xf32>
    %152 = vector.shape_cast %151 : vector<1x32xf32> to vector<32xf32>
    %153 = vector.shape_cast %152 : vector<32xf32> to vector<1x1x32xf32>
    %154 = vector.broadcast %153 : vector<1x1x32xf32> to vector<8x8x32xf32>
    %155 = arith.mulf %150, %154 : vector<8x8x32xf32>
    %156 = arith.addf %142, %155 : vector<8x8x32xf32>
    %157 = vector.extract_strided_slice %1 {offsets = [0, 3, 0], sizes = [14, 8, 32], strides = [1, 1, 1]} : vector<14x14x32xf32> to vector<14x8x32xf32>
    %158 = vector.extract_strided_slice %157 {offsets = [0, 0, 0], sizes = [8, 8, 32], strides = [1, 1, 1]} : vector<14x8x32xf32> to vector<8x8x32xf32>
    %159 = vector.extract_strided_slice %2 {offsets = [3, 0], sizes = [1, 32], strides = [1, 1]} : vector<49x32xf32> to vector<1x32xf32>
    %160 = vector.shape_cast %159 : vector<1x32xf32> to vector<32xf32>
    %161 = vector.shape_cast %160 : vector<32xf32> to vector<1x1x32xf32>
    %162 = vector.broadcast %161 : vector<1x1x32xf32> to vector<8x8x32xf32>
    %163 = arith.mulf %158, %162 : vector<8x8x32xf32>
    %164 = arith.addf %149, %163 : vector<8x8x32xf32>
    %165 = vector.extract_strided_slice %157 {offsets = [1, 0, 0], sizes = [8, 8, 32], strides = [1, 1, 1]} : vector<14x8x32xf32> to vector<8x8x32xf32>
    %166 = vector.extract_strided_slice %2 {offsets = [10, 0], sizes = [1, 32], strides = [1, 1]} : vector<49x32xf32> to vector<1x32xf32>
    %167 = vector.shape_cast %166 : vector<1x32xf32> to vector<32xf32>
    %168 = vector.shape_cast %167 : vector<32xf32> to vector<1x1x32xf32>
    %169 = vector.broadcast %168 : vector<1x1x32xf32> to vector<8x8x32xf32>
    %170 = arith.mulf %165, %169 : vector<8x8x32xf32>
    %171 = arith.addf %156, %170 : vector<8x8x32xf32>
    %172 = vector.extract_strided_slice %157 {offsets = [2, 0, 0], sizes = [8, 8, 32], strides = [1, 1, 1]} : vector<14x8x32xf32> to vector<8x8x32xf32>
    %173 = vector.extract_strided_slice %2 {offsets = [17, 0], sizes = [1, 32], strides = [1, 1]} : vector<49x32xf32> to vector<1x32xf32>
    %174 = vector.shape_cast %173 : vector<1x32xf32> to vector<32xf32>
    %175 = vector.shape_cast %174 : vector<32xf32> to vector<1x1x32xf32>
    %176 = vector.broadcast %175 : vector<1x1x32xf32> to vector<8x8x32xf32>
    %177 = arith.mulf %172, %176 : vector<8x8x32xf32>
    %178 = arith.addf %164, %177 : vector<8x8x32xf32>
    %179 = vector.extract_strided_slice %157 {offsets = [3, 0, 0], sizes = [8, 8, 32], strides = [1, 1, 1]} : vector<14x8x32xf32> to vector<8x8x32xf32>
    %180 = vector.extract_strided_slice %2 {offsets = [24, 0], sizes = [1, 32], strides = [1, 1]} : vector<49x32xf32> to vector<1x32xf32>
    %181 = vector.shape_cast %180 : vector<1x32xf32> to vector<32xf32>
    %182 = vector.shape_cast %181 : vector<32xf32> to vector<1x1x32xf32>
    %183 = vector.broadcast %182 : vector<1x1x32xf32> to vector<8x8x32xf32>
    %184 = arith.mulf %179, %183 : vector<8x8x32xf32>
    %185 = arith.addf %171, %184 : vector<8x8x32xf32>
    %186 = vector.extract_strided_slice %157 {offsets = [4, 0, 0], sizes = [8, 8, 32], strides = [1, 1, 1]} : vector<14x8x32xf32> to vector<8x8x32xf32>
    %187 = vector.extract_strided_slice %2 {offsets = [31, 0], sizes = [1, 32], strides = [1, 1]} : vector<49x32xf32> to vector<1x32xf32>
    %188 = vector.shape_cast %187 : vector<1x32xf32> to vector<32xf32>
    %189 = vector.shape_cast %188 : vector<32xf32> to vector<1x1x32xf32>
    %190 = vector.broadcast %189 : vector<1x1x32xf32> to vector<8x8x32xf32>
    %191 = arith.mulf %186, %190 : vector<8x8x32xf32>
    %192 = arith.addf %178, %191 : vector<8x8x32xf32>
    %193 = vector.extract_strided_slice %157 {offsets = [5, 0, 0], sizes = [8, 8, 32], strides = [1, 1, 1]} : vector<14x8x32xf32> to vector<8x8x32xf32>
    %194 = vector.extract_strided_slice %2 {offsets = [38, 0], sizes = [1, 32], strides = [1, 1]} : vector<49x32xf32> to vector<1x32xf32>
    %195 = vector.shape_cast %194 : vector<1x32xf32> to vector<32xf32>
    %196 = vector.shape_cast %195 : vector<32xf32> to vector<1x1x32xf32>
    %197 = vector.broadcast %196 : vector<1x1x32xf32> to vector<8x8x32xf32>
    %198 = arith.mulf %193, %197 : vector<8x8x32xf32>
    %199 = arith.addf %185, %198 : vector<8x8x32xf32>
    %200 = vector.extract_strided_slice %157 {offsets = [6, 0, 0], sizes = [8, 8, 32], strides = [1, 1, 1]} : vector<14x8x32xf32> to vector<8x8x32xf32>
    %201 = vector.extract_strided_slice %2 {offsets = [45, 0], sizes = [1, 32], strides = [1, 1]} : vector<49x32xf32> to vector<1x32xf32>
    %202 = vector.shape_cast %201 : vector<1x32xf32> to vector<32xf32>
    %203 = vector.shape_cast %202 : vector<32xf32> to vector<1x1x32xf32>
    %204 = vector.broadcast %203 : vector<1x1x32xf32> to vector<8x8x32xf32>
    %205 = arith.mulf %200, %204 : vector<8x8x32xf32>
    %206 = arith.addf %192, %205 : vector<8x8x32xf32>
    %207 = vector.extract_strided_slice %1 {offsets = [0, 4, 0], sizes = [14, 8, 32], strides = [1, 1, 1]} : vector<14x14x32xf32> to vector<14x8x32xf32>
    %208 = vector.extract_strided_slice %207 {offsets = [0, 0, 0], sizes = [8, 8, 32], strides = [1, 1, 1]} : vector<14x8x32xf32> to vector<8x8x32xf32>
    %209 = vector.extract_strided_slice %2 {offsets = [4, 0], sizes = [1, 32], strides = [1, 1]} : vector<49x32xf32> to vector<1x32xf32>
    %210 = vector.shape_cast %209 : vector<1x32xf32> to vector<32xf32>
    %211 = vector.shape_cast %210 : vector<32xf32> to vector<1x1x32xf32>
    %212 = vector.broadcast %211 : vector<1x1x32xf32> to vector<8x8x32xf32>
    %213 = arith.mulf %208, %212 : vector<8x8x32xf32>
    %214 = arith.addf %199, %213 : vector<8x8x32xf32>
    %215 = vector.extract_strided_slice %207 {offsets = [1, 0, 0], sizes = [8, 8, 32], strides = [1, 1, 1]} : vector<14x8x32xf32> to vector<8x8x32xf32>
    %216 = vector.extract_strided_slice %2 {offsets = [11, 0], sizes = [1, 32], strides = [1, 1]} : vector<49x32xf32> to vector<1x32xf32>
    %217 = vector.shape_cast %216 : vector<1x32xf32> to vector<32xf32>
    %218 = vector.shape_cast %217 : vector<32xf32> to vector<1x1x32xf32>
    %219 = vector.broadcast %218 : vector<1x1x32xf32> to vector<8x8x32xf32>
    %220 = arith.mulf %215, %219 : vector<8x8x32xf32>
    %221 = arith.addf %206, %220 : vector<8x8x32xf32>
    %222 = vector.extract_strided_slice %207 {offsets = [2, 0, 0], sizes = [8, 8, 32], strides = [1, 1, 1]} : vector<14x8x32xf32> to vector<8x8x32xf32>
    %223 = vector.extract_strided_slice %2 {offsets = [18, 0], sizes = [1, 32], strides = [1, 1]} : vector<49x32xf32> to vector<1x32xf32>
    %224 = vector.shape_cast %223 : vector<1x32xf32> to vector<32xf32>
    %225 = vector.shape_cast %224 : vector<32xf32> to vector<1x1x32xf32>
    %226 = vector.broadcast %225 : vector<1x1x32xf32> to vector<8x8x32xf32>
    %227 = arith.mulf %222, %226 : vector<8x8x32xf32>
    %228 = arith.addf %214, %227 : vector<8x8x32xf32>
    %229 = vector.extract_strided_slice %207 {offsets = [3, 0, 0], sizes = [8, 8, 32], strides = [1, 1, 1]} : vector<14x8x32xf32> to vector<8x8x32xf32>
    %230 = vector.extract_strided_slice %2 {offsets = [25, 0], sizes = [1, 32], strides = [1, 1]} : vector<49x32xf32> to vector<1x32xf32>
    %231 = vector.shape_cast %230 : vector<1x32xf32> to vector<32xf32>
    %232 = vector.shape_cast %231 : vector<32xf32> to vector<1x1x32xf32>
    %233 = vector.broadcast %232 : vector<1x1x32xf32> to vector<8x8x32xf32>
    %234 = arith.mulf %229, %233 : vector<8x8x32xf32>
    %235 = arith.addf %221, %234 : vector<8x8x32xf32>
    %236 = vector.extract_strided_slice %207 {offsets = [4, 0, 0], sizes = [8, 8, 32], strides = [1, 1, 1]} : vector<14x8x32xf32> to vector<8x8x32xf32>
    %237 = vector.extract_strided_slice %2 {offsets = [32, 0], sizes = [1, 32], strides = [1, 1]} : vector<49x32xf32> to vector<1x32xf32>
    %238 = vector.shape_cast %237 : vector<1x32xf32> to vector<32xf32>
    %239 = vector.shape_cast %238 : vector<32xf32> to vector<1x1x32xf32>
    %240 = vector.broadcast %239 : vector<1x1x32xf32> to vector<8x8x32xf32>
    %241 = arith.mulf %236, %240 : vector<8x8x32xf32>
    %242 = arith.addf %228, %241 : vector<8x8x32xf32>
    %243 = vector.extract_strided_slice %207 {offsets = [5, 0, 0], sizes = [8, 8, 32], strides = [1, 1, 1]} : vector<14x8x32xf32> to vector<8x8x32xf32>
    %244 = vector.extract_strided_slice %2 {offsets = [39, 0], sizes = [1, 32], strides = [1, 1]} : vector<49x32xf32> to vector<1x32xf32>
    %245 = vector.shape_cast %244 : vector<1x32xf32> to vector<32xf32>
    %246 = vector.shape_cast %245 : vector<32xf32> to vector<1x1x32xf32>
    %247 = vector.broadcast %246 : vector<1x1x32xf32> to vector<8x8x32xf32>
    %248 = arith.mulf %243, %247 : vector<8x8x32xf32>
    %249 = arith.addf %235, %248 : vector<8x8x32xf32>
    %250 = vector.extract_strided_slice %207 {offsets = [6, 0, 0], sizes = [8, 8, 32], strides = [1, 1, 1]} : vector<14x8x32xf32> to vector<8x8x32xf32>
    %251 = vector.extract_strided_slice %2 {offsets = [46, 0], sizes = [1, 32], strides = [1, 1]} : vector<49x32xf32> to vector<1x32xf32>
    %252 = vector.shape_cast %251 : vector<1x32xf32> to vector<32xf32>
    %253 = vector.shape_cast %252 : vector<32xf32> to vector<1x1x32xf32>
    %254 = vector.broadcast %253 : vector<1x1x32xf32> to vector<8x8x32xf32>
    %255 = arith.mulf %250, %254 : vector<8x8x32xf32>
    %256 = arith.addf %242, %255 : vector<8x8x32xf32>
    %257 = vector.extract_strided_slice %1 {offsets = [0, 5, 0], sizes = [14, 8, 32], strides = [1, 1, 1]} : vector<14x14x32xf32> to vector<14x8x32xf32>
    %258 = vector.extract_strided_slice %257 {offsets = [0, 0, 0], sizes = [8, 8, 32], strides = [1, 1, 1]} : vector<14x8x32xf32> to vector<8x8x32xf32>
    %259 = vector.extract_strided_slice %2 {offsets = [5, 0], sizes = [1, 32], strides = [1, 1]} : vector<49x32xf32> to vector<1x32xf32>
    %260 = vector.shape_cast %259 : vector<1x32xf32> to vector<32xf32>
    %261 = vector.shape_cast %260 : vector<32xf32> to vector<1x1x32xf32>
    %262 = vector.broadcast %261 : vector<1x1x32xf32> to vector<8x8x32xf32>
    %263 = arith.mulf %258, %262 : vector<8x8x32xf32>
    %264 = arith.addf %249, %263 : vector<8x8x32xf32>
    %265 = vector.extract_strided_slice %257 {offsets = [1, 0, 0], sizes = [8, 8, 32], strides = [1, 1, 1]} : vector<14x8x32xf32> to vector<8x8x32xf32>
    %266 = vector.extract_strided_slice %2 {offsets = [12, 0], sizes = [1, 32], strides = [1, 1]} : vector<49x32xf32> to vector<1x32xf32>
    %267 = vector.shape_cast %266 : vector<1x32xf32> to vector<32xf32>
    %268 = vector.shape_cast %267 : vector<32xf32> to vector<1x1x32xf32>
    %269 = vector.broadcast %268 : vector<1x1x32xf32> to vector<8x8x32xf32>
    %270 = arith.mulf %265, %269 : vector<8x8x32xf32>
    %271 = arith.addf %256, %270 : vector<8x8x32xf32>
    %272 = vector.extract_strided_slice %257 {offsets = [2, 0, 0], sizes = [8, 8, 32], strides = [1, 1, 1]} : vector<14x8x32xf32> to vector<8x8x32xf32>
    %273 = vector.extract_strided_slice %2 {offsets = [19, 0], sizes = [1, 32], strides = [1, 1]} : vector<49x32xf32> to vector<1x32xf32>
    %274 = vector.shape_cast %273 : vector<1x32xf32> to vector<32xf32>
    %275 = vector.shape_cast %274 : vector<32xf32> to vector<1x1x32xf32>
    %276 = vector.broadcast %275 : vector<1x1x32xf32> to vector<8x8x32xf32>
    %277 = arith.mulf %272, %276 : vector<8x8x32xf32>
    %278 = arith.addf %264, %277 : vector<8x8x32xf32>
    %279 = vector.extract_strided_slice %257 {offsets = [3, 0, 0], sizes = [8, 8, 32], strides = [1, 1, 1]} : vector<14x8x32xf32> to vector<8x8x32xf32>
    %280 = vector.extract_strided_slice %2 {offsets = [26, 0], sizes = [1, 32], strides = [1, 1]} : vector<49x32xf32> to vector<1x32xf32>
    %281 = vector.shape_cast %280 : vector<1x32xf32> to vector<32xf32>
    %282 = vector.shape_cast %281 : vector<32xf32> to vector<1x1x32xf32>
    %283 = vector.broadcast %282 : vector<1x1x32xf32> to vector<8x8x32xf32>
    %284 = arith.mulf %279, %283 : vector<8x8x32xf32>
    %285 = arith.addf %271, %284 : vector<8x8x32xf32>
    %286 = vector.extract_strided_slice %257 {offsets = [4, 0, 0], sizes = [8, 8, 32], strides = [1, 1, 1]} : vector<14x8x32xf32> to vector<8x8x32xf32>
    %287 = vector.extract_strided_slice %2 {offsets = [33, 0], sizes = [1, 32], strides = [1, 1]} : vector<49x32xf32> to vector<1x32xf32>
    %288 = vector.shape_cast %287 : vector<1x32xf32> to vector<32xf32>
    %289 = vector.shape_cast %288 : vector<32xf32> to vector<1x1x32xf32>
    %290 = vector.broadcast %289 : vector<1x1x32xf32> to vector<8x8x32xf32>
    %291 = arith.mulf %286, %290 : vector<8x8x32xf32>
    %292 = arith.addf %278, %291 : vector<8x8x32xf32>
    %293 = vector.extract_strided_slice %257 {offsets = [5, 0, 0], sizes = [8, 8, 32], strides = [1, 1, 1]} : vector<14x8x32xf32> to vector<8x8x32xf32>
    %294 = vector.extract_strided_slice %2 {offsets = [40, 0], sizes = [1, 32], strides = [1, 1]} : vector<49x32xf32> to vector<1x32xf32>
    %295 = vector.shape_cast %294 : vector<1x32xf32> to vector<32xf32>
    %296 = vector.shape_cast %295 : vector<32xf32> to vector<1x1x32xf32>
    %297 = vector.broadcast %296 : vector<1x1x32xf32> to vector<8x8x32xf32>
    %298 = arith.mulf %293, %297 : vector<8x8x32xf32>
    %299 = arith.addf %285, %298 : vector<8x8x32xf32>
    %300 = vector.extract_strided_slice %257 {offsets = [6, 0, 0], sizes = [8, 8, 32], strides = [1, 1, 1]} : vector<14x8x32xf32> to vector<8x8x32xf32>
    %301 = vector.extract_strided_slice %2 {offsets = [47, 0], sizes = [1, 32], strides = [1, 1]} : vector<49x32xf32> to vector<1x32xf32>
    %302 = vector.shape_cast %301 : vector<1x32xf32> to vector<32xf32>
    %303 = vector.shape_cast %302 : vector<32xf32> to vector<1x1x32xf32>
    %304 = vector.broadcast %303 : vector<1x1x32xf32> to vector<8x8x32xf32>
    %305 = arith.mulf %300, %304 : vector<8x8x32xf32>
    %306 = arith.addf %292, %305 : vector<8x8x32xf32>
    %307 = vector.extract_strided_slice %1 {offsets = [0, 6, 0], sizes = [14, 8, 32], strides = [1, 1, 1]} : vector<14x14x32xf32> to vector<14x8x32xf32>
    %308 = vector.extract_strided_slice %307 {offsets = [0, 0, 0], sizes = [8, 8, 32], strides = [1, 1, 1]} : vector<14x8x32xf32> to vector<8x8x32xf32>
    %309 = vector.extract_strided_slice %2 {offsets = [6, 0], sizes = [1, 32], strides = [1, 1]} : vector<49x32xf32> to vector<1x32xf32>
    %310 = vector.shape_cast %309 : vector<1x32xf32> to vector<32xf32>
    %311 = vector.shape_cast %310 : vector<32xf32> to vector<1x1x32xf32>
    %312 = vector.broadcast %311 : vector<1x1x32xf32> to vector<8x8x32xf32>
    %313 = arith.mulf %308, %312 : vector<8x8x32xf32>
    %314 = arith.addf %299, %313 : vector<8x8x32xf32>
    %315 = vector.extract_strided_slice %307 {offsets = [1, 0, 0], sizes = [8, 8, 32], strides = [1, 1, 1]} : vector<14x8x32xf32> to vector<8x8x32xf32>
    %316 = vector.extract_strided_slice %2 {offsets = [13, 0], sizes = [1, 32], strides = [1, 1]} : vector<49x32xf32> to vector<1x32xf32>
    %317 = vector.shape_cast %316 : vector<1x32xf32> to vector<32xf32>
    %318 = vector.shape_cast %317 : vector<32xf32> to vector<1x1x32xf32>
    %319 = vector.broadcast %318 : vector<1x1x32xf32> to vector<8x8x32xf32>
    %320 = arith.mulf %315, %319 : vector<8x8x32xf32>
    %321 = arith.addf %306, %320 : vector<8x8x32xf32>
    %322 = vector.extract_strided_slice %307 {offsets = [2, 0, 0], sizes = [8, 8, 32], strides = [1, 1, 1]} : vector<14x8x32xf32> to vector<8x8x32xf32>
    %323 = vector.extract_strided_slice %2 {offsets = [20, 0], sizes = [1, 32], strides = [1, 1]} : vector<49x32xf32> to vector<1x32xf32>
    %324 = vector.shape_cast %323 : vector<1x32xf32> to vector<32xf32>
    %325 = vector.shape_cast %324 : vector<32xf32> to vector<1x1x32xf32>
    %326 = vector.broadcast %325 : vector<1x1x32xf32> to vector<8x8x32xf32>
    %327 = arith.mulf %322, %326 : vector<8x8x32xf32>
    %328 = arith.addf %314, %327 : vector<8x8x32xf32>
    %329 = vector.extract_strided_slice %307 {offsets = [3, 0, 0], sizes = [8, 8, 32], strides = [1, 1, 1]} : vector<14x8x32xf32> to vector<8x8x32xf32>
    %330 = vector.extract_strided_slice %2 {offsets = [27, 0], sizes = [1, 32], strides = [1, 1]} : vector<49x32xf32> to vector<1x32xf32>
    %331 = vector.shape_cast %330 : vector<1x32xf32> to vector<32xf32>
    %332 = vector.shape_cast %331 : vector<32xf32> to vector<1x1x32xf32>
    %333 = vector.broadcast %332 : vector<1x1x32xf32> to vector<8x8x32xf32>
    %334 = arith.mulf %329, %333 : vector<8x8x32xf32>
    %335 = arith.addf %321, %334 : vector<8x8x32xf32>
    %336 = vector.extract_strided_slice %307 {offsets = [4, 0, 0], sizes = [8, 8, 32], strides = [1, 1, 1]} : vector<14x8x32xf32> to vector<8x8x32xf32>
    %337 = vector.extract_strided_slice %2 {offsets = [34, 0], sizes = [1, 32], strides = [1, 1]} : vector<49x32xf32> to vector<1x32xf32>
    %338 = vector.shape_cast %337 : vector<1x32xf32> to vector<32xf32>
    %339 = vector.shape_cast %338 : vector<32xf32> to vector<1x1x32xf32>
    %340 = vector.broadcast %339 : vector<1x1x32xf32> to vector<8x8x32xf32>
    %341 = arith.mulf %336, %340 : vector<8x8x32xf32>
    %342 = arith.addf %328, %341 : vector<8x8x32xf32>
    %343 = vector.extract_strided_slice %307 {offsets = [5, 0, 0], sizes = [8, 8, 32], strides = [1, 1, 1]} : vector<14x8x32xf32> to vector<8x8x32xf32>
    %344 = vector.extract_strided_slice %2 {offsets = [41, 0], sizes = [1, 32], strides = [1, 1]} : vector<49x32xf32> to vector<1x32xf32>
    %345 = vector.shape_cast %344 : vector<1x32xf32> to vector<32xf32>
    %346 = vector.shape_cast %345 : vector<32xf32> to vector<1x1x32xf32>
    %347 = vector.broadcast %346 : vector<1x1x32xf32> to vector<8x8x32xf32>
    %348 = arith.mulf %343, %347 : vector<8x8x32xf32>
    %349 = arith.addf %335, %348 : vector<8x8x32xf32>
    %350 = vector.extract_strided_slice %307 {offsets = [6, 0, 0], sizes = [8, 8, 32], strides = [1, 1, 1]} : vector<14x8x32xf32> to vector<8x8x32xf32>
    %351 = vector.extract_strided_slice %2 {offsets = [48, 0], sizes = [1, 32], strides = [1, 1]} : vector<49x32xf32> to vector<1x32xf32>
    %352 = vector.shape_cast %351 : vector<1x32xf32> to vector<32xf32>
    %353 = vector.shape_cast %352 : vector<32xf32> to vector<1x1x32xf32>
    %354 = vector.broadcast %353 : vector<1x1x32xf32> to vector<8x8x32xf32>
    %355 = arith.mulf %350, %354 : vector<8x8x32xf32>
    %356 = arith.addf %342, %355 : vector<8x8x32xf32>
    %357 = arith.addf %356, %349 : vector<8x8x32xf32>
    %358 = vector.shape_cast %4 : vector<32xf32> to vector<1x1x32xf32>
    %359 = vector.broadcast %358 : vector<1x1x32xf32> to vector<8x8x32xf32>
    %360 = arith.addf %357, %359 : vector<8x8x32xf32>
    %c0_8 = arith.constant 0 : index
    %c0_9 = arith.constant 0 : index
    %c0_10 = arith.constant 0 : index
    %c0_11 = arith.constant 0 : index
    %361 = vector.load %arg5[%c0_8, %c0_9, %c0_10, %c0_11] : memref<1x8x8x32xf32, #tpu.memory_space<vmem>>, vector<1x8x8x32xf32>
    %362 = vector.shape_cast %361 : vector<1x8x8x32xf32> to vector<8x8x32xf32>
    %363 = vector.shape_cast %360 : vector<8x8x32xf32> to vector<1x8x8x32xf32>
    tpu.vector_store %arg5[%c0_8, %c0_9, %c0_10, %c0_11], %363 {strides = array<i32>} : memref<1x8x8x32xf32, #tpu.memory_space<vmem>>, vector<1x8x8x32xf32>,
    return
  }
  func.func @transform_0(%arg0: i32, %arg1: i32) -> (i32, i32, i32, i32) {
    %c0_i32 = arith.constant 0 : i32
    %c0_i32_0 = arith.constant 0 : i32
    %c0_i32_1 = arith.constant 0 : i32
    return %arg0, %c0_i32, %c0_i32_0, %arg1 : i32, i32, i32, i32
  }
  func.func @transform_1(%arg0: i32, %arg1: i32) -> (i32, i32) {
    %c0_i32 = arith.constant 0 : i32
    %c0_i32_0 = arith.constant 0 : i32
    return %c0_i32, %arg1 : i32, i32
  }
  func.func @transform_2(%arg0: i32, %arg1: i32) -> (i32, i32) {
    %c0_i32 = arith.constant 0 : i32
    %c0_i32_0 = arith.constant 0 : i32
    return %c0_i32, %arg1 : i32, i32
  }
  func.func @transform_3(%arg0: i32, %arg1: i32) -> (i32, i32, i32, i32) {
    %c0_i32 = arith.constant 0 : i32
    %c0_i32_0 = arith.constant 0 : i32
    %c0_i32_1 = arith.constant 0 : i32
    return %arg0, %c0_i32, %c0_i32_0, %arg1 : i32, i32, i32, i32
  }
}

</mosaic_0001>

<bundles_post_ra>
// kernel: ppeg_forward.1
= control target key start
LH: loop header
LB: loop body
LE: loop exit
PB: predicated region body
PF: predicated region fallthrough
CT: control target
= control target key end

     0   :  { %s3923_s12 = smov 0   ;;  %s3925_s13 = smov 0   ;;  %s7128_s0 = inlined_call_operand.vmem [shape: f32[2,14,14,32], index: 0, kind: input, shape index: {}]   ;;  %s7129_s1 = inlined_call_operand.vmem [shape: f32[49,32], index: 1, kind: input, shape index: {}]   ;;  %s7130_s2 = inlined_call_operand.vmem [shape: f32[1,32], index: 2, kind: input, shape index: {}]   ;;  %s7131_s3 = inlined_call_operand.vmem [shape: f32[2,8,8,32], index: 3, kind: output, shape index: {}]  }
   0x1   :  { %s3927_s14 = smov 0  }
   0x2 LB: > { %s25_s15 = sadd.s32 1, %s3897_s13  ;;  %p3755_p0 = scmp.ge.s32.totalorder %s3901_s14, 1  ;;  %s3901_s14 = sphi %s3927_s14, %s13_s14   ;;  %s3897_s13 = sphi %s3925_s13, %s7543_s13   ;;  %s3893_s12 = sphi %s3923_s12, %s7542_s12  }
   0x3   : > { %p27_p1 = scmp.ge.s32.totalorder %s25_s15, 2  ;;  %p173_p2 = scmp.lt.s32.totalorder %s3901_s14, 3 }
   0x5   : > { %s7545_s15 = smov (%p27_p1, %s25_s15), 0  ;;  %p174_p3 = pnand %p3755_p0, %p173_p2 }
   0x7   : > { %177 = sbr.rel (%p174_p3) target bundleno = 572 (0x23c), region = 32 }
   0xe   : > { %p210_p4 = scmp.lt.s32.totalorder %s3893_s12, 1  ;;  %v269_v0 = vlaneseq  ;;  %v3946_v2 = vld [vmem:[%s7129_s1] sm:$0xff]  ;;  %v3951_v3 = vld [vmem:[%s7129_s1 + $0x8] sm:$0xff]  ;;  %v3956_v4 = vld [vmem:[%s7129_s1 + $0x10] sm:$0xff]  ;;  %vm445_vm0 = vcmask 1046528   ;;  %vm978_vm1 = vcmask 1045504  }
   0xf   : > { %7289 = vst [vmem:[#allocation2_spill] sm:$0xff] %v3946_v2  ;;  %7290 = vst [vmem:[#allocation3_spill] sm:$0xff] %v3951_v3  ;;  %v3962_v5 = vld [vmem:[%s7129_s1 + $0x18] sm:$0xff]  ;;  %v3975_v10 = vld [vmem:[%s7129_s1 + $0x20] sm:$0xff]  ;;  %vm1511_vm2 = vcmask 1044480   ;;  %vm2044_vm3 = vcmask 1043456  }
  0x10   : > { %s7547_s12 = smov (!%p210_p4, %s3893_s12), 1  ;;  %v270_v1 = vshrl.u32 %v269_v0, 7  ;;  %7291 = vst [vmem:[#allocation4_spill] sm:$0xff] %v3956_v4  ;;  %7292 = vst [vmem:[#allocation5_spill] sm:$0xff] %v3962_v5  ;;  %v3980_v11 = vld [vmem:[%s7129_s1 + $0x28] sm:$0xff]  ;;  %vm2577_vm4 = vcmask 1042432  }
  0x11   : > { %s3764_s22 = smul.u32 224, %s7547_s12  ;;  %7297 = vst [vmem:[#allocation10_spill] sm:$0xff] %v3975_v10  ;;  %7298 = vst [vmem:[#allocation11_spill] sm:$0xff] %v3980_v11  ;;  %vm3110_vm5 = vcmask 1041408   ;;  %vm3629_vm6 = vcmask 261120  }
  0x12   : > { %v3964_v6 = vsub.s32 0, %v270_v1  ;;  %v3966_v7 = vsub.s32 7, %v270_v1  ;;  %v3968_v8 = vsub.s32 6, %v270_v1  ;;  %v3970_v9 = vsub.s32 5, %v270_v1 }
  0x13   : > { %v3982_v12 = vsub.s32 4, %v270_v1  ;;  %v3984_v13 = vsub.s32 3, %v270_v1  ;;  %v3986_v14 = vsub.s32 2, %v270_v1  ;;  %v3988_v15 = vsub.s32 1, %v270_v1  ;;  %s3993_s4 = scalar_lea.vmem %s7128_s0, %s3764_s22 }
  0x14   : > { %7293 = vst [vmem:[#allocation6_spill] sm:$0xff] %v3964_v6  ;;  %7294 = vst [vmem:[#allocation7_spill] sm:$0xff] %v3966_v7  ;;  %v272_v16 = vrot.slane %v3946_v2, %v3964_v6  ;;  %v292_v17 = vrot.slane %v3946_v2, %v3966_v7  ;;  %v312_v18 = vrot.slane %v3951_v3, %v3968_v8  ;;  %v4002_v19 = vld [vmem:[%s3993_s4] sm:$0xff]  ;;  %v4005_v20 = vld [vmem:[%s3993_s4 + $0x10] sm:$0xff] }
  0x15   : > { %7295 = vst [vmem:[#allocation8_spill] sm:$0xff] %v3968_v8  ;;  %7296 = vst [vmem:[#allocation9_spill] sm:$0xff] %v3970_v9  ;;  %v332_v21 = vrot.slane %v3956_v4, %v3970_v9  ;;  %v4011_v22 = vrot.slane %v3962_v5, %v3982_v12  ;;  %v4015_v23 = vrot.slane %v3946_v2, %v3988_v15  ;;  %v4018_v24 = vld [vmem:[%s3993_s4 + $0x20] sm:$0xff]  ;;  %v4031_v29 = vld [vmem:[%s3993_s4 + $0x30] sm:$0xff] }
  0x16   : > { %7299 = vst [vmem:[#allocation12_spill] sm:$0xff] %v3982_v12  ;;  %7300 = vst [vmem:[#allocation13_spill] sm:$0xff] %v3984_v13  ;;  %v273_v25 = vmul.f32 %v272_v16, %v4002_v19  ;;  %v274_v26 = vmul.f32 %v272_v16, %v4005_v20  ;;  %v4024_v27 = vrot.slane %v3975_v10, %v3984_v13  ;;  %v4034_v30 = vld [vmem:[%s3993_s4 + $0x40] sm:$0xff]  ;;  %v4044_v35 = vld [vmem:[%s3993_s4 + $0x50] sm:$0xff] }
  0x17   : > { %7301 = vst [vmem:[#allocation14_spill] sm:$0xff] %v3986_v14  ;;  %7302 = vst [vmem:[#allocation15_spill] sm:$0xff] %v3988_v15  ;;  %v4028_v28 = vrot.slane %v3980_v11, %v3986_v14  ;;  %v275_v31 = vmul.f32 %v272_v16, %v4018_v24  ;;  %v293_v32 = vmul.f32 %v292_v17, %v4005_v20  ;;  %v4054_v40 = vld [vmem:[%s3993_s4 + $0x60] sm:$0xff]  ;;  %v4057_v41 = vld [vmem:[%s3993_s4 + $0x70] sm:$0xff] }
  0x18   : > { %7303 = vst [vmem:[#allocation16_spill] sm:$0xff] %v4002_v19  ;;  %7304 = vst [vmem:[#allocation17_spill] sm:$0xff] %v4005_v20  ;;  %v294_v33 = vmul.f32 %v292_v17, %v4018_v24  ;;  %v4041_v34 = vrot.slane %v3951_v3, %v3964_v6  ;;  %v276_v36 = vmul.f32 %v272_v16, %v4031_v29  ;;  %v4064_v46 = vld [vmem:[%s3993_s4 + $0x80] sm:$0xff]  ;;  %v4071_v51 = vld [vmem:[%s3993_s4 + $0x90] sm:$0xff] }
  0x19   : > { %7305 = vst [vmem:[#allocation18_spill] sm:$0xff] %v4018_v24  ;;  %7306 = vst [vmem:[#allocation19_spill] sm:$0xff] %v4031_v29  ;;  %v277_v37 = vmul.f32 %v272_v16, %v4034_v30  ;;  %v313_v38 = vmul.f32 %v312_v18, %v4018_v24  ;;  %v4051_v39 = vmul.f32 %v4015_v23, %v4002_v19  ;;  %v4082_v60 = vld [vmem:[%s3993_s4 + $0xa0] sm:$0xff] }
  0x1a   : > { %7307 = vst [vmem:[#allocation20_spill] sm:$0xff] %v4034_v30  ;;  %7308 = vst [vmem:[#allocation21_spill] sm:$0xff] %v4044_v35  ;;  %v295_v42 = vmul.f32 %v292_v17, %v4031_v29  ;;  %v296_v43 = vmul.f32 %v292_v17, %v4034_v30  ;;  %v314_v44 = vmul.f32 %v312_v18, %v4031_v29 }
  0x1b   : > { %v315_v45 = vmul.f32 %v312_v18, %v4034_v30  ;;  %v278_v47 = vmul.f32 %v272_v16, %v4044_v35  ;;  %v279_v48 = vmul.f32 %v272_v16, %v4054_v40  ;;  %v280_v49 = vmul.f32 %v272_v16, %v4057_v41  ;;  %7309 = vst [vmem:[#allocation22_spill] sm:$0xff] %v4071_v51 }
  0x1c   : > { %v297_v50 = vmul.f32 %v292_v17, %v4044_v35  ;;  %v298_v52 = vmul.f32 %v292_v17, %v4054_v40  ;;  %v316_v53 = vmul.f32 %v312_v18, %v4044_v35  ;;  %v317_v54 = vmul.f32 %v312_v18, %v4054_v40  ;;  %7310 = vst [vmem:[#allocation23_spill] sm:$0xff] %v4082_v60 }
  0x1d   : > { %v318_v55 = vmul.f32 %v312_v18, %v4057_v41  ;;  %v299_v56 = vmul.f32 %v292_v17, %v4057_v41  ;;  %v300_v57 = vmul.f32 %v292_v17, %v4064_v46  ;;  %v319_v58 = vmul.f32 %v312_v18, %v4064_v46 }
  0x1e   : > { %v320_v59 = vmul.f32 %v312_v18, %v4071_v51  ;;  %v321_v61 = vadd.f32 %v313_v38, %v273_v25  ;;  %v322_v62 = vadd.f32 %v314_v44, %v274_v26  ;;  %v323_v63 = vadd.f32 %v315_v45, %v275_v31 }
  0x1f   : > { %v324_v0 = vadd.f32 %v316_v53, %v276_v36  ;;  %v325_v1 = vadd.f32 %v317_v54, %v277_v37  ;;  %v326_v16 = vadd.f32 %v318_v55, %v278_v47  ;;  %v333_v6 = vmul.f32 %v332_v21, %v4031_v29  ;;  %v4093_v36 = vld [vmem:[%s3993_s4 + $0xb0] sm:$0xff] }
  0x20   : > { %v334_v19 = vmul.f32 %v332_v21, %v4034_v30  ;;  %v335_v15 = vmul.f32 %v332_v21, %v4044_v35  ;;  %v336_v17 = vmul.f32 %v332_v21, %v4054_v40  ;;  %v337_v2 = vmul.f32 %v332_v21, %v4057_v41  ;;  %7311 = vst [vmem:[#allocation24_spill] sm:$0xff] %v4093_v36 }
  0x21   : > { %v338_v18 = vmul.f32 %v332_v21, %v4064_v46  ;;  %v327_v14 = vadd.f32 %v319_v58, %v279_v48  ;;  %v328_v25 = vadd.f32 %v320_v59, %v280_v49  ;;  %v339_v26 = vmul.f32 %v332_v21, %v4071_v51 }
  0x22   : > { %v340_v31 = vmul.f32 %v332_v21, %v4082_v60  ;;  %v341_v37 = vadd.f32 %v333_v6, %v293_v32  ;;  %v342_v38 = vadd.f32 %v334_v19, %v294_v33  ;;  %v343_v44 = vadd.f32 %v335_v15, %v295_v42  ;;  %v4112_v42 = vld [vmem:[%s3993_s4 + $0xc0] sm:$0xff] }
  0x23   : > { %v344_v45 = vadd.f32 %v336_v17, %v296_v43  ;;  %v345_v47 = vadd.f32 %v337_v2, %v297_v50  ;;  %v346_v53 = vadd.f32 %v338_v18, %v298_v52  ;;  %v353_v54 = vmul.f32 %v4011_v22, %v4034_v30  ;;  %7312 = vst [vmem:[#allocation25_spill] sm:$0xff] %v4112_v42  ;;  %v4135_v18 = vld [vmem:[%s3993_s4 + $0xd0] sm:$0xff] }
  0x24   : > { %v354_v48 = vmul.f32 %v4011_v22, %v4044_v35  ;;  %v355_v49 = vmul.f32 %v4011_v22, %v4054_v40  ;;  %v356_v21 = vmul.f32 %v4011_v22, %v4057_v41  ;;  %v357_v6 = vmul.f32 %v4011_v22, %v4064_v46  ;;  %7313 = vst [vmem:[#allocation26_spill] sm:$0xff] %v4135_v18 }
  0x25   : > { %v358_v15 = vmul.f32 %v4011_v22, %v4071_v51  ;;  %v347_v2 = vadd.f32 %v339_v26, %v299_v56  ;;  %v348_v19 = vadd.f32 %v340_v31, %v300_v57  ;;  %v359_v32 = vmul.f32 %v4011_v22, %v4082_v60 }
  0x26   : > { %v360_v33 = vmul.f32 %v4011_v22, %v4093_v36  ;;  %v361_v43 = vadd.f32 %v353_v54, %v321_v61  ;;  %v362_v50 = vadd.f32 %v354_v48, %v322_v62  ;;  %v363_v52 = vadd.f32 %v355_v49, %v323_v63  ;;  %v4154_v49 = vld [vmem:[%s3993_s4 + $0x8] sm:$0x3f] }
  0x27   : > { %v364_v55 = vadd.f32 %v356_v21, %v324_v0  ;;  %v365_v58 = vadd.f32 %v357_v6, %v325_v1  ;;  %v366_v59 = vadd.f32 %v358_v15, %v326_v16  ;;  %v373_v17 = vmul.f32 %v4024_v27, %v4044_v35  ;;  %7314 = vst [vmem:[#allocation27_spill] sm:$0xff] %v4154_v49  ;;  %v4168_v21 = vld [vmem:[%s3993_s4 + $0x28] sm:$0x3f] }
  0x28   : > { %v374_v56 = vmul.f32 %v4024_v27, %v4054_v40  ;;  %v375_v57 = vmul.f32 %v4024_v27, %v4057_v41  ;;  %v376_v22 = vmul.f32 %v4024_v27, %v4064_v46  ;;  %v377_v61 = vmul.f32 %v4024_v27, %v4071_v51  ;;  %7316 = vst [vmem:[#allocation29_spill] sm:$0xff] %v4168_v21 }
  0x29   : > { %v378_v62 = vmul.f32 %v4024_v27, %v4082_v60  ;;  %v4126_v63 = vadd.f32 %v359_v32, %v327_v14  ;;  %v4128_v0 = vadd.f32 %v360_v33, %v328_v25  ;;  %v379_v1 = vmul.f32 %v4024_v27, %v4093_v36 }
  0x2a   : > { %v380_v16 = vmul.f32 %v4024_v27, %v4112_v42  ;;  %v4137_v26 = vadd.f32 %v373_v17, %v341_v37  ;;  %v4139_v31 = vadd.f32 %v374_v56, %v342_v38  ;;  %v4141_v54 = vadd.f32 %v375_v57, %v343_v44  ;;  %v4179_v17 = vld [vmem:[%s3993_s4 + $0x38] sm:$0x3f]  ;;  %v4182_v56 = vld [vmem:[%s3993_s4 + $0x48] sm:$0x3f] }
  0x2b   : > { %v4143_v14 = vadd.f32 %v376_v22, %v344_v45  ;;  %v4145_v25 = vadd.f32 %v377_v61, %v345_v47  ;;  %v4147_v48 = vadd.f32 %v378_v62, %v346_v53  ;;  %v393_v27 = vmul.f32 %v4028_v28, %v4054_v40  ;;  %v4165_v53 = vld [vmem:[%s3993_s4 + $0x18] sm:$0x3f]  ;;  %7317 = vst [vmem:[#allocation30_spill] sm:$0xff] %v4179_v17  ;;  %v4196_v62 = vld [vmem:[%s3993_s4 + $0x68] sm:$0x3f] }
  0x2c   : > { %v394_v37 = vmul.f32 %v4028_v28, %v4057_v41  ;;  %v395_v38 = vmul.f32 %v4028_v28, %v4064_v46  ;;  %v396_v44 = vmul.f32 %v4028_v28, %v4071_v51  ;;  %v397_v45 = vmul.f32 %v4028_v28, %v4082_v60  ;;  %7315 = vst [vmem:[#allocation28_spill] sm:$0xff] %v4165_v53 }
  0x2d   : > { %v398_v47 = vmul.f32 %v4028_v28, %v4093_v36  ;;  %v4170_v6 = vadd.f32 %v379_v1, %v347_v2  ;;  %v4172_v15 = vadd.f32 %v380_v16, %v348_v19  ;;  %v399_v32 = vmul.f32 %v4028_v28, %v4112_v42  ;;  %7318 = vst [vmem:[#allocation31_spill] sm:$0xff] %v4182_v56  ;;  %v4193_v19 = vld [vmem:[%s3993_s4 + $0x58] sm:$0x3f] }
  0x2e   : > { %v400_v33 = vmul.f32 %v4028_v28, %v4135_v18  ;;  %v4184_v57 = vadd.f32 %v393_v27, %v361_v43  ;;  %v4186_v22 = vadd.f32 %v394_v37, %v362_v50  ;;  %v4188_v61 = vadd.f32 %v395_v38, %v363_v52  ;;  %7319 = vst [vmem:[#allocation32_spill] sm:$0xff] %v4193_v19  ;;  %v4207_v50 = vld [vmem:[%s3993_s4 + $0x78] sm:$0x3f] }
  0x2f   : > { %v4190_v2 = vadd.f32 %v396_v44, %v364_v55  ;;  %v4198_v1 = vadd.f32 %v397_v45, %v365_v58  ;;  %v4200_v16 = vadd.f32 %v398_v47, %v366_v59  ;;  %v414_v28 = vmul.f32 %v4015_v23, %v4154_v49 }
  0x30   : > { %v415_v43 = vmul.f32 %v4015_v23, %v4005_v20  ;;  %v416_v52 = vmul.f32 %v4015_v23, %v4165_v53  ;;  %v417_v55 = vmul.f32 %v4015_v23, %v4018_v24  ;;  %v418_v58 = vmul.f32 %v4015_v23, %v4168_v21 }
  0x31   : > { %7320 = vst [vmem:[#allocation33_spill] sm:$0xff] %v4198_v1  ;;  %7321 = vst [vmem:[#allocation34_spill] sm:$0xff] %v4200_v16  ;;  %v419_v59 = vmul.f32 %v4015_v23, %v4031_v29  ;;  %v420_v27 = vmul.f32 %v4015_v23, %v4179_v17  ;;  %v421_v37 = vmul.f32 %v4015_v23, %v4034_v30  ;;  %v446_v36 = vrot.slane %v4051_v39, 1 }
  0x32   : > { %v422_v38 = vmul.f32 %v4015_v23, %v4182_v56  ;;  %v423_v44 = vmul.f32 %v4015_v23, %v4044_v35  ;;  %v424_v45 = vmul.f32 %v4015_v23, %v4193_v19  ;;  %v425_v47 = vmul.f32 %v4015_v23, %v4054_v40 }
  0x33   : > { %v426_v49 = vmul.f32 %v4015_v23, %v4196_v62  ;;  %v427_v18 = vmul.f32 %v4015_v23, %v4057_v41  ;;  %v428_v42 = vmul.f32 %v4015_v23, %v4207_v50  ;;  %v447_v60 = vrot.slane %v414_v28, 1 }
  0x34   : > { %v449_v51 = vrot.slane %v415_v43, 1  ;;  %v450_v11 = vrot.slane %v416_v52, 1  ;;  %v452_v13 = vrot.slane %v417_v55, 1  ;;  %v453_v10 = vrot.slane %v418_v58, 1 }
  0x35   : > { %v455_v12 = vrot.slane %v419_v59, 1  ;;  %v448_v5 = vsel %vm445_vm0, %v446_v36, %v447_v60  ;;  %v456_v9 = vrot.slane %v420_v27, 1  ;;  %v458_v4 = vrot.slane %v421_v37, 1 }
  0x36   : > { %v459_v8 = vrot.slane %v422_v38, 1  ;;  %v451_v3 = vsel %vm445_vm0, %v449_v51, %v450_v11  ;;  %v454_v7 = vsel %vm445_vm0, %v452_v13, %v453_v10  ;;  %v461_v16 = vrot.slane %v423_v44, 1 }
  0x37   : > { %v462_v1 = vrot.slane %v424_v45, 1  ;;  %v457_v23 = vsel %vm445_vm0, %v455_v12, %v456_v9  ;;  %v464_v28 = vrot.slane %v425_v47, 1  ;;  %v465_v43 = vrot.slane %v426_v49, 1 }
  0x38   : > { %v460_v39 = vsel %vm445_vm0, %v458_v4, %v459_v8  ;;  %v407_v52 = vadd.f32 %v399_v32, %v4126_v63  ;;  %v467_v36 = vrot.slane %v427_v18, 1  ;;  %v468_v55 = vrot.slane %v428_v42, 1 }
  0x39   : > { %v463_v60 = vsel %vm445_vm0, %v461_v16, %v462_v1  ;;  %v408_v58 = vadd.f32 %v400_v33, %v4128_v0  ;;  %v466_v11 = vsel %vm445_vm0, %v464_v28, %v465_v43  ;;  %v4246_v10 = vadd.f32 %v448_v5, %v4137_v26 }
  0x3a   : > { %v4249_v9 = vadd.f32 %v451_v3, %v4139_v31  ;;  %v469_v4 = vsel %vm445_vm0, %v467_v36, %v468_v55  ;;  %v4253_v8 = vadd.f32 %v454_v7, %v4141_v54  ;;  %v4256_v12 = vadd.f32 %v457_v23, %v4143_v14  ;;  %v4271_v7 = vld [vmem:[%s3993_s4 + $0x88] sm:$0x3f] }
  0x3b   : > { %v4259_v13 = vadd.f32 %v460_v39, %v4145_v25  ;;  %v4262_v51 = vadd.f32 %v463_v60, %v4147_v48  ;;  %v490_v5 = vmul.f32 %v4041_v34, %v4005_v20  ;;  %v491_v3 = vmul.f32 %v4041_v34, %v4165_v53 }
  0x3c   : > { %v492_v42 = vmul.f32 %v4041_v34, %v4018_v24  ;;  %v493_v63 = vmul.f32 %v4041_v34, %v4168_v21  ;;  %v494_v0 = vmul.f32 %v4041_v34, %v4031_v29  ;;  %v495_v18 = vmul.f32 %v4041_v34, %v4179_v17 }
  0x3d   : > { %v496_v26 = vmul.f32 %v4041_v34, %v4034_v30  ;;  %v497_v31 = vmul.f32 %v4041_v34, %v4182_v56  ;;  %v498_v54 = vmul.f32 %v4041_v34, %v4044_v35  ;;  %v499_v14 = vmul.f32 %v4041_v34, %v4193_v19 }
  0x3e   : > { %v500_v25 = vmul.f32 %v4041_v34, %v4054_v40  ;;  %v501_v48 = vmul.f32 %v4041_v34, %v4196_v62  ;;  %v502_v49 = vmul.f32 %v4041_v34, %v4057_v41  ;;  %v503_v32 = vmul.f32 %v4041_v34, %v4207_v50 }
  0x3f   : > { %v504_v33 = vmul.f32 %v4041_v34, %v4064_v46  ;;  %v505_v1 = vmul.f32 %v4041_v34, %v4271_v7  ;;  %v522_v16 = vrot.slane %v490_v5, 1  ;;  %v523_v59 = vrot.slane %v491_v3, 1 }
  0x40   : > { %v525_v27 = vrot.slane %v492_v42, 1  ;;  %v526_v37 = vrot.slane %v493_v63, 1  ;;  %v528_v38 = vrot.slane %v494_v0, 1  ;;  %v529_v44 = vrot.slane %v495_v18, 1 }
  0x41   : > { %v531_v45 = vrot.slane %v496_v26, 1  ;;  %v524_v47 = vsel %vm445_vm0, %v522_v16, %v523_v59  ;;  %v532_v23 = vrot.slane %v497_v31, 1  ;;  %v534_v39 = vrot.slane %v498_v54, 1  ;;  %v7327_v59 = vld [vmem:[#allocation8_spill] sm:$0xff] }
  0x42   : > { %v535_v28 = vrot.slane %v499_v14, 1  ;;  %v527_v43 = vsel %vm445_vm0, %v525_v27, %v526_v37  ;;  %v530_v60 = vsel %vm445_vm0, %v528_v38, %v529_v44  ;;  %v537_v36 = vrot.slane %v500_v25, 1  ;;  %v7328_v27 = vld [vmem:[#allocation4_spill] sm:$0xff]  ;;  %v7329_v37 = vld [vmem:[#allocation9_spill] sm:$0xff] }
  0x43   : > { %v538_v55 = vrot.slane %v501_v48, 1  ;;  %v533_v34 = vsel %vm445_vm0, %v531_v45, %v532_v23  ;;  %v540_v3 = vrot.slane %v502_v49, 1  ;;  %v541_v42 = vrot.slane %v503_v32, 1  ;;  %v7322_v49 = vld [vmem:[#allocation33_spill] sm:$0xff]  ;;  %v7331_v44 = vld [vmem:[#allocation12_spill] sm:$0xff]  ;;  %v7332_v45 = vld [vmem:[#allocation10_spill] sm:$0xff] }
  0x44   : > { %v536_v5 = vsel %vm445_vm0, %v534_v39, %v535_v28  ;;  %v4305_v63 = vadd.f32 %v466_v11, %v4170_v6  ;;  %v543_v18 = vrot.slane %v504_v33, 1  ;;  %v544_v26 = vrot.slane %v505_v1, 1  ;;  %v7326_v1 = vld [vmem:[#allocation3_spill] sm:$0xff]  ;;  %v7334_v23 = vld [vmem:[#allocation13_spill] sm:$0xff] }
  0x45   : > { %v539_v0 = vsel %vm445_vm0, %v537_v36, %v538_v55  ;;  %v4309_v31 = vadd.f32 %v469_v4, %v4172_v15  ;;  %v542_v54 = vsel %vm445_vm0, %v540_v3, %v541_v42  ;;  %v4313_v14 = vadd.f32 %v524_v47, %v4184_v57  ;;  %v7323_v4 = vld [vmem:[#allocation34_spill] sm:$0xff] }
  0x46   : > { %v4316_v25 = vadd.f32 %v527_v43, %v4186_v22  ;;  %v545_v48 = vsel %vm445_vm0, %v543_v18, %v544_v26  ;;  %v4320_v6 = vadd.f32 %v530_v60, %v4188_v61  ;;  %v4323_v11 = vadd.f32 %v533_v34, %v4190_v2  ;;  %v7325_v22 = vld [vmem:[#allocation7_spill] sm:$0xff]  ;;  %v7330_v2 = vld [vmem:[#allocation5_spill] sm:$0xff] }
  0x47   : > { %v4326_v15 = vadd.f32 %v536_v5, %v7322_v49  ;;  %v4329_v32 = vadd.f32 %v539_v0, %v7323_v4  ;;  %v4331_v33 = vadd.f32 %v542_v54, %v407_v52  ;;  %v4333_v57 = vadd.f32 %v545_v48, %v408_v58  ;;  %v7335_v52 = vld [vmem:[#allocation11_spill] sm:$0xff]  ;;  %v4354_v58 = vld [vmem:[%s3993_s4 + $0x98] sm:$0x3f]  ;;  %v7337_v49 = vld [vmem:[#allocation22_spill] sm:$0xff] }
  0x48   : > { %v565_v16 = vrot.slane %v7326_v1, %v7325_v22  ;;  %v4339_v61 = vrot.slane %v7328_v27, %v7327_v59  ;;  %v4343_v38 = vrot.slane %v7330_v2, %v7329_v37  ;;  %v4347_v47 = vrot.slane %v7332_v45, %v7331_v44 }
  0x49   : > { %7324 = vst [vmem:[#allocation33_spill] sm:$0xff] %v4333_v57  ;;  %v4351_v39 = vrot.slane %v7335_v52, %v7334_v23 }
  0x4a   : > { %7333 = vst [vmem:[#allocation34_spill] sm:$0xff] %v4347_v47  ;;  %v566_v28 = vmul.f32 %v565_v16, %v4018_v24  ;;  %v567_v43 = vmul.f32 %v565_v16, %v4168_v21  ;;  %v568_v60 = vmul.f32 %v565_v16, %v4031_v29  ;;  %v569_v36 = vmul.f32 %v565_v16, %v4179_v17 }
  0x4b   : > { %7336 = vst [vmem:[#allocation3_spill] sm:$0xff] %v4351_v39  ;;  %v570_v55 = vmul.f32 %v565_v16, %v4034_v30  ;;  %v571_v34 = vmul.f32 %v565_v16, %v4182_v56  ;;  %v572_v5 = vmul.f32 %v565_v16, %v4044_v35  ;;  %v573_v3 = vmul.f32 %v565_v16, %v4193_v19 }
  0x4c   : > { %v574_v42 = vmul.f32 %v565_v16, %v4054_v40  ;;  %v575_v0 = vmul.f32 %v565_v16, %v4196_v62  ;;  %v576_v18 = vmul.f32 %v565_v16, %v4057_v41  ;;  %v577_v26 = vmul.f32 %v565_v16, %v4207_v50 }
  0x4d   : > { %v578_v54 = vmul.f32 %v565_v16, %v4064_v46  ;;  %v579_v48 = vmul.f32 %v565_v16, %v4271_v7  ;;  %v580_v4 = vmul.f32 %v565_v16, %v7337_v49  ;;  %v581_v27 = vmul.f32 %v565_v16, %v4354_v58 }
  0x4e   : > { %v598_v2 = vrot.slane %v566_v28, 1  ;;  %v599_v45 = vrot.slane %v567_v43, 1  ;;  %v601_v52 = vrot.slane %v568_v60, 1  ;;  %v602_v23 = vrot.slane %v569_v36, 1 }
  0x4f   : > { %v604_v44 = vrot.slane %v570_v55, 1  ;;  %v605_v37 = vrot.slane %v571_v34, 1  ;;  %v607_v59 = vrot.slane %v572_v5, 1  ;;  %v608_v22 = vrot.slane %v573_v3, 1  ;;  %v7338_v5 = vld [vmem:[#allocation14_spill] sm:$0xff] }
  0x50   : > { %v600_v21 = vsel %vm445_vm0, %v598_v2, %v599_v45  ;;  %v603_v24 = vsel %vm445_vm0, %v601_v52, %v602_v23  ;;  %v610_v53 = vrot.slane %v574_v42, 1  ;;  %v611_v20 = vrot.slane %v575_v0, 1  ;;  %v7339_v3 = vld [vmem:[#allocation2_spill] sm:$0xff]  ;;  %v7341_v42 = vld [vmem:[#allocation15_spill] sm:$0xff] }
  0x51   : > { %v606_v39 = vsel %vm445_vm0, %v604_v44, %v605_v37  ;;  %v609_v47 = vsel %vm445_vm0, %v607_v59, %v608_v22  ;;  %v613_v57 = vrot.slane %v576_v18, 1  ;;  %v614_v16 = vrot.slane %v577_v26, 1  ;;  %v4407_v18 = vld [vmem:[%s3993_s4 + $0xa8] sm:$0x3f] }
  0x52   : > { %v612_v28 = vsel %vm445_vm0, %v610_v53, %v611_v20  ;;  %v616_v43 = vrot.slane %v578_v54, 1  ;;  %v617_v60 = vrot.slane %v579_v48, 1  ;;  %v619_v36 = vrot.slane %v580_v4, 1 }
  0x53   : > { %v615_v55 = vsel %vm445_vm0, %v613_v57, %v614_v16  ;;  %v620_v34 = vrot.slane %v581_v27, 1  ;;  %v4380_v23 = vrot.slane %v7339_v3, %v7338_v5  ;;  %v4384_v37 = vrot.slane %v7326_v1, %v7341_v42  ;;  %v7343_v27 = vld [vmem:[#allocation23_spill] sm:$0xff] }
  0x54   : > { %v618_v22 = vsel %vm445_vm0, %v616_v43, %v617_v60  ;;  %v4388_v59 = vadd.f32 %v600_v21, %v4246_v10  ;;  %v4391_v20 = vadd.f32 %v603_v24, %v4249_v9  ;;  %v4394_v53 = vadd.f32 %v606_v39, %v4253_v8 }
  0x55   : > { %7340 = vst [vmem:[#allocation4_spill] sm:$0xff] %v4380_v23  ;;  %7342 = vst [vmem:[#allocation5_spill] sm:$0xff] %v4384_v37  ;;  %v621_v57 = vsel %vm445_vm0, %v619_v36, %v620_v34  ;;  %v4398_v44 = vadd.f32 %v609_v47, %v4256_v12  ;;  %v4401_v0 = vadd.f32 %v612_v28, %v4259_v13 }
  0x56   : > { %v4404_v1 = vadd.f32 %v615_v55, %v4262_v51  ;;  %v642_v24 = vmul.f32 %v4339_v61, %v4031_v29  ;;  %v643_v21 = vmul.f32 %v4339_v61, %v4179_v17  ;;  %v644_v10 = vmul.f32 %v4339_v61, %v4034_v30 }
  0x57   : > { %v645_v9 = vmul.f32 %v4339_v61, %v4182_v56  ;;  %v646_v8 = vmul.f32 %v4339_v61, %v4044_v35  ;;  %v647_v12 = vmul.f32 %v4339_v61, %v4193_v19  ;;  %v648_v13 = vmul.f32 %v4339_v61, %v4054_v40 }
  0x58   : > { %v649_v51 = vmul.f32 %v4339_v61, %v4196_v62  ;;  %v650_v47 = vmul.f32 %v4339_v61, %v4057_v41  ;;  %v651_v39 = vmul.f32 %v4339_v61, %v4207_v50  ;;  %v652_v26 = vmul.f32 %v4339_v61, %v4064_v46 }
  0x59   : > { %v653_v54 = vmul.f32 %v4339_v61, %v4271_v7  ;;  %v654_v48 = vmul.f32 %v4339_v61, %v7337_v49  ;;  %v655_v4 = vmul.f32 %v4339_v61, %v4354_v58  ;;  %v656_v2 = vmul.f32 %v4339_v61, %v7343_v27 }
  0x5a   : > { %v657_v45 = vmul.f32 %v4339_v61, %v4407_v18  ;;  %v674_v52 = vrot.slane %v642_v24, 1  ;;  %v675_v16 = vrot.slane %v643_v21, 1  ;;  %v677_v28 = vrot.slane %v644_v10, 1 }
  0x5b   : > { %v678_v43 = vrot.slane %v645_v9, 1  ;;  %v680_v60 = vrot.slane %v646_v8, 1  ;;  %v681_v36 = vrot.slane %v647_v12, 1  ;;  %v683_v55 = vrot.slane %v648_v13, 1 }
  0x5c   : > { %v684_v34 = vrot.slane %v649_v51, 1  ;;  %v676_v3 = vsel %vm445_vm0, %v674_v52, %v675_v16  ;;  %v686_v5 = vrot.slane %v650_v47, 1  ;;  %v687_v37 = vrot.slane %v651_v39, 1 }
  0x5d   : > { %v679_v42 = vsel %vm445_vm0, %v677_v28, %v678_v43  ;;  %v682_v17 = vsel %vm445_vm0, %v680_v60, %v681_v36  ;;  %v689_v23 = vrot.slane %v652_v26, 1  ;;  %v690_v61 = vrot.slane %v653_v54, 1 }
  0x5e   : > { %v685_v29 = vsel %vm445_vm0, %v683_v55, %v684_v34  ;;  %v688_v24 = vsel %vm445_vm0, %v686_v5, %v687_v37  ;;  %v692_v21 = vrot.slane %v654_v48, 1  ;;  %v693_v10 = vrot.slane %v655_v4, 1 }
  0x5f   : > { %v695_v9 = vrot.slane %v656_v2, 1  ;;  %v4447_v8 = vadd.f32 %v618_v22, %v4305_v63  ;;  %v4450_v12 = vadd.f32 %v621_v57, %v4309_v31  ;;  %v691_v13 = vsel %vm445_vm0, %v689_v23, %v690_v61  ;;  %v4474_v57 = vld [vmem:[%s3993_s4 + $0xb8] sm:$0x3f] }
  0x60   : > { %v696_v51 = vrot.slane %v657_v45, 1  ;;  %v694_v47 = vsel %vm445_vm0, %v692_v21, %v693_v10  ;;  %v4455_v39 = vadd.f32 %v676_v3, %v4313_v14  ;;  %v4458_v5 = vadd.f32 %v679_v42, %v4316_v25  ;;  %v7344_v45 = vld [vmem:[#allocation24_spill] sm:$0xff] }
  0x61   : > { %v4461_v37 = vadd.f32 %v682_v17, %v4320_v6  ;;  %v4465_v22 = vadd.f32 %v685_v29, %v4323_v11  ;;  %v4468_v31 = vadd.f32 %v688_v24, %v4326_v15  ;;  %v4471_v23 = vadd.f32 %v691_v13, %v4329_v32 }
  0x62   : > { %v697_v63 = vsel %vm445_vm0, %v695_v9, %v696_v51  ;;  %v718_v14 = vmul.f32 %v4343_v38, %v4034_v30  ;;  %v719_v17 = vmul.f32 %v4343_v38, %v4182_v56  ;;  %v720_v25 = vmul.f32 %v4343_v38, %v4044_v35 }
  0x63   : > { %v721_v29 = vmul.f32 %v4343_v38, %v4193_v19  ;;  %v722_v6 = vmul.f32 %v4343_v38, %v4054_v40  ;;  %v723_v11 = vmul.f32 %v4343_v38, %v4196_v62  ;;  %v724_v15 = vmul.f32 %v4343_v38, %v4057_v41 }
  0x64   : > { %v725_v32 = vmul.f32 %v4343_v38, %v4207_v50  ;;  %v726_v42 = vmul.f32 %v4343_v38, %v4064_v46  ;;  %v727_v26 = vmul.f32 %v4343_v38, %v4271_v7  ;;  %v728_v54 = vmul.f32 %v4343_v38, %v7337_v49 }
  0x65   : > { %v729_v48 = vmul.f32 %v4343_v38, %v4354_v58  ;;  %v730_v4 = vmul.f32 %v4343_v38, %v7343_v27  ;;  %v731_v2 = vmul.f32 %v4343_v38, %v4407_v18  ;;  %v732_v52 = vmul.f32 %v4343_v38, %v7344_v45 }
  0x66   : > { %v733_v16 = vmul.f32 %v4343_v38, %v4474_v57  ;;  %v750_v28 = vrot.slane %v718_v14, 1  ;;  %v751_v43 = vrot.slane %v719_v17, 1  ;;  %v753_v60 = vrot.slane %v720_v25, 1 }
  0x67   : > { %v754_v36 = vrot.slane %v721_v29, 1  ;;  %v756_v55 = vrot.slane %v722_v6, 1  ;;  %v757_v34 = vrot.slane %v723_v11, 1  ;;  %v759_v3 = vrot.slane %v724_v15, 1  ;;  %v7345_v11 = vld [vmem:[#allocation33_spill] sm:$0xff] }
  0x68   : > { %v760_v61 = vrot.slane %v725_v32, 1  ;;  %v752_v24 = vsel %vm445_vm0, %v750_v28, %v751_v43  ;;  %v762_v10 = vrot.slane %v726_v42, 1  ;;  %v763_v9 = vrot.slane %v727_v26, 1 }
  0x69   : > { %v755_v21 = vsel %vm445_vm0, %v753_v60, %v754_v36  ;;  %v758_v13 = vsel %vm445_vm0, %v756_v55, %v757_v34  ;;  %v765_v56 = vrot.slane %v728_v54, 1  ;;  %v766_v38 = vrot.slane %v729_v48, 1 }
  0x6a   : > { %v761_v51 = vsel %vm445_vm0, %v759_v3, %v760_v61  ;;  %v764_v14 = vsel %vm445_vm0, %v762_v10, %v763_v9  ;;  %v768_v17 = vrot.slane %v730_v4, 1  ;;  %v769_v25 = vrot.slane %v731_v2, 1  ;;  %v4541_v2 = vld [vmem:[%s3993_s4 + $0xc8] sm:$0x3f]  ;;  %v7348_v61 = vld [vmem:[#allocation25_spill] sm:$0xff] }
  0x6b   : > { %v771_v29 = vrot.slane %v732_v52, 1  ;;  %v4514_v6 = vadd.f32 %v694_v47, %v4331_v33  ;;  %v4517_v15 = vadd.f32 %v697_v63, %v7345_v11  ;;  %v767_v32 = vsel %vm445_vm0, %v765_v56, %v766_v38  ;;  %7346 = vst [vmem:[#allocation10_spill] sm:$0xff] %v4541_v2 }
  0x6c   : > { %v772_v42 = vrot.slane %v733_v16, 1  ;;  %v770_v26 = vsel %vm445_vm0, %v768_v17, %v769_v25  ;;  %v4522_v54 = vadd.f32 %v752_v24, %v4388_v59  ;;  %v4525_v48 = vadd.f32 %v755_v21, %v4391_v20  ;;  %v7347_v59 = vld [vmem:[#allocation34_spill] sm:$0xff] }
  0x6d   : > { %v4528_v4 = vadd.f32 %v758_v13, %v4394_v53  ;;  %v4532_v47 = vadd.f32 %v761_v51, %v4398_v44  ;;  %v4535_v63 = vadd.f32 %v764_v14, %v4401_v0  ;;  %v4538_v56 = vadd.f32 %v767_v32, %v4404_v1 }
  0x6e   : > { %v773_v33 = vsel %vm445_vm0, %v771_v29, %v772_v42  ;;  %v794_v20 = vmul.f32 %v7347_v59, %v4044_v35  ;;  %v795_v53 = vmul.f32 %v7347_v59, %v4193_v19  ;;  %v796_v52 = vmul.f32 %v7347_v59, %v4054_v40 }
  0x6f   : > { %v797_v44 = vmul.f32 %v7347_v59, %v4196_v62  ;;  %v798_v0 = vmul.f32 %v7347_v59, %v4057_v41  ;;  %v799_v1 = vmul.f32 %v7347_v59, %v4207_v50  ;;  %v800_v16 = vmul.f32 %v7347_v59, %v4064_v46 }
  0x70   : > { %v801_v28 = vmul.f32 %v7347_v59, %v4271_v7  ;;  %v802_v43 = vmul.f32 %v7347_v59, %v7337_v49  ;;  %v803_v60 = vmul.f32 %v7347_v59, %v4354_v58  ;;  %v804_v36 = vmul.f32 %v7347_v59, %v7343_v27 }
  0x71   : > { %v805_v55 = vmul.f32 %v7347_v59, %v4407_v18  ;;  %v806_v34 = vmul.f32 %v7347_v59, %v7344_v45  ;;  %v807_v3 = vmul.f32 %v7347_v59, %v4474_v57  ;;  %v808_v24 = vmul.f32 %v7347_v59, %v7348_v61 }
  0x72   : > { %v809_v21 = vmul.f32 %v7347_v59, %v4541_v2  ;;  %v826_v10 = vrot.slane %v794_v20, 1  ;;  %v827_v9 = vrot.slane %v795_v53, 1  ;;  %v829_v13 = vrot.slane %v796_v52, 1 }
  0x73   : > { %v830_v51 = vrot.slane %v797_v44, 1  ;;  %v832_v38 = vrot.slane %v798_v0, 1  ;;  %v833_v14 = vrot.slane %v799_v1, 1  ;;  %v835_v17 = vrot.slane %v800_v16, 1 }
  0x74   : > { %v836_v25 = vrot.slane %v801_v28, 1  ;;  %v828_v29 = vsel %vm445_vm0, %v826_v10, %v827_v9  ;;  %v838_v32 = vrot.slane %v802_v43, 1  ;;  %v839_v42 = vrot.slane %v803_v60, 1 }
  0x75   : > { %v831_v11 = vsel %vm445_vm0, %v829_v13, %v830_v51  ;;  %v834_v19 = vsel %vm445_vm0, %v832_v38, %v833_v14  ;;  %v841_v30 = vrot.slane %v804_v36, 1  ;;  %v842_v59 = vrot.slane %v805_v55, 1  ;;  %v7351_v13 = vld [vmem:[#allocation26_spill] sm:$0xff] }
  0x76   : > { %v837_v35 = vsel %vm445_vm0, %v835_v17, %v836_v25  ;;  %v840_v20 = vsel %vm445_vm0, %v838_v32, %v839_v42  ;;  %v844_v53 = vrot.slane %v806_v34, 1  ;;  %v845_v52 = vrot.slane %v807_v3, 1 }
  0x77   : > { %v847_v44 = vrot.slane %v808_v24, 1  ;;  %v4581_v0 = vadd.f32 %v770_v26, %v4447_v8  ;;  %v4584_v1 = vadd.f32 %v773_v33, %v4450_v12  ;;  %v843_v16 = vsel %vm445_vm0, %v841_v30, %v842_v59  ;;  %v4608_v33 = vld [vmem:[%s3993_s4 + $0xd8] sm:$0x3f] }
  0x78   : > { %v848_v28 = vrot.slane %v809_v21, 1  ;;  %v846_v43 = vsel %vm445_vm0, %v844_v53, %v845_v52  ;;  %v4589_v60 = vadd.f32 %v828_v29, %v4455_v39  ;;  %v4592_v36 = vadd.f32 %v831_v11, %v4458_v5  ;;  %7349 = vst [vmem:[#allocation11_spill] sm:$0xff] %v4608_v33  ;;  %v7350_v39 = vld [vmem:[#allocation3_spill] sm:$0xff] }
  0x79   : > { %v4595_v55 = vadd.f32 %v834_v19, %v4461_v37  ;;  %v4599_v26 = vadd.f32 %v837_v35, %v4465_v22  ;;  %v4602_v12 = vadd.f32 %v840_v20, %v4468_v31  ;;  %v4605_v30 = vadd.f32 %v843_v16, %v4471_v23 }
  0x7a   : > { %v849_v8 = vsel %vm445_vm0, %v847_v44, %v848_v28  ;;  %v870_v5 = vmul.f32 %v7350_v39, %v4054_v40  ;;  %v871_v19 = vmul.f32 %v7350_v39, %v4196_v62  ;;  %v872_v37 = vmul.f32 %v7350_v39, %v4057_v41 }
  0x7b   : > { %v873_v35 = vmul.f32 %v7350_v39, %v4207_v50  ;;  %v874_v22 = vmul.f32 %v7350_v39, %v4064_v46  ;;  %v875_v31 = vmul.f32 %v7350_v39, %v4271_v7  ;;  %v876_v23 = vmul.f32 %v7350_v39, %v7337_v49 }
  0x7c   : > { %v877_v34 = vmul.f32 %v7350_v39, %v4354_v58  ;;  %v878_v3 = vmul.f32 %v7350_v39, %v7343_v27  ;;  %v879_v24 = vmul.f32 %v7350_v39, %v4407_v18  ;;  %v880_v21 = vmul.f32 %v7350_v39, %v7344_v45 }
  0x7d   : > { %v881_v10 = vmul.f32 %v7350_v39, %v4474_v57  ;;  %v882_v9 = vmul.f32 %v7350_v39, %v7348_v61  ;;  %v883_v49 = vmul.f32 %v7350_v39, %v4541_v2  ;;  %v884_v51 = vmul.f32 %v7350_v39, %v7351_v13  ;;  %v7356_v13 = vld [vmem:[#allocation28_spill] sm:$0xff] }
  0x7e   : > { %v885_v27 = vmul.f32 %v7350_v39, %v4608_v33  ;;  %v902_v38 = vrot.slane %v870_v5, 1  ;;  %v903_v14 = vrot.slane %v871_v19, 1  ;;  %v905_v17 = vrot.slane %v872_v37, 1 }
  0x7f   : > { %v906_v25 = vrot.slane %v873_v35, 1  ;;  %v908_v45 = vrot.slane %v874_v22, 1  ;;  %v909_v29 = vrot.slane %v875_v31, 1  ;;  %v911_v11 = vrot.slane %v876_v23, 1 }
  0x80   : > { %v912_v32 = vrot.slane %v877_v34, 1  ;;  %v904_v42 = vsel %vm445_vm0, %v902_v38, %v903_v14  ;;  %v914_v59 = vrot.slane %v878_v3, 1  ;;  %v915_v20 = vrot.slane %v879_v24, 1 }
  0x81   : > { %v907_v61 = vsel %vm445_vm0, %v905_v17, %v906_v25  ;;  %v910_v53 = vsel %vm445_vm0, %v908_v45, %v909_v29  ;;  %v917_v44 = vrot.slane %v880_v21, 1  ;;  %v918_v16 = vrot.slane %v881_v10, 1  ;;  %v7352_v21 = vld [vmem:[#allocation16_spill] sm:$0xff]  ;;  %v7360_v17 = vld [vmem:[#allocation30_spill] sm:$0xff] }
  0x82   : > { %v913_v52 = vsel %vm445_vm0, %v911_v11, %v912_v32  ;;  %v916_v28 = vsel %vm445_vm0, %v914_v59, %v915_v20  ;;  %v920_v39 = vrot.slane %v882_v9, 1  ;;  %v921_v5 = vrot.slane %v883_v49, 1  ;;  %v7354_v9 = vld [vmem:[#allocation27_spill] sm:$0xff]  ;;  %v7355_v49 = vld [vmem:[#allocation17_spill] sm:$0xff]  ;;  %v7361_v45 = vld [vmem:[#allocation20_spill] sm:$0xff] }
  0x83   : > { %v923_v19 = vrot.slane %v884_v51, 1  ;;  %v4648_v37 = vadd.f32 %v846_v43, %v4514_v6  ;;  %v4651_v35 = vadd.f32 %v849_v8, %v4517_v15  ;;  %v919_v22 = vsel %vm445_vm0, %v917_v44, %v918_v16  ;;  %v7362_v11 = vld [vmem:[#allocation31_spill] sm:$0xff]  ;;  %v7364_v59 = vld [vmem:[#allocation32_spill] sm:$0xff] }
  0x84   : > { %v924_v31 = vrot.slane %v885_v27, 1  ;;  %v922_v23 = vsel %vm445_vm0, %v920_v39, %v921_v5  ;;  %v4656_v34 = vadd.f32 %v904_v42, %v4522_v54  ;;  %v4659_v3 = vadd.f32 %v907_v61, %v4525_v48  ;;  %v7353_v54 = vld [vmem:[#allocation4_spill] sm:$0xff]  ;;  %v7363_v42 = vld [vmem:[#allocation21_spill] sm:$0xff] }
  0x85   : > { %v4662_v24 = vadd.f32 %v910_v53, %v4528_v4  ;;  %v4666_v43 = vadd.f32 %v913_v52, %v4532_v47  ;;  %v4669_v15 = vadd.f32 %v916_v28, %v4535_v63  ;;  %v4672_v8 = vadd.f32 %v919_v22, %v4538_v56  ;;  %v7357_v47 = vld [vmem:[#allocation18_spill] sm:$0xff]  ;;  %v7358_v63 = vld [vmem:[#allocation29_spill] sm:$0xff]  ;;  %v7359_v56 = vld [vmem:[#allocation19_spill] sm:$0xff] }
  0x86   : > { %v925_v6 = vsel %vm445_vm0, %v923_v19, %v924_v31  ;;  %v946_v10 = vmul.f32 %v7353_v54, %v7352_v21  ;;  %v947_v48 = vmul.f32 %v7353_v54, %v7354_v9  ;;  %v948_v4 = vmul.f32 %v7353_v54, %v7355_v49 }
  0x87   : > { %v949_v51 = vmul.f32 %v7353_v54, %v7356_v13  ;;  %v950_v27 = vmul.f32 %v7353_v54, %v7357_v47  ;;  %v951_v38 = vmul.f32 %v7353_v54, %v7358_v63  ;;  %v952_v14 = vmul.f32 %v7353_v54, %v7359_v56 }
  0x88   : > { %v953_v25 = vmul.f32 %v7353_v54, %v7360_v17  ;;  %v954_v29 = vmul.f32 %v7353_v54, %v7361_v45  ;;  %v955_v32 = vmul.f32 %v7353_v54, %v7362_v11  ;;  %v956_v61 = vmul.f32 %v7353_v54, %v7363_v42 }
  0x89   : > { %v957_v20 = vmul.f32 %v7353_v54, %v7364_v59  ;;  %v958_v53 = vmul.f32 %v7353_v54, %v4054_v40  ;;  %v959_v52 = vmul.f32 %v7353_v54, %v4196_v62  ;;  %v960_v44 = vmul.f32 %v7353_v54, %v4057_v41 }
  0x8a   : > { %v961_v16 = vmul.f32 %v7353_v54, %v4207_v50  ;;  %v979_v28 = vrot.slane %v946_v10, 2  ;;  %v980_v39 = vrot.slane %v947_v48, 2  ;;  %v982_v5 = vrot.slane %v948_v4, 2 }
  0x8b   : > { %v983_v19 = vrot.slane %v949_v51, 2  ;;  %v985_v22 = vrot.slane %v950_v27, 2  ;;  %v986_v31 = vrot.slane %v951_v38, 2  ;;  %v988_v21 = vrot.slane %v952_v14, 2 }
  0x8c   : > { %v989_v9 = vrot.slane %v953_v25, 2  ;;  %v981_v49 = vsel %vm978_vm1, %v979_v28, %v980_v39  ;;  %v991_v56 = vrot.slane %v954_v29, 2  ;;  %v992_v45 = vrot.slane %v955_v32, 2  ;;  %v4767_v28 = vld [vmem:[%s3993_s4 + $0x50] sm:$0xff] }
  0x8d   : > { %v984_v47 = vsel %vm978_vm1, %v982_v5, %v983_v19  ;;  %v987_v42 = vsel %vm978_vm1, %v985_v22, %v986_v31  ;;  %v994_v2 = vrot.slane %v956_v61, 2  ;;  %v995_v54 = vrot.slane %v957_v20, 2  ;;  %7369 = vst [vmem:[#allocation24_spill] sm:$0xff] %v4767_v28 }
  0x8e   : > { %v990_v33 = vsel %vm978_vm1, %v988_v21, %v989_v9  ;;  %v993_v10 = vsel %vm978_vm1, %v991_v56, %v992_v45  ;;  %v997_v48 = vrot.slane %v958_v53, 2  ;;  %v998_v4 = vrot.slane %v959_v52, 2  ;;  %v4746_v53 = vld [vmem:[%s3993_s4 + $0x20] sm:$0xff] }
  0x8f   : > { %v1000_v51 = vrot.slane %v960_v44, 2  ;;  %v4712_v27 = vadd.f32 %v922_v23, %v4581_v0  ;;  %v4715_v38 = vadd.f32 %v925_v6, %v4584_v1  ;;  %v996_v14 = vsel %vm978_vm1, %v994_v2, %v995_v54  ;;  %v7366_v6 = vld [vmem:[#allocation5_spill] sm:$0xff]  ;;  %7367 = vst [vmem:[#allocation2_spill] sm:$0xff] %v4746_v53  ;;  %v4760_v44 = vld [vmem:[%s3993_s4 + $0x40] sm:$0xff] }
  0x90   : > { %v1001_v25 = vrot.slane %v961_v16, 2  ;;  %v999_v29 = vsel %vm978_vm1, %v997_v48, %v998_v4  ;;  %v4720_v32 = vadd.f32 %v981_v49, %v4589_v60  ;;  %v4723_v61 = vadd.f32 %v984_v47, %v4592_v36  ;;  %v4739_v60 = vld [vmem:[%s3993_s4 + $0x10] sm:$0xff]  ;;  %7368 = vst [vmem:[#allocation23_spill] sm:$0xff] %v4760_v44 }
  0x91   : > { %v4726_v20 = vadd.f32 %v987_v42, %v4595_v55  ;;  %v4730_v1 = vadd.f32 %v990_v33, %v4599_v26  ;;  %v4733_v2 = vadd.f32 %v993_v10, %v4602_v12  ;;  %v4736_v23 = vadd.f32 %v996_v14, %v4605_v30  ;;  %7365 = vst [vmem:[#allocation22_spill] sm:$0xff] %v4739_v60  ;;  %v4753_v33 = vld [vmem:[%s3993_s4 + $0x30] sm:$0xff] }
  0x92   : > { %v1002_v0 = vsel %vm978_vm1, %v1000_v51, %v1001_v25  ;;  %v1023_v36 = vmul.f32 %v4739_v60, %v7366_v6  ;;  %v1024_v55 = vmul.f32 %v7366_v6, %v7356_v13  ;;  %v1025_v26 = vmul.f32 %v4746_v53, %v7366_v6 }
  0x93   : > { %v1026_v12 = vmul.f32 %v7366_v6, %v7358_v63  ;;  %v1027_v30 = vmul.f32 %v4753_v33, %v7366_v6  ;;  %v1028_v52 = vmul.f32 %v7366_v6, %v7360_v17  ;;  %v1029_v13 = vmul.f32 %v4760_v44, %v7366_v6 }
  0x94   : > { %v1030_v16 = vmul.f32 %v7366_v6, %v7362_v11  ;;  %v1031_v39 = vmul.f32 %v4767_v28, %v7366_v6  ;;  %v1032_v5 = vmul.f32 %v7366_v6, %v7364_v59  ;;  %v1033_v19 = vmul.f32 %v7366_v6, %v4054_v40 }
  0x95   : > { %v1034_v22 = vmul.f32 %v7366_v6, %v4196_v62  ;;  %v1035_v31 = vmul.f32 %v7366_v6, %v4057_v41  ;;  %v1036_v21 = vmul.f32 %v7366_v6, %v4207_v50  ;;  %v1037_v9 = vmul.f32 %v7366_v6, %v4064_v46 }
  0x96   : > { %v1038_v49 = vmul.f32 %v7366_v6, %v4271_v7  ;;  %v1055_v47 = vrot.slane %v1023_v36, 2  ;;  %v1056_v56 = vrot.slane %v1024_v55, 2  ;;  %v1058_v45 = vrot.slane %v1025_v26, 2 }
  0x97   : > { %v1059_v42 = vrot.slane %v1026_v12, 2  ;;  %v1061_v40 = vrot.slane %v1027_v30, 2  ;;  %v1062_v54 = vrot.slane %v1028_v52, 2  ;;  %v1064_v10 = vrot.slane %v1029_v13, 2 }
  0x98   : > { %v1065_v48 = vrot.slane %v1030_v16, 2  ;;  %v1057_v4 = vsel %vm978_vm1, %v1055_v47, %v1056_v56  ;;  %v1067_v51 = vrot.slane %v1031_v39, 2  ;;  %v1068_v14 = vrot.slane %v1032_v5, 2 }
  0x99   : > { %v1060_v41 = vsel %vm978_vm1, %v1058_v45, %v1059_v42  ;;  %v1063_v25 = vsel %vm978_vm1, %v1061_v40, %v1062_v54  ;;  %v1070_v60 = vrot.slane %v1033_v19, 2  ;;  %v1071_v6 = vrot.slane %v1034_v22, 2  ;;  %v4843_v45 = vld [vmem:[%s3993_s4 + $0x60] sm:$0xff] }
  0x9a   : > { %v1066_v46 = vsel %vm978_vm1, %v1064_v10, %v1065_v48  ;;  %v1069_v36 = vsel %vm978_vm1, %v1067_v51, %v1068_v14  ;;  %v1073_v55 = vrot.slane %v1035_v31, 2  ;;  %v1074_v26 = vrot.slane %v1036_v21, 2  ;;  %v4853_v48 = vld [vmem:[%s3993_s4 + $0x80] sm:$0xff]  ;;  %v4858_v51 = vld [vmem:[%s3993_s4 + $0x90] sm:$0xff] }
  0x9b   : > { %v1076_v12 = vrot.slane %v1037_v9, 2  ;;  %v4791_v30 = vadd.f32 %v999_v29, %v4648_v37  ;;  %v4794_v52 = vadd.f32 %v1002_v0, %v4651_v35  ;;  %v1072_v13 = vsel %vm978_vm1, %v1070_v60, %v1071_v6  ;;  %v7371_v0 = vld [vmem:[#allocation6_spill] sm:$0xff]  ;;  %7374 = vst [vmem:[#allocation25_spill] sm:$0xff] %v4858_v51 }
  0x9c   : > { %v1077_v16 = vrot.slane %v1038_v49, 2  ;;  %v1075_v39 = vsel %vm978_vm1, %v1073_v55, %v1074_v26  ;;  %v4799_v5 = vadd.f32 %v1057_v4, %v4656_v34  ;;  %v4802_v19 = vadd.f32 %v1060_v41, %v4659_v3  ;;  %v4817_v34 = vld [vmem:[%s7129_s1 + $0x10] sm:$0xff] }
  0x9d   : > { %v4805_v22 = vadd.f32 %v1063_v25, %v4662_v24  ;;  %v4809_v29 = vadd.f32 %v1066_v46, %v4666_v43  ;;  %v4812_v35 = vadd.f32 %v1069_v36, %v4669_v15  ;;  %7370 = vst [vmem:[#allocation33_spill] sm:$0xff] %v4817_v34  ;;  %v1098_v3 = vrot.slane %v4817_v34, %v7371_v0  ;;  %v7373_v15 = vld [vmem:[#allocation7_spill] sm:$0xff] }
  0x9e   : > { %v1078_v37 = vsel %vm978_vm1, %v1076_v12, %v1077_v16  ;;  %v4822_v24 = vadd.f32 %v1072_v13, %v4672_v8  ;;  %v4825_v60 = vadd.f32 %v1075_v39, %v4712_v27  ;;  %v4832_v31 = vrot.slane %v4817_v34, %v7373_v15 }
  0x9f   : > { %v4828_v43 = vadd.f32 %v1078_v37, %v4715_v38  ;;  %v1099_v21 = vmul.f32 %v4746_v53, %v1098_v3  ;;  %v1100_v9 = vmul.f32 %v1098_v3, %v7358_v63  ;;  %v1101_v49 = vmul.f32 %v4753_v33, %v1098_v3  ;;  %v4848_v63 = vld [vmem:[%s3993_s4 + $0x70] sm:$0xff] }
  0xa0   : > { %v1102_v8 = vmul.f32 %v1098_v3, %v7360_v17  ;;  %v1103_v27 = vmul.f32 %v4760_v44, %v1098_v3  ;;  %v1104_v47 = vmul.f32 %v1098_v3, %v7362_v11  ;;  %v1105_v38 = vmul.f32 %v4767_v28, %v1098_v3 }
  0xa1   : > { %7372 = vst [vmem:[#allocation34_spill] sm:$0xff] %v4828_v43  ;;  %v1106_v56 = vmul.f32 %v1098_v3, %v7364_v59  ;;  %v1107_v42 = vmul.f32 %v4843_v45, %v1098_v3  ;;  %v1108_v40 = vmul.f32 %v1098_v3, %v4196_v62  ;;  %v1109_v54 = vmul.f32 %v4848_v63, %v1098_v3 }
  0xa2   : > { %v1110_v10 = vmul.f32 %v1098_v3, %v4207_v50  ;;  %v1111_v4 = vmul.f32 %v4853_v48, %v1098_v3  ;;  %v1112_v41 = vmul.f32 %v1098_v3, %v4271_v7  ;;  %v1113_v14 = vmul.f32 %v4858_v51, %v1098_v3 }
  0xa3   : > { %v1114_v25 = vmul.f32 %v1098_v3, %v4354_v58  ;;  %v1131_v46 = vrot.slane %v1099_v21, 2  ;;  %v1132_v6 = vrot.slane %v1100_v9, 2  ;;  %v1134_v36 = vrot.slane %v1101_v49, 2 }
  0xa4   : > { %v1135_v55 = vrot.slane %v1102_v8, 2  ;;  %v1137_v26 = vrot.slane %v1103_v27, 2  ;;  %v1138_v12 = vrot.slane %v1104_v47, 2  ;;  %v1140_v13 = vrot.slane %v1105_v38, 2  ;;  %v4871_v38 = vld [vmem:[%s7129_s1 + $0x18] sm:$0xff] }
  0xa5   : > { %v1141_v16 = vrot.slane %v1106_v56, 2  ;;  %v1133_v39 = vsel %vm978_vm1, %v1131_v46, %v1132_v6  ;;  %v1143_v15 = vrot.slane %v1107_v42, 2  ;;  %v1144_v0 = vrot.slane %v1108_v40, 2  ;;  %7375 = vst [vmem:[#allocation3_spill] sm:$0xff] %v4871_v38  ;;  %v7376_v56 = vld [vmem:[#allocation8_spill] sm:$0xff]  ;;  %v4880_v40 = vld [vmem:[%s7129_s1 + $0x20] sm:$0xff] }
  0xa6   : > { %v1136_v37 = vsel %vm978_vm1, %v1134_v36, %v1135_v55  ;;  %v1139_v34 = vsel %vm978_vm1, %v1137_v26, %v1138_v12  ;;  %v1146_v43 = vrot.slane %v1109_v54, 2  ;;  %v1147_v3 = vrot.slane %v1110_v10, 2  ;;  %7377 = vst [vmem:[#allocation26_spill] sm:$0xff] %v4880_v40  ;;  %v4935_v26 = vld [vmem:[%s3993_s4 + $0xa0] sm:$0xff] }
  0xa7   : > { %v1142_v53 = vsel %vm978_vm1, %v1140_v13, %v1141_v16  ;;  %v1145_v21 = vsel %vm978_vm1, %v1143_v15, %v1144_v0  ;;  %v1149_v9 = vrot.slane %v1111_v4, 2  ;;  %v1150_v49 = vrot.slane %v1112_v41, 2  ;;  %v7378_v0 = vld [vmem:[#allocation9_spill] sm:$0xff]  ;;  %7379 = vst [vmem:[#allocation16_spill] sm:$0xff] %v4935_v26 }
  0xa8   : > { %v1152_v8 = vrot.slane %v1113_v14, 2  ;;  %v1148_v27 = vsel %vm978_vm1, %v1146_v43, %v1147_v3  ;;  %v1153_v47 = vrot.slane %v1114_v25, 2  ;;  %v4875_v42 = vrot.slane %v4871_v38, %v7376_v56 }
  0xa9   : > { %v4884_v15 = vrot.slane %v4880_v40, %v7378_v0  ;;  %v1151_v43 = vsel %vm978_vm1, %v1149_v9, %v1150_v49  ;;  %v4888_v54 = vadd.f32 %v1133_v39, %v4720_v32  ;;  %v4891_v10 = vadd.f32 %v1136_v37, %v4723_v61 }
  0xaa   : > { %v4894_v4 = vadd.f32 %v1139_v34, %v4726_v20  ;;  %v1154_v41 = vsel %vm978_vm1, %v1152_v8, %v1153_v47  ;;  %v4898_v14 = vadd.f32 %v1142_v53, %v4730_v1  ;;  %v4901_v25 = vadd.f32 %v1145_v21, %v4733_v2 }
  0xab   : > { %v4904_v46 = vadd.f32 %v1148_v27, %v4736_v23  ;;  %v1175_v32 = vmul.f32 %v4753_v33, %v4832_v31  ;;  %v1176_v61 = vmul.f32 %v4832_v31, %v7360_v17  ;;  %v1177_v20 = vmul.f32 %v4760_v44, %v4832_v31 }
  0xac   : > { %v1178_v1 = vmul.f32 %v4832_v31, %v7362_v11  ;;  %v1179_v2 = vmul.f32 %v4767_v28, %v4832_v31  ;;  %v1180_v53 = vmul.f32 %v4832_v31, %v7364_v59  ;;  %v1181_v23 = vmul.f32 %v4843_v45, %v4832_v31 }
  0xad   : > { %v1182_v34 = vmul.f32 %v4832_v31, %v4196_v62  ;;  %v1183_v17 = vmul.f32 %v4848_v63, %v4832_v31  ;;  %v1184_v6 = vmul.f32 %v4832_v31, %v4207_v50  ;;  %v1185_v11 = vmul.f32 %v4853_v48, %v4832_v31 }
  0xae   : > { %v1186_v36 = vmul.f32 %v4832_v31, %v4271_v7  ;;  %v1187_v59 = vmul.f32 %v4858_v51, %v4832_v31  ;;  %v1188_v55 = vmul.f32 %v4832_v31, %v4354_v58  ;;  %v1189_v62 = vmul.f32 %v4935_v26, %v4832_v31 }
  0xaf   : > { %v1190_v50 = vmul.f32 %v4832_v31, %v4407_v18  ;;  %v1207_v12 = vrot.slane %v1175_v32, 2  ;;  %v1208_v13 = vrot.slane %v1176_v61, 2  ;;  %v1210_v16 = vrot.slane %v1177_v20, 2 }
  0xb0   : > { %v1211_v39 = vrot.slane %v1178_v1, 2  ;;  %v1213_v37 = vrot.slane %v1179_v2, 2  ;;  %v1214_v3 = vrot.slane %v1180_v53, 2  ;;  %v1216_v21 = vrot.slane %v1181_v23, 2 }
  0xb1   : > { %v1217_v9 = vrot.slane %v1182_v34, 2  ;;  %v1209_v49 = vsel %vm978_vm1, %v1207_v12, %v1208_v13  ;;  %v1219_v27 = vrot.slane %v1183_v17, 2  ;;  %v1220_v47 = vrot.slane %v1184_v6, 2 }
  0xb2   : > { %v1212_v8 = vsel %vm978_vm1, %v1210_v16, %v1211_v39  ;;  %v1215_v0 = vsel %vm978_vm1, %v1213_v37, %v1214_v3  ;;  %v1222_v56 = vrot.slane %v1185_v11, 2  ;;  %v1223_v31 = vrot.slane %v1186_v36, 2  ;;  %v5014_v3 = vld [vmem:[%s3993_s4 + $0xb0] sm:$0xff] }
  0xb3   : > { %v1218_v40 = vsel %vm978_vm1, %v1216_v21, %v1217_v9  ;;  %v1221_v32 = vsel %vm978_vm1, %v1219_v27, %v1220_v47  ;;  %v1225_v61 = vrot.slane %v1187_v59, 2  ;;  %v1226_v20 = vrot.slane %v1188_v55, 2  ;;  %v4997_v55 = vld [vmem:[%s3993_s4 + $0x78] sm:$0x3f]  ;;  %7382 = vst [vmem:[#allocation17_spill] sm:$0xff] %v5014_v3 }
  0xb4   : > { %v1228_v1 = vrot.slane %v1189_v62, 2  ;;  %v4947_v2 = vadd.f32 %v1151_v43, %v4791_v30  ;;  %v4950_v53 = vadd.f32 %v1154_v41, %v4794_v52  ;;  %v1224_v23 = vsel %vm978_vm1, %v1222_v56, %v1223_v31 }
  0xb5   : > { %v1229_v34 = vrot.slane %v1190_v50, 2  ;;  %v1227_v17 = vsel %vm978_vm1, %v1225_v61, %v1226_v20  ;;  %v4955_v6 = vadd.f32 %v1209_v49, %v4799_v5  ;;  %v4958_v11 = vadd.f32 %v1212_v8, %v4802_v19  ;;  %v4976_v19 = vld [vmem:[%s3993_s4 + $0x48] sm:$0x3f] }
  0xb6   : > { %v4961_v30 = vadd.f32 %v1215_v0, %v4805_v22  ;;  %v4965_v52 = vadd.f32 %v1218_v40, %v4809_v29  ;;  %v4968_v56 = vadd.f32 %v1221_v32, %v4812_v35  ;;  %v4971_v41 = vadd.f32 %v1224_v23, %v4822_v24  ;;  %7380 = vst [vmem:[#allocation4_spill] sm:$0xff] %v4976_v19  ;;  %v4983_v29 = vld [vmem:[%s3993_s4 + $0x58] sm:$0x3f]  ;;  %v4990_v40 = vld [vmem:[%s3993_s4 + $0x68] sm:$0x3f] }
  0xb7   : > { %v1230_v43 = vsel %vm978_vm1, %v1228_v1, %v1229_v34  ;;  %v1251_v5 = vmul.f32 %v4760_v44, %v4875_v42  ;;  %v1252_v22 = vmul.f32 %v4976_v19, %v4875_v42  ;;  %v1253_v0 = vmul.f32 %v4767_v28, %v4875_v42  ;;  %7381 = vst [vmem:[#allocation27_spill] sm:$0xff] %v4983_v29 }
  0xb8   : > { %v1254_v35 = vmul.f32 %v4983_v29, %v4875_v42  ;;  %v1255_v24 = vmul.f32 %v4843_v45, %v4875_v42  ;;  %v1256_v36 = vmul.f32 %v4990_v40, %v4875_v42  ;;  %v1257_v59 = vmul.f32 %v4848_v63, %v4875_v42 }
  0xb9   : > { %v1258_v62 = vmul.f32 %v4997_v55, %v4875_v42  ;;  %v1259_v50 = vmul.f32 %v4853_v48, %v4875_v42  ;;  %v1260_v12 = vmul.f32 %v4875_v42, %v4271_v7  ;;  %v1261_v13 = vmul.f32 %v4858_v51, %v4875_v42 }
  0xba   : > { %v1262_v16 = vmul.f32 %v4875_v42, %v4354_v58  ;;  %v1263_v39 = vmul.f32 %v4935_v26, %v4875_v42  ;;  %v1264_v37 = vmul.f32 %v4875_v42, %v4407_v18  ;;  %v1265_v21 = vmul.f32 %v5014_v3, %v4875_v42 }
  0xbb   : > { %v1266_v7 = vmul.f32 %v4875_v42, %v4474_v57  ;;  %v1283_v9 = vrot.slane %v1251_v5, 2  ;;  %v1284_v49 = vrot.slane %v1252_v22, 2  ;;  %v1286_v8 = vrot.slane %v1253_v0, 2 }
  0xbc   : > { %v1287_v27 = vrot.slane %v1254_v35, 2  ;;  %v1289_v47 = vrot.slane %v1255_v24, 2  ;;  %v1290_v31 = vrot.slane %v1256_v36, 2  ;;  %v1292_v32 = vrot.slane %v1257_v59, 2  ;;  %v7383_v36 = vld [vmem:[#allocation34_spill] sm:$0xff] }
  0xbd   : > { %v1293_v61 = vrot.slane %v1258_v62, 2  ;;  %v1285_v20 = vsel %vm978_vm1, %v1283_v9, %v1284_v49  ;;  %v1295_v23 = vrot.slane %v1259_v50, 2  ;;  %v1296_v34 = vrot.slane %v1260_v12, 2 }
  0xbe   : > { %v1288_v1 = vsel %vm978_vm1, %v1286_v8, %v1287_v27  ;;  %v1291_v38 = vsel %vm978_vm1, %v1289_v47, %v1290_v31  ;;  %v1298_v44 = vrot.slane %v1261_v13, 2  ;;  %v1299_v42 = vrot.slane %v1262_v16, 2  ;;  %v5084_v47 = vld [vmem:[%s3993_s4 + $0xc0] sm:$0xff] }
  0xbf   : > { %v1294_v19 = vsel %vm978_vm1, %v1292_v32, %v1293_v61  ;;  %v1297_v5 = vsel %vm978_vm1, %v1295_v23, %v1296_v34  ;;  %v1301_v22 = vrot.slane %v1263_v39, 2  ;;  %v1302_v0 = vrot.slane %v1264_v37, 2  ;;  %7384 = vst [vmem:[#allocation28_spill] sm:$0xff] %v5084_v47  ;;  %v7385_v32 = vld [vmem:[#allocation10_spill] sm:$0xff] }
  0xc0   : > { %v1304_v35 = vrot.slane %v1265_v21, 2  ;;  %v5026_v24 = vadd.f32 %v1227_v17, %v4825_v60  ;;  %v5029_v59 = vadd.f32 %v1230_v43, %v7383_v36  ;;  %v1300_v62 = vsel %vm978_vm1, %v1298_v44, %v1299_v42 }
  0xc1   : > { %v1305_v50 = vrot.slane %v1266_v7, 2  ;;  %v1303_v12 = vsel %vm978_vm1, %v1301_v22, %v1302_v0  ;;  %v5034_v13 = vadd.f32 %v1285_v20, %v4888_v54  ;;  %v5037_v16 = vadd.f32 %v1288_v1, %v4891_v10 }
  0xc2   : > { %v5040_v39 = vadd.f32 %v1291_v38, %v4894_v4  ;;  %v5044_v17 = vadd.f32 %v1294_v19, %v4898_v14  ;;  %v5047_v44 = vadd.f32 %v1297_v5, %v4901_v25  ;;  %v5050_v43 = vadd.f32 %v1300_v62, %v4904_v46  ;;  %v5067_v19 = vld [vmem:[%s3993_s4 + $0x88] sm:$0x3f] }
  0xc3   : > { %v1306_v60 = vsel %vm978_vm1, %v1304_v35, %v1305_v50  ;;  %v1327_v54 = vmul.f32 %v4767_v28, %v4884_v15  ;;  %v1328_v10 = vmul.f32 %v4983_v29, %v4884_v15  ;;  %v1329_v38 = vmul.f32 %v4843_v45, %v4884_v15 }
  0xc4   : > { %v1330_v4 = vmul.f32 %v4990_v40, %v4884_v15  ;;  %v1331_v14 = vmul.f32 %v4848_v63, %v4884_v15  ;;  %v1332_v25 = vmul.f32 %v4997_v55, %v4884_v15  ;;  %v1333_v46 = vmul.f32 %v4853_v48, %v4884_v15 }
  0xc5   : > { %v1334_v37 = vmul.f32 %v5067_v19, %v4884_v15  ;;  %v1335_v21 = vmul.f32 %v4858_v51, %v4884_v15  ;;  %v1336_v7 = vmul.f32 %v4884_v15, %v4354_v58  ;;  %v1337_v9 = vmul.f32 %v4935_v26, %v4884_v15 }
  0xc6   : > { %v1338_v49 = vmul.f32 %v4884_v15, %v4407_v18  ;;  %v1339_v8 = vmul.f32 %v5014_v3, %v4884_v15  ;;  %v1340_v27 = vmul.f32 %v4884_v15, %v4474_v57  ;;  %v1341_v31 = vmul.f32 %v5084_v47, %v4884_v15 }
  0xc7   : > { %v1342_v58 = vmul.f32 %v4884_v15, %v7385_v32  ;;  %v1359_v61 = vrot.slane %v1327_v54, 2  ;;  %v1360_v20 = vrot.slane %v1328_v10, 2  ;;  %v1362_v1 = vrot.slane %v1329_v38, 2 }
  0xc8   : > { %v1363_v23 = vrot.slane %v1330_v4, 2  ;;  %v1365_v34 = vrot.slane %v1331_v14, 2  ;;  %v1366_v42 = vrot.slane %v1332_v25, 2  ;;  %v1368_v5 = vrot.slane %v1333_v46, 2 }
  0xc9   : > { %v1369_v22 = vrot.slane %v1334_v37, 2  ;;  %v1361_v0 = vsel %vm978_vm1, %v1359_v61, %v1360_v20  ;;  %v1371_v36 = vrot.slane %v1335_v21, 2  ;;  %v1372_v62 = vrot.slane %v1336_v7, 2  ;;  %v5152_v20 = vld [vmem:[%s3993_s4 + $0x98] sm:$0x3f] }
  0xca   : > { %v1364_v35 = vsel %vm978_vm1, %v1362_v1, %v1363_v23  ;;  %v1367_v50 = vsel %vm978_vm1, %v1365_v34, %v1366_v42  ;;  %v1374_v28 = vrot.slane %v1337_v9, 2  ;;  %v1375_v15 = vrot.slane %v1338_v49, 2  ;;  %7390 = vst [vmem:[#allocation19_spill] sm:$0xff] %v5152_v20 }
  0xcb   : > { %v1370_v29 = vsel %vm978_vm1, %v1368_v5, %v1369_v22  ;;  %v1373_v54 = vsel %vm978_vm1, %v1371_v36, %v1372_v62  ;;  %v1377_v10 = vrot.slane %v1339_v8, 2  ;;  %v1378_v38 = vrot.slane %v1340_v27, 2  ;;  %v7392_v62 = vld [vmem:[#allocation11_spill] sm:$0xff] }
  0xcc   : > { %v1380_v4 = vrot.slane %v1341_v31, 2  ;;  %v5096_v14 = vadd.f32 %v1303_v12, %v4947_v2  ;;  %v5099_v25 = vadd.f32 %v1306_v60, %v4950_v53  ;;  %v1376_v46 = vsel %vm978_vm1, %v1374_v28, %v1375_v15  ;;  %v5122_v53 = vld [vmem:[%s7129_s1 + $0x28] sm:$0xff] }
  0xcd   : > { %v1381_v37 = vrot.slane %v1342_v58, 2  ;;  %v1379_v21 = vsel %vm978_vm1, %v1377_v10, %v1378_v38  ;;  %v5104_v7 = vadd.f32 %v1361_v0, %v4955_v6  ;;  %v5107_v9 = vadd.f32 %v1364_v35, %v4958_v11  ;;  %7386 = vst [vmem:[#allocation18_spill] sm:$0xff] %v5122_v53  ;;  %v7387_v6 = vld [vmem:[#allocation12_spill] sm:$0xff] }
  0xce   : > { %v5110_v49 = vadd.f32 %v1367_v50, %v4961_v30  ;;  %v5114_v12 = vadd.f32 %v1370_v29, %v4965_v52  ;;  %v5117_v28 = vadd.f32 %v1373_v54, %v4968_v56  ;;  %v1402_v11 = vrot.slane %v5122_v53, %v7387_v6  ;;  %v5138_v56 = vld [vmem:[%s7129_s1] sm:$0xff]  ;;  %v7389_v29 = vld [vmem:[#allocation13_spill] sm:$0xff]  ;;  %v5162_v35 = vld [vmem:[%s3993_s4 + $0xd0] sm:$0xff] }
  0xcf   : > { %v1382_v2 = vsel %vm978_vm1, %v1380_v4, %v1381_v37  ;;  %v5127_v30 = vadd.f32 %v1376_v46, %v4971_v41  ;;  %v5130_v60 = vadd.f32 %v1379_v21, %v5026_v24  ;;  %7388 = vst [vmem:[#allocation29_spill] sm:$0xff] %v5138_v56  ;;  %v5142_v8 = vrot.slane %v5138_v56, %v7389_v29 }
  0xd0   : > { %v5133_v52 = vadd.f32 %v1382_v2, %v5029_v59  ;;  %v1403_v27 = vmul.f32 %v4843_v45, %v1402_v11  ;;  %v1404_v41 = vmul.f32 %v4990_v40, %v1402_v11  ;;  %v1405_v24 = vmul.f32 %v4848_v63, %v1402_v11  ;;  %7391 = vst [vmem:[#allocation30_spill] sm:$0xff] %v5162_v35 }
  0xd1   : > { %v1406_v31 = vmul.f32 %v4997_v55, %v1402_v11  ;;  %v1407_v59 = vmul.f32 %v4853_v48, %v1402_v11  ;;  %v1408_v58 = vmul.f32 %v5067_v19, %v1402_v11  ;;  %v1409_v61 = vmul.f32 %v4858_v51, %v1402_v11 }
  0xd2   : > { %v1410_v1 = vmul.f32 %v5152_v20, %v1402_v11  ;;  %v1411_v23 = vmul.f32 %v4935_v26, %v1402_v11  ;;  %v1412_v34 = vmul.f32 %v1402_v11, %v4407_v18  ;;  %v1413_v42 = vmul.f32 %v5014_v3, %v1402_v11 }
  0xd3   : > { %v1414_v5 = vmul.f32 %v1402_v11, %v4474_v57  ;;  %v1415_v22 = vmul.f32 %v5084_v47, %v1402_v11  ;;  %v1416_v0 = vmul.f32 %v1402_v11, %v7385_v32  ;;  %v1417_v36 = vmul.f32 %v5162_v35, %v1402_v11 }
  0xd4   : > { %v1418_v50 = vmul.f32 %v1402_v11, %v7392_v62  ;;  %v1435_v15 = vrot.slane %v1403_v27, 2  ;;  %v1436_v54 = vrot.slane %v1404_v41, 2  ;;  %v1438_v10 = vrot.slane %v1405_v24, 2 }
  0xd5   : > { %v1439_v38 = vrot.slane %v1406_v31, 2  ;;  %v1441_v4 = vrot.slane %v1407_v59, 2  ;;  %v1442_v18 = vrot.slane %v1408_v58, 2  ;;  %v1444_v46 = vrot.slane %v1409_v61, 2  ;;  %v5175_v61 = vld [vmem:[%s7129_s1 + $0x8] sm:$0xff] }
  0xd6   : > { %v1445_v37 = vrot.slane %v1410_v1, 2  ;;  %v1437_v57 = vsel %vm978_vm1, %v1435_v15, %v1436_v54  ;;  %v1447_v2 = vrot.slane %v1411_v23, 2  ;;  %v1448_v32 = vrot.slane %v1412_v34, 2  ;;  %7393 = vst [vmem:[#allocation20_spill] sm:$0xff] %v5175_v61  ;;  %v7394_v1 = vld [vmem:[#allocation14_spill] sm:$0xff] }
  0xd7   : > { %v1440_v21 = vsel %vm978_vm1, %v1438_v10, %v1439_v38  ;;  %v1443_v29 = vsel %vm978_vm1, %v1441_v4, %v1442_v18  ;;  %v1450_v56 = vrot.slane %v1413_v42, 2  ;;  %v1451_v11 = vrot.slane %v1414_v5, 2  ;;  %v5221_v54 = vld [vmem:[%s3993_s4 + $0x28] sm:$0x3f]  ;;  %v5228_v4 = vld [vmem:[%s3993_s4 + $0x38] sm:$0x3f] }
  0xd8   : > { %v1446_v35 = vsel %vm978_vm1, %v1444_v46, %v1445_v37  ;;  %v1449_v27 = vsel %vm978_vm1, %v1447_v2, %v1448_v32  ;;  %v1453_v41 = vrot.slane %v1415_v22, 2  ;;  %v1454_v24 = vrot.slane %v1416_v0, 2  ;;  %7403 = vst [vmem:[#allocation11_spill] sm:$0xff] %v5221_v54  ;;  %v7405_v46 = vld [vmem:[#allocation23_spill] sm:$0xff]  ;;  %v7407_v2 = vld [vmem:[#allocation24_spill] sm:$0xff] }
  0xd9   : > { %v1456_v31 = vrot.slane %v1417_v36, 2  ;;  %v1452_v59 = vsel %vm978_vm1, %v1450_v56, %v1451_v11  ;;  %v1457_v58 = vrot.slane %v1418_v50, 2  ;;  %v5179_v23 = vrot.slane %v5175_v61, %v7394_v1  ;;  %v5207_v50 = vld [vmem:[%s3993_s4 + $0x8] sm:$0x3f] }
  0xda   : > { %v1455_v34 = vsel %vm978_vm1, %v1453_v41, %v1454_v24  ;;  %v5183_v42 = vadd.f32 %v1437_v57, %v5034_v13  ;;  %v5186_v56 = vadd.f32 %v1440_v21, %v5037_v16  ;;  %v5189_v5 = vadd.f32 %v1443_v29, %v5040_v39  ;;  %v5202_v13 = vld [vmem:[%s3993_s4] sm:$0xff]  ;;  %7399 = vst [vmem:[#allocation34_spill] sm:$0xff] %v5207_v50  ;;  %v7406_v57 = vld [vmem:[#allocation4_spill] sm:$0xff]  ;;  %v7408_v11 = vld [vmem:[#allocation27_spill] sm:$0xff] }
  0xdb   : > { %v1458_v22 = vsel %vm978_vm1, %v1456_v31, %v1457_v58  ;;  %v5193_v0 = vadd.f32 %v1446_v35, %v5044_v17  ;;  %v5196_v36 = vadd.f32 %v1449_v27, %v5047_v44  ;;  %v5199_v62 = vadd.f32 %v1452_v59, %v5050_v43  ;;  %7398 = vst [vmem:[#allocation5_spill] sm:$0xff] %v5202_v13  ;;  %v7400_v29 = vld [vmem:[#allocation22_spill] sm:$0xff]  ;;  %v5214_v35 = vld [vmem:[%s3993_s4 + $0x18] sm:$0x3f] }
  0xdc   : > { %v1479_v16 = vmul.f32 %v5202_v13, %v5142_v8  ;;  %v1480_v39 = vmul.f32 %v5207_v50, %v5142_v8  ;;  %v1481_v17 = vmul.f32 %v7400_v29, %v5142_v8  ;;  %7401 = vst [vmem:[#allocation10_spill] sm:$0xff] %v5214_v35  ;;  %v1482_v44 = vmul.f32 %v5214_v35, %v5142_v8  ;;  %v7402_v43 = vld [vmem:[#allocation2_spill] sm:$0xff] }
  0xdd   : > { %7395 = vst [vmem:[#allocation31_spill] sm:$0xff] %v5193_v0  ;;  %7396 = vst [vmem:[#allocation21_spill] sm:$0xff] %v5196_v36  ;;  %v1483_v15 = vmul.f32 %v7402_v43, %v5142_v8  ;;  %v1484_v10 = vmul.f32 %v5221_v54, %v5142_v8  ;;  %v1485_v38 = vmul.f32 %v4753_v33, %v5142_v8 }
  0xde   : > { %7397 = vst [vmem:[#allocation32_spill] sm:$0xff] %v5199_v62  ;;  %7404 = vst [vmem:[#allocation22_spill] sm:$0xff] %v5228_v4  ;;  %v1486_v18 = vmul.f32 %v5228_v4, %v5142_v8  ;;  %v1487_v37 = vmul.f32 %v7405_v46, %v5142_v8  ;;  %v1488_v21 = vmul.f32 %v7406_v57, %v5142_v8  ;;  %v1512_v58 = vrot.slane %v1479_v16, 3 }
  0xdf   : > { %v1489_v32 = vmul.f32 %v7407_v2, %v5142_v8  ;;  %v1490_v27 = vmul.f32 %v7408_v11, %v5142_v8  ;;  %v1491_v41 = vmul.f32 %v4843_v45, %v5142_v8  ;;  %v1492_v24 = vmul.f32 %v4990_v40, %v5142_v8 }
  0xe0   : > { %v1493_v31 = vmul.f32 %v4848_v63, %v5142_v8  ;;  %v1494_v59 = vmul.f32 %v4997_v55, %v5142_v8  ;;  %v1513_v1 = vrot.slane %v1480_v39, 3  ;;  %v1515_v50 = vrot.slane %v1481_v17, 3 }
  0xe1   : > { %v1516_v13 = vrot.slane %v1482_v44, 3  ;;  %v1518_v61 = vrot.slane %v1483_v15, 3  ;;  %v1519_v6 = vrot.slane %v1484_v10, 3  ;;  %v1521_v53 = vrot.slane %v1485_v38, 3 }
  0xe2   : > { %v1522_v47 = vrot.slane %v1486_v18, 3  ;;  %v1514_v3 = vsel %vm1511_vm2, %v1512_v58, %v1513_v1  ;;  %v1524_v20 = vrot.slane %v1487_v37, 3  ;;  %v1525_v51 = vrot.slane %v1488_v21, 3 }
  0xe3   : > { %v1517_v26 = vsel %vm1511_vm2, %v1515_v50, %v1516_v13  ;;  %v1520_v62 = vsel %vm1511_vm2, %v1518_v61, %v1519_v6  ;;  %v1527_v0 = vrot.slane %v1489_v32, 3  ;;  %v1528_v8 = vrot.slane %v1490_v27, 3 }
  0xe4   : > { %v1523_v36 = vsel %vm1511_vm2, %v1521_v53, %v1522_v47  ;;  %v1526_v16 = vsel %vm1511_vm2, %v1524_v20, %v1525_v51  ;;  %v1530_v39 = vrot.slane %v1491_v41, 3  ;;  %v1531_v17 = vrot.slane %v1492_v24, 3 }
  0xe5   : > { %v1533_v44 = vrot.slane %v1493_v31, 3  ;;  %v1473_v15 = vadd.f32 %v1455_v34, %v5096_v14  ;;  %v1474_v10 = vadd.f32 %v1458_v22, %v5099_v25  ;;  %v1529_v1 = vsel %vm1511_vm2, %v1527_v0, %v1528_v8 }
  0xe6   : > { %v1534_v13 = vrot.slane %v1494_v59, 3  ;;  %v1532_v50 = vsel %vm1511_vm2, %v1530_v39, %v1531_v17  ;;  %v5258_v6 = vadd.f32 %v1514_v3, %v5104_v7  ;;  %v5261_v47 = vadd.f32 %v1517_v26, %v5107_v9 }
  0xe7   : > { %v5264_v51 = vadd.f32 %v1520_v62, %v5110_v49  ;;  %v5268_v14 = vadd.f32 %v1523_v36, %v5114_v12  ;;  %v5271_v25 = vadd.f32 %v1526_v16, %v5117_v28  ;;  %v5274_v20 = vadd.f32 %v1529_v1, %v5127_v30 }
  0xe8   : > { %v1535_v53 = vsel %vm1511_vm2, %v1533_v44, %v1534_v13  ;;  %v1556_v3 = vmul.f32 %v7400_v29, %v5179_v23  ;;  %v1557_v26 = vmul.f32 %v5214_v35, %v5179_v23  ;;  %v1558_v7 = vmul.f32 %v7402_v43, %v5179_v23 }
  0xe9   : > { %v1559_v9 = vmul.f32 %v5221_v54, %v5179_v23  ;;  %v1560_v49 = vmul.f32 %v4753_v33, %v5179_v23  ;;  %v1561_v12 = vmul.f32 %v5228_v4, %v5179_v23  ;;  %v1562_v28 = vmul.f32 %v7405_v46, %v5179_v23 }
  0xea   : > { %v1563_v30 = vmul.f32 %v7406_v57, %v5179_v23  ;;  %v1564_v61 = vmul.f32 %v7407_v2, %v5179_v23  ;;  %v1565_v34 = vmul.f32 %v7408_v11, %v5179_v23  ;;  %v1566_v22 = vmul.f32 %v4843_v45, %v5179_v23 }
  0xeb   : > { %v1567_v0 = vmul.f32 %v4990_v40, %v5179_v23  ;;  %v1568_v36 = vmul.f32 %v4848_v63, %v5179_v23  ;;  %v1569_v62 = vmul.f32 %v4997_v55, %v5179_v23  ;;  %v1570_v29 = vmul.f32 %v4853_v48, %v5179_v23 }
  0xec   : > { %v1571_v38 = vmul.f32 %v5067_v19, %v5179_v23  ;;  %v1588_v18 = vrot.slane %v1556_v3, 3  ;;  %v1589_v37 = vrot.slane %v1557_v26, 3  ;;  %v1591_v21 = vrot.slane %v1558_v7, 3 }
  0xed   : > { %v1592_v32 = vrot.slane %v1559_v9, 3  ;;  %v1594_v27 = vrot.slane %v1560_v49, 3  ;;  %v1595_v41 = vrot.slane %v1561_v12, 3  ;;  %v1597_v24 = vrot.slane %v1562_v28, 3 }
  0xee   : > { %v1598_v31 = vrot.slane %v1563_v30, 3  ;;  %v1590_v59 = vsel %vm1511_vm2, %v1588_v18, %v1589_v37  ;;  %v1600_v8 = vrot.slane %v1564_v61, 3  ;;  %v1601_v16 = vrot.slane %v1565_v34, 3  ;;  %v7415_v18 = vld [vmem:[#allocation3_spill] sm:$0xff] }
  0xef   : > { %v1593_v58 = vsel %vm1511_vm2, %v1591_v21, %v1592_v32  ;;  %v1596_v39 = vsel %vm1511_vm2, %v1594_v27, %v1595_v41  ;;  %v1603_v44 = vrot.slane %v1566_v22, 3  ;;  %v1604_v23 = vrot.slane %v1567_v0, 3  ;;  %v7411_v0 = vld [vmem:[#allocation15_spill] sm:$0xff] }
  0xf0   : > { %v1599_v17 = vsel %vm1511_vm2, %v1597_v24, %v1598_v31  ;;  %v1602_v1 = vsel %vm1511_vm2, %v1600_v8, %v1601_v16  ;;  %v1606_v13 = vrot.slane %v1568_v36, 3  ;;  %v1607_v3 = vrot.slane %v1569_v62, 3  ;;  %v7412_v36 = vld [vmem:[#allocation33_spill] sm:$0xff] }
  0xf1   : > { %v1609_v26 = vrot.slane %v1570_v29, 3  ;;  %v5314_v7 = vadd.f32 %v1532_v50, %v5130_v60  ;;  %v5317_v9 = vadd.f32 %v1535_v53, %v5133_v52  ;;  %v1605_v49 = vsel %vm1511_vm2, %v1603_v44, %v1604_v23  ;;  %v7409_v50 = vld [vmem:[#allocation31_spill] sm:$0xff]  ;;  %v7410_v52 = vld [vmem:[#allocation21_spill] sm:$0xff]  ;;  %v7413_v29 = vld [vmem:[#allocation32_spill] sm:$0xff] }
  0xf2   : > { %v1610_v12 = vrot.slane %v1571_v38, 3  ;;  %v1608_v28 = vsel %vm1511_vm2, %v1606_v13, %v1607_v3  ;;  %v5322_v30 = vadd.f32 %v1590_v59, %v5183_v42  ;;  %v5325_v61 = vadd.f32 %v1593_v58, %v5186_v56  ;;  %v7417_v23 = vld [vmem:[#allocation19_spill] sm:$0xff] }
  0xf3   : > { %v5328_v34 = vadd.f32 %v1596_v39, %v5189_v5  ;;  %v5332_v22 = vadd.f32 %v1599_v17, %v7409_v50  ;;  %v5335_v53 = vadd.f32 %v1602_v1, %v7410_v52  ;;  %v1631_v62 = vrot.slane %v7412_v36, %v7411_v0  ;;  %v7414_v5 = vld [vmem:[#allocation6_spill] sm:$0xff]  ;;  %v7416_v17 = vld [vmem:[#allocation25_spill] sm:$0xff] }
  0xf4   : > { %v1611_v60 = vsel %vm1511_vm2, %v1609_v26, %v1610_v12  ;;  %v5340_v42 = vadd.f32 %v1605_v49, %v7413_v29  ;;  %v5342_v38 = vadd.f32 %v1608_v28, %v1473_v15  ;;  %v5348_v37 = vrot.slane %v7415_v18, %v7414_v5 }
  0xf5   : > { %v5344_v56 = vadd.f32 %v1611_v60, %v1474_v10  ;;  %v1632_v21 = vmul.f32 %v7402_v43, %v1631_v62  ;;  %v1633_v32 = vmul.f32 %v5221_v54, %v1631_v62  ;;  %v1634_v27 = vmul.f32 %v4753_v33, %v1631_v62 }
  0xf6   : > { %v1635_v41 = vmul.f32 %v5228_v4, %v1631_v62  ;;  %v1636_v24 = vmul.f32 %v7405_v46, %v1631_v62  ;;  %v1637_v31 = vmul.f32 %v7406_v57, %v1631_v62  ;;  %v1638_v15 = vmul.f32 %v7407_v2, %v1631_v62 }
  0xf7   : > { %v1639_v10 = vmul.f32 %v7408_v11, %v1631_v62  ;;  %v1640_v59 = vmul.f32 %v4843_v45, %v1631_v62  ;;  %v1641_v58 = vmul.f32 %v4990_v40, %v1631_v62  ;;  %v1642_v43 = vmul.f32 %v4848_v63, %v1631_v62 }
  0xf8   : > { %v1643_v8 = vmul.f32 %v4997_v55, %v1631_v62  ;;  %v1644_v16 = vmul.f32 %v4853_v48, %v1631_v62  ;;  %v1645_v39 = vmul.f32 %v5067_v19, %v1631_v62  ;;  %v1646_v44 = vmul.f32 %v7416_v17, %v1631_v62 }
  0xf9   : > { %v1647_v1 = vmul.f32 %v7417_v23, %v1631_v62  ;;  %v1664_v13 = vrot.slane %v1632_v21, 3  ;;  %v1665_v3 = vrot.slane %v1633_v32, 3  ;;  %v1667_v26 = vrot.slane %v1634_v27, 3 }
  0xfa   : > { %v1668_v49 = vrot.slane %v1635_v41, 3  ;;  %v1670_v12 = vrot.slane %v1636_v24, 3  ;;  %v1671_v28 = vrot.slane %v1637_v31, 3  ;;  %v1673_v60 = vrot.slane %v1638_v15, 3  ;;  %v7418_v15 = vld [vmem:[#allocation7_spill] sm:$0xff] }
  0xfb   : > { %v1674_v50 = vrot.slane %v1639_v10, 3  ;;  %v1666_v52 = vsel %vm1511_vm2, %v1664_v13, %v1665_v3  ;;  %v1676_v29 = vrot.slane %v1640_v59, 3  ;;  %v1677_v5 = vrot.slane %v1641_v58, 3  ;;  %v7419_v59 = vld [vmem:[#allocation8_spill] sm:$0xff]  ;;  %v7420_v58 = vld [vmem:[#allocation26_spill] sm:$0xff] }
  0xfc   : > { %v1669_v36 = vsel %vm1511_vm2, %v1667_v26, %v1668_v49  ;;  %v1672_v0 = vsel %vm1511_vm2, %v1670_v12, %v1671_v28  ;;  %v1679_v35 = vrot.slane %v1642_v43, 3  ;;  %v1680_v62 = vrot.slane %v1643_v8, 3  ;;  %v7423_v28 = vld [vmem:[#allocation16_spill] sm:$0xff] }
  0xfd   : > { %v1675_v54 = vsel %vm1511_vm2, %v1673_v60, %v1674_v50  ;;  %v1678_v21 = vsel %vm1511_vm2, %v1676_v29, %v1677_v5  ;;  %v1682_v32 = vrot.slane %v1644_v16, 3  ;;  %v1683_v27 = vrot.slane %v1645_v39, 3  ;;  %v5431_v50 = vld [vmem:[%s3993_s4 + $0xa8] sm:$0x3f] }
  0xfe   : > { %v1685_v41 = vrot.slane %v1646_v44, 3  ;;  %v1681_v24 = vsel %vm1511_vm2, %v1679_v35, %v1680_v62  ;;  %v1686_v31 = vrot.slane %v1647_v1, 3  ;;  %v5374_v10 = vrot.slane %v7415_v18, %v7418_v15  ;;  %7424 = vst [vmem:[#allocation4_spill] sm:$0xff] %v5431_v50 }
  0xff   : > { %v5378_v13 = vrot.slane %v7420_v58, %v7419_v59  ;;  %v1684_v3 = vsel %vm1511_vm2, %v1682_v32, %v1683_v27  ;;  %v5382_v43 = vadd.f32 %v1666_v52, %v5258_v6  ;;  %v5385_v5 = vadd.f32 %v1669_v36, %v5261_v47 }
 0x100   : > { %v5388_v8 = vadd.f32 %v1672_v0, %v5264_v51  ;;  %v1687_v35 = vsel %vm1511_vm2, %v1685_v41, %v1686_v31  ;;  %v5392_v18 = vadd.f32 %v1675_v54, %v5268_v14  ;;  %v5395_v16 = vadd.f32 %v1678_v21, %v5271_v25 }
 0x101   : > { %7421 = vst [vmem:[#allocation2_spill] sm:$0xff] %v5378_v13  ;;  %v5398_v39 = vadd.f32 %v1681_v24, %v5274_v20  ;;  %v1708_v6 = vmul.f32 %v4753_v33, %v5348_v37  ;;  %v1709_v47 = vmul.f32 %v5228_v4, %v5348_v37  ;;  %v1710_v51 = vmul.f32 %v7405_v46, %v5348_v37 }
 0x102   : > { %v1711_v54 = vmul.f32 %v7406_v57, %v5348_v37  ;;  %v1712_v14 = vmul.f32 %v7407_v2, %v5348_v37  ;;  %v1713_v25 = vmul.f32 %v7408_v11, %v5348_v37  ;;  %v1714_v20 = vmul.f32 %v4843_v45, %v5348_v37 }
 0x103   : > { %7422 = vst [vmem:[#allocation23_spill] sm:$0xff] %v5398_v39  ;;  %v1715_v33 = vmul.f32 %v4990_v40, %v5348_v37  ;;  %v1716_v0 = vmul.f32 %v4848_v63, %v5348_v37  ;;  %v1717_v44 = vmul.f32 %v4997_v55, %v5348_v37  ;;  %v1718_v1 = vmul.f32 %v4853_v48, %v5348_v37 }
 0x104   : > { %v1719_v26 = vmul.f32 %v5067_v19, %v5348_v37  ;;  %v1720_v49 = vmul.f32 %v7416_v17, %v5348_v37  ;;  %v1721_v12 = vmul.f32 %v7417_v23, %v5348_v37  ;;  %v1722_v60 = vmul.f32 %v7423_v28, %v5348_v37 }
 0x105   : > { %v1723_v52 = vmul.f32 %v5431_v50, %v5348_v37  ;;  %v1740_v36 = vrot.slane %v1708_v6, 3  ;;  %v1741_v29 = vrot.slane %v1709_v47, 3  ;;  %v1743_v62 = vrot.slane %v1710_v51, 3 }
 0x106   : > { %v1744_v21 = vrot.slane %v1711_v54, 3  ;;  %v1746_v32 = vrot.slane %v1712_v14, 3  ;;  %v1747_v27 = vrot.slane %v1713_v25, 3  ;;  %v1749_v41 = vrot.slane %v1714_v20, 3 }
 0x107   : > { %v1750_v24 = vrot.slane %v1715_v33, 3  ;;  %v1742_v31 = vsel %vm1511_vm2, %v1740_v36, %v1741_v29  ;;  %v1752_v59 = vrot.slane %v1716_v0, 3  ;;  %v1753_v15 = vrot.slane %v1717_v44, 3 }
 0x108   : > { %v1745_v58 = vsel %vm1511_vm2, %v1743_v62, %v1744_v21  ;;  %v1748_v4 = vsel %vm1511_vm2, %v1746_v32, %v1747_v27  ;;  %v1755_v39 = vrot.slane %v1718_v1, 3  ;;  %v1756_v37 = vrot.slane %v1719_v26, 3 }
 0x109   : > { %v1751_v13 = vsel %vm1511_vm2, %v1749_v41, %v1750_v24  ;;  %v1754_v6 = vsel %vm1511_vm2, %v1752_v59, %v1753_v15  ;;  %v1758_v47 = vrot.slane %v1720_v49, 3  ;;  %v1759_v51 = vrot.slane %v1721_v12, 3  ;;  %v7425_v12 = vld [vmem:[#allocation17_spill] sm:$0xff] }
 0x10a   : > { %v1761_v54 = vrot.slane %v1722_v60, 3  ;;  %v5441_v14 = vadd.f32 %v1684_v3, %v5314_v7  ;;  %v5444_v25 = vadd.f32 %v1687_v35, %v5317_v9  ;;  %v1757_v20 = vsel %vm1511_vm2, %v1755_v39, %v1756_v37 }
 0x10b   : > { %v1762_v33 = vrot.slane %v1723_v52, 3  ;;  %v1760_v0 = vsel %vm1511_vm2, %v1758_v47, %v1759_v51  ;;  %v5449_v44 = vadd.f32 %v1742_v31, %v5322_v30  ;;  %v5452_v1 = vadd.f32 %v1745_v58, %v5325_v61  ;;  %v5498_v52 = vld [vmem:[%s3993_s4 + $0xb8] sm:$0x3f] }
 0x10c   : > { %v5455_v15 = vadd.f32 %v1748_v4, %v5328_v34  ;;  %v5459_v59 = vadd.f32 %v1751_v13, %v5332_v22  ;;  %v5462_v9 = vadd.f32 %v1754_v6, %v5335_v53  ;;  %v5465_v3 = vadd.f32 %v1757_v20, %v5340_v42  ;;  %7426 = vst [vmem:[#allocation24_spill] sm:$0xff] %v5498_v52 }
 0x10d   : > { %v1763_v7 = vsel %vm1511_vm2, %v1761_v54, %v1762_v33  ;;  %v1784_v30 = vmul.f32 %v7405_v46, %v5374_v10  ;;  %v1785_v61 = vmul.f32 %v7406_v57, %v5374_v10  ;;  %v1786_v4 = vmul.f32 %v7407_v2, %v5374_v10 }
 0x10e   : > { %v1787_v34 = vmul.f32 %v7408_v11, %v5374_v10  ;;  %v1788_v22 = vmul.f32 %v4843_v45, %v5374_v10  ;;  %v1789_v53 = vmul.f32 %v4990_v40, %v5374_v10  ;;  %v1790_v42 = vmul.f32 %v4848_v63, %v5374_v10 }
 0x10f   : > { %v1791_v46 = vmul.f32 %v4997_v55, %v5374_v10  ;;  %v1792_v13 = vmul.f32 %v4853_v48, %v5374_v10  ;;  %v1793_v2 = vmul.f32 %v5067_v19, %v5374_v10  ;;  %v1794_v35 = vmul.f32 %v7416_v17, %v5374_v10 }
 0x110   : > { %v1795_v39 = vmul.f32 %v7417_v23, %v5374_v10  ;;  %v1796_v26 = vmul.f32 %v7423_v28, %v5374_v10  ;;  %v1797_v49 = vmul.f32 %v5431_v50, %v5374_v10  ;;  %v1798_v60 = vmul.f32 %v7425_v12, %v5374_v10 }
 0x111   : > { %v1799_v36 = vmul.f32 %v5498_v52, %v5374_v10  ;;  %v1816_v29 = vrot.slane %v1784_v30, 3  ;;  %v1817_v62 = vrot.slane %v1785_v61, 3  ;;  %v1819_v21 = vrot.slane %v1786_v4, 3 }
 0x112   : > { %v1820_v32 = vrot.slane %v1787_v34, 3  ;;  %v1822_v27 = vrot.slane %v1788_v22, 3  ;;  %v1823_v41 = vrot.slane %v1789_v53, 3  ;;  %v1825_v24 = vrot.slane %v1790_v42, 3 }
 0x113   : > { %v1826_v31 = vrot.slane %v1791_v46, 3  ;;  %v1818_v58 = vsel %vm1511_vm2, %v1816_v29, %v1817_v62  ;;  %v1828_v6 = vrot.slane %v1792_v13, 3  ;;  %v1829_v47 = vrot.slane %v1793_v2, 3 }
 0x114   : > { %v1821_v37 = vsel %vm1511_vm2, %v1819_v21, %v1820_v32  ;;  %v1824_v51 = vsel %vm1511_vm2, %v1822_v27, %v1823_v41  ;;  %v1831_v20 = vrot.slane %v1794_v35, 3  ;;  %v1832_v10 = vrot.slane %v1795_v39, 3  ;;  %v7430_v27 = vld [vmem:[#allocation28_spill] sm:$0xff] }
 0x115   : > { %v1827_v54 = vsel %vm1511_vm2, %v1825_v24, %v1826_v31  ;;  %v1830_v33 = vsel %vm1511_vm2, %v1828_v6, %v1829_v47  ;;  %v1834_v30 = vrot.slane %v1796_v26, 3  ;;  %v1835_v61 = vrot.slane %v1797_v49, 3  ;;  %v5535_v26 = vld [vmem:[%s3993_s4 + $0x50] sm:$0xff]  ;;  %v5568_v24 = vld [vmem:[%s3993_s4 + $0xc8] sm:$0x3f] }
 0x116   : > { %v1837_v4 = vrot.slane %v1798_v60, 3  ;;  %v5508_v34 = vadd.f32 %v1760_v0, %v5342_v38  ;;  %v5511_v22 = vadd.f32 %v1763_v7, %v5344_v56  ;;  %v1833_v53 = vsel %vm1511_vm2, %v1831_v20, %v1832_v10  ;;  %v7427_v7 = vld [vmem:[#allocation23_spill] sm:$0xff]  ;;  %7428 = vst [vmem:[#allocation27_spill] sm:$0xff] %v5535_v26  ;;  %7431 = vst [vmem:[#allocation31_spill] sm:$0xff] %v5568_v24 }
 0x117   : > { %v1838_v42 = vrot.slane %v1799_v36, 3  ;;  %v1836_v46 = vsel %vm1511_vm2, %v1834_v30, %v1835_v61  ;;  %v5516_v13 = vadd.f32 %v1818_v58, %v5382_v43  ;;  %v5519_v2 = vadd.f32 %v1821_v37, %v5385_v5  ;;  %v7429_v43 = vld [vmem:[#allocation2_spill] sm:$0xff] }
 0x118   : > { %v5522_v35 = vadd.f32 %v1824_v51, %v5388_v8  ;;  %v5526_v0 = vadd.f32 %v1827_v54, %v5392_v18  ;;  %v5529_v56 = vadd.f32 %v1830_v33, %v5395_v16  ;;  %v5532_v39 = vadd.f32 %v1833_v53, %v7427_v7 }
 0x119   : > { %v1839_v38 = vsel %vm1511_vm2, %v1837_v4, %v1838_v42  ;;  %v1860_v5 = vmul.f32 %v5535_v26, %v7429_v43  ;;  %v1861_v8 = vmul.f32 %v7408_v11, %v7429_v43  ;;  %v1862_v49 = vmul.f32 %v4843_v45, %v7429_v43 }
 0x11a   : > { %v1863_v18 = vmul.f32 %v4990_v40, %v7429_v43  ;;  %v1864_v16 = vmul.f32 %v4848_v63, %v7429_v43  ;;  %v1865_v60 = vmul.f32 %v4997_v55, %v7429_v43  ;;  %v1866_v36 = vmul.f32 %v4853_v48, %v7429_v43 }
 0x11b   : > { %v1867_v29 = vmul.f32 %v5067_v19, %v7429_v43  ;;  %v1868_v62 = vmul.f32 %v7416_v17, %v7429_v43  ;;  %v1869_v45 = vmul.f32 %v7417_v23, %v7429_v43  ;;  %v1870_v21 = vmul.f32 %v7423_v28, %v7429_v43 }
 0x11c   : > { %v1871_v63 = vmul.f32 %v5431_v50, %v7429_v43  ;;  %v1872_v32 = vmul.f32 %v7425_v12, %v7429_v43  ;;  %v1873_v48 = vmul.f32 %v5498_v52, %v7429_v43  ;;  %v1874_v41 = vmul.f32 %v7430_v27, %v7429_v43 }
 0x11d   : > { %v1875_v17 = vmul.f32 %v5568_v24, %v7429_v43  ;;  %v1892_v31 = vrot.slane %v1860_v5, 3  ;;  %v1893_v58 = vrot.slane %v1861_v8, 3  ;;  %v1895_v37 = vrot.slane %v1862_v49, 3 }
 0x11e   : > { %v1896_v6 = vrot.slane %v1863_v18, 3  ;;  %v1898_v47 = vrot.slane %v1864_v16, 3  ;;  %v1899_v51 = vrot.slane %v1865_v60, 3  ;;  %v1901_v54 = vrot.slane %v1866_v36, 3 }
 0x11f   : > { %v1902_v20 = vrot.slane %v1867_v29, 3  ;;  %v1894_v10 = vsel %vm1511_vm2, %v1892_v31, %v1893_v58  ;;  %v1904_v30 = vrot.slane %v1868_v62, 3  ;;  %v1905_v61 = vrot.slane %v1869_v45, 3  ;;  %v5622_v58 = vld [vmem:[%s3993_s4 + $0x70] sm:$0xff] }
 0x120   : > { %v1897_v33 = vsel %vm1511_vm2, %v1895_v37, %v1896_v6  ;;  %v1900_v4 = vsel %vm1511_vm2, %v1898_v47, %v1899_v51  ;;  %v1907_v42 = vrot.slane %v1870_v21, 3  ;;  %v1908_v7 = vrot.slane %v1871_v63, 3  ;;  %v7432_v21 = vld [vmem:[#allocation9_spill] sm:$0xff]  ;;  %v7433_v63 = vld [vmem:[#allocation18_spill] sm:$0xff]  ;;  %v5632_v47 = vld [vmem:[%s3993_s4 + $0x90] sm:$0xff] }
 0x121   : > { %v1903_v53 = vsel %vm1511_vm2, %v1901_v54, %v1902_v20  ;;  %v1906_v43 = vsel %vm1511_vm2, %v1904_v30, %v1905_v61  ;;  %v1910_v5 = vrot.slane %v1872_v32, 3  ;;  %v1911_v8 = vrot.slane %v1873_v48, 3  ;;  %v7434_v48 = vld [vmem:[#allocation12_spill] sm:$0xff]  ;;  %v5627_v37 = vld [vmem:[%s3993_s4 + $0x80] sm:$0xff]  ;;  %7436 = vst [vmem:[#allocation21_spill] sm:$0xff] %v5632_v47 }
 0x122   : > { %v1913_v49 = vrot.slane %v1874_v41, 3  ;;  %v5578_v18 = vadd.f32 %v1836_v46, %v5441_v14  ;;  %v5581_v16 = vadd.f32 %v1839_v38, %v5444_v25  ;;  %v1909_v60 = vsel %vm1511_vm2, %v1907_v42, %v1908_v7  ;;  %v7435_v41 = vld [vmem:[#allocation29_spill] sm:$0xff] }
 0x123   : > { %v1914_v36 = vrot.slane %v1875_v17, 3  ;;  %v1912_v29 = vsel %vm1511_vm2, %v1910_v5, %v1911_v8  ;;  %v5586_v62 = vadd.f32 %v1894_v10, %v5449_v44  ;;  %v5589_v45 = vadd.f32 %v1897_v33, %v5452_v1  ;;  %v5617_v17 = vld [vmem:[%s3993_s4 + $0x60] sm:$0xff]  ;;  %v5644_v7 = vld [vmem:[%s3993_s4 + $0xd8] sm:$0x3f] }
 0x124   : > { %v5592_v14 = vadd.f32 %v1900_v4, %v5455_v15  ;;  %v5596_v25 = vadd.f32 %v1903_v53, %v5459_v59  ;;  %v5599_v38 = vadd.f32 %v1906_v43, %v5462_v9  ;;  %v1935_v44 = vrot.slane %v7433_v63, %v7432_v21  ;;  %v7437_v53 = vld [vmem:[#allocation30_spill] sm:$0xff]  ;;  %7438 = vst [vmem:[#allocation33_spill] sm:$0xff] %v5644_v7 }
 0x125   : > { %v1915_v46 = vsel %vm1511_vm2, %v1913_v49, %v1914_v36  ;;  %v5604_v32 = vadd.f32 %v1909_v60, %v5465_v3  ;;  %v5607_v1 = vadd.f32 %v1912_v29, %v5508_v34  ;;  %v5614_v59 = vrot.slane %v7435_v41, %v7434_v48 }
 0x126   : > { %v5610_v15 = vadd.f32 %v1915_v46, %v5511_v22  ;;  %v1936_v9 = vmul.f32 %v5617_v17, %v1935_v44  ;;  %v1937_v31 = vmul.f32 %v4990_v40, %v1935_v44  ;;  %v1938_v3 = vmul.f32 %v5622_v58, %v1935_v44 }
 0x127   : > { %v1939_v34 = vmul.f32 %v4997_v55, %v1935_v44  ;;  %v1940_v22 = vmul.f32 %v5627_v37, %v1935_v44  ;;  %v1941_v6 = vmul.f32 %v5067_v19, %v1935_v44  ;;  %v1942_v51 = vmul.f32 %v5632_v47, %v1935_v44 }
 0x128   : > { %v1943_v54 = vmul.f32 %v7417_v23, %v1935_v44  ;;  %v1944_v20 = vmul.f32 %v7423_v28, %v1935_v44  ;;  %v1945_v10 = vmul.f32 %v5431_v50, %v1935_v44  ;;  %v1946_v33 = vmul.f32 %v7425_v12, %v1935_v44 }
 0x129   : > { %v1947_v30 = vmul.f32 %v5498_v52, %v1935_v44  ;;  %v1948_v61 = vmul.f32 %v7430_v27, %v1935_v44  ;;  %v1949_v4 = vmul.f32 %v5568_v24, %v1935_v44  ;;  %v1950_v42 = vmul.f32 %v7437_v53, %v1935_v44 }
 0x12a   : > { %v1951_v43 = vmul.f32 %v5644_v7, %v1935_v44  ;;  %v1968_v5 = vrot.slane %v1936_v9, 3  ;;  %v1969_v8 = vrot.slane %v1937_v31, 3  ;;  %v1971_v49 = vrot.slane %v1938_v3, 3 }
 0x12b   : > { %v1972_v28 = vrot.slane %v1939_v34, 3  ;;  %v1974_v60 = vrot.slane %v1940_v22, 3  ;;  %v1975_v36 = vrot.slane %v1941_v6, 3  ;;  %v1977_v29 = vrot.slane %v1942_v51, 3  ;;  %v7439_v51 = vld [vmem:[#allocation13_spill] sm:$0xff] }
 0x12c   : > { %v1978_v12 = vrot.slane %v1943_v54, 3  ;;  %v1970_v46 = vsel %vm1511_vm2, %v1968_v5, %v1969_v8  ;;  %v1980_v63 = vrot.slane %v1944_v20, 3  ;;  %v1981_v41 = vrot.slane %v1945_v10, 3  ;;  %v7440_v54 = vld [vmem:[#allocation20_spill] sm:$0xff] }
 0x12d   : > { %v1973_v27 = vsel %vm1511_vm2, %v1971_v49, %v1972_v28  ;;  %v1976_v53 = vsel %vm1511_vm2, %v1974_v60, %v1975_v36  ;;  %v1983_v21 = vrot.slane %v1946_v33, 3  ;;  %v1984_v44 = vrot.slane %v1947_v30, 3  ;;  %v5689_v28 = vld [vmem:[%s3993_s4 + $0x20] sm:$0xff]  ;;  %v5696_v36 = vld [vmem:[%s3993_s4 + $0x30] sm:$0xff] }
 0x12e   : > { %v1979_v48 = vsel %vm1511_vm2, %v1977_v29, %v1978_v12  ;;  %v1982_v9 = vsel %vm1511_vm2, %v1980_v63, %v1981_v41  ;;  %v1986_v31 = vrot.slane %v1948_v61, 3  ;;  %v1987_v3 = vrot.slane %v1949_v4, 3  ;;  %7445 = vst [vmem:[#allocation3_spill] sm:$0xff] %v5689_v28  ;;  %7447 = vst [vmem:[#allocation25_spill] sm:$0xff] %v5696_v36  ;;  %v7448_v12 = vld [vmem:[#allocation22_spill] sm:$0xff] }
 0x12f   : > { %v1989_v34 = vrot.slane %v1950_v42, 3  ;;  %v1985_v22 = vsel %vm1511_vm2, %v1983_v21, %v1984_v44  ;;  %v1990_v6 = vrot.slane %v1951_v43, 3  ;;  %v5655_v20 = vrot.slane %v7440_v54, %v7439_v51 }
 0x130   : > { %v1988_v10 = vsel %vm1511_vm2, %v1986_v31, %v1987_v3  ;;  %v5659_v33 = vadd.f32 %v1970_v46, %v5516_v13  ;;  %v5662_v30 = vadd.f32 %v1973_v27, %v5519_v2  ;;  %v5665_v61 = vadd.f32 %v1976_v53, %v5522_v35  ;;  %v7441_v13 = vld [vmem:[#allocation5_spill] sm:$0xff]  ;;  %v7442_v2 = vld [vmem:[#allocation34_spill] sm:$0xff]  ;;  %v5682_v35 = vld [vmem:[%s3993_s4 + $0x10] sm:$0xff] }
 0x131   : > { %v1991_v21 = vsel %vm1511_vm2, %v1989_v34, %v1990_v6  ;;  %v5669_v4 = vadd.f32 %v1979_v48, %v5526_v0  ;;  %v5672_v42 = vadd.f32 %v1982_v9, %v5529_v56  ;;  %v5675_v43 = vadd.f32 %v1985_v22, %v5532_v39  ;;  %7443 = vst [vmem:[#allocation32_spill] sm:$0xff] %v5682_v35  ;;  %v7444_v0 = vld [vmem:[#allocation10_spill] sm:$0xff]  ;;  %v7446_v39 = vld [vmem:[#allocation11_spill] sm:$0xff] }
 0x132   : > { %v2012_v5 = vmul.f32 %v7441_v13, %v5614_v59  ;;  %v2013_v8 = vmul.f32 %v7442_v2, %v5614_v59  ;;  %v2014_v49 = vmul.f32 %v5682_v35, %v5614_v59  ;;  %v2015_v48 = vmul.f32 %v7444_v0, %v5614_v59  ;;  %v5703_v27 = vld [vmem:[%s3993_s4 + $0x40] sm:$0xff] }
 0x133   : > { %v2016_v56 = vmul.f32 %v5689_v28, %v5614_v59  ;;  %v2017_v60 = vmul.f32 %v7446_v39, %v5614_v59  ;;  %v2018_v29 = vmul.f32 %v5696_v36, %v5614_v59  ;;  %v2019_v46 = vmul.f32 %v7448_v12, %v5614_v59  ;;  %7449 = vst [vmem:[#allocation26_spill] sm:$0xff] %v5703_v27 }
 0x134   : > { %v2020_v63 = vmul.f32 %v5703_v27, %v5614_v59  ;;  %v2021_v41 = vmul.f32 %v7406_v57, %v5614_v59  ;;  %v2022_v53 = vmul.f32 %v5535_v26, %v5614_v59  ;;  %v2023_v44 = vmul.f32 %v7408_v11, %v5614_v59 }
 0x135   : > { %v2024_v9 = vmul.f32 %v5617_v17, %v5614_v59  ;;  %v2025_v31 = vmul.f32 %v4990_v40, %v5614_v59  ;;  %v2026_v3 = vmul.f32 %v5622_v58, %v5614_v59  ;;  %v2027_v34 = vmul.f32 %v4997_v55, %v5614_v59 }
 0x136   : > { %v2045_v22 = vrot.slane %v2012_v5, 4  ;;  %v2046_v57 = vrot.slane %v2013_v8, 4  ;;  %v2048_v6 = vrot.slane %v2014_v49, 4  ;;  %v2049_v54 = vrot.slane %v2015_v48, 4 }
 0x137   : > { %v2051_v13 = vrot.slane %v2016_v56, 4  ;;  %v2052_v2 = vrot.slane %v2017_v60, 4  ;;  %v2054_v51 = vrot.slane %v2018_v29, 4  ;;  %v2055_v11 = vrot.slane %v2019_v46, 4 }
 0x138   : > { %v2047_v7 = vsel %vm2044_vm3, %v2045_v22, %v2046_v57  ;;  %v2050_v24 = vsel %vm2044_vm3, %v2048_v6, %v2049_v54  ;;  %v2057_v52 = vrot.slane %v2020_v63, 4  ;;  %v2058_v40 = vrot.slane %v2021_v41, 4 }
 0x139   : > { %v2053_v50 = vsel %vm2044_vm3, %v2051_v13, %v2052_v2  ;;  %v2056_v23 = vsel %vm2044_vm3, %v2054_v51, %v2055_v11  ;;  %v2060_v47 = vrot.slane %v2022_v53, 4  ;;  %v2061_v55 = vrot.slane %v2023_v44, 4  ;;  %v5782_v53 = vld [vmem:[%s3993_s4 + $0x68] sm:$0x3f] }
 0x13a   : > { %v2059_v59 = vsel %vm2044_vm3, %v2057_v52, %v2058_v40  ;;  %v2063_v5 = vrot.slane %v2024_v9, 4  ;;  %v2064_v8 = vrot.slane %v2025_v31, 4  ;;  %v2066_v49 = vrot.slane %v2026_v3, 4  ;;  %v5789_v31 = vld [vmem:[%s3993_s4 + $0x78] sm:$0x3f] }
 0x13b   : > { %v5727_v48 = vadd.f32 %v1988_v10, %v5578_v18  ;;  %v5730_v56 = vadd.f32 %v1991_v21, %v5581_v16  ;;  %v2062_v60 = vsel %vm2044_vm3, %v2060_v47, %v2061_v55  ;;  %v2067_v29 = vrot.slane %v2027_v34, 4  ;;  %v5775_v21 = vld [vmem:[%s3993_s4 + $0x58] sm:$0x3f] }
 0x13c   : > { %v2065_v46 = vsel %vm2044_vm3, %v2063_v5, %v2064_v8  ;;  %v5735_v51 = vadd.f32 %v2047_v7, %v5586_v62  ;;  %v5738_v52 = vadd.f32 %v2050_v24, %v5589_v45  ;;  %v5741_v63 = vadd.f32 %v2053_v50, %v5592_v14  ;;  %7451 = vst [vmem:[#allocation17_spill] sm:$0xff] %v5775_v21 }
 0x13d   : > { %v2068_v18 = vsel %vm2044_vm3, %v2066_v49, %v2067_v29  ;;  %v5745_v16 = vadd.f32 %v2056_v23, %v5596_v25  ;;  %v5748_v47 = vadd.f32 %v2059_v59, %v5599_v38  ;;  %v5751_v10 = vadd.f32 %v2062_v60, %v5604_v32  ;;  %v5768_v38 = vld [vmem:[%s3993_s4 + $0x48] sm:$0x3f] }
 0x13e   : > { %v2089_v24 = vmul.f32 %v5682_v35, %v5655_v20  ;;  %v2090_v50 = vmul.f32 %v7444_v0, %v5655_v20  ;;  %v2091_v62 = vmul.f32 %v5689_v28, %v5655_v20  ;;  %v2092_v23 = vmul.f32 %v7446_v39, %v5655_v20  ;;  %7450 = vst [vmem:[#allocation16_spill] sm:$0xff] %v5768_v38 }
 0x13f   : > { %v2093_v45 = vmul.f32 %v5696_v36, %v5655_v20  ;;  %v2094_v14 = vmul.f32 %v7448_v12, %v5655_v20  ;;  %v2095_v25 = vmul.f32 %v5703_v27, %v5655_v20  ;;  %v2096_v32 = vmul.f32 %v5768_v38, %v5655_v20 }
 0x140   : > { %v2097_v7 = vmul.f32 %v5535_v26, %v5655_v20  ;;  %v2098_v0 = vmul.f32 %v5775_v21, %v5655_v20  ;;  %v2099_v41 = vmul.f32 %v5617_v17, %v5655_v20  ;;  %v2100_v44 = vmul.f32 %v5782_v53, %v5655_v20 }
 0x141   : > { %v2101_v9 = vmul.f32 %v5622_v58, %v5655_v20  ;;  %v2102_v3 = vmul.f32 %v5789_v31, %v5655_v20  ;;  %v2103_v34 = vmul.f32 %v5627_v37, %v5655_v20  ;;  %v2104_v22 = vmul.f32 %v5067_v19, %v5655_v20 }
 0x142   : > { %v2121_v57 = vrot.slane %v2089_v24, 4  ;;  %v2122_v6 = vrot.slane %v2090_v50, 4  ;;  %v2124_v54 = vrot.slane %v2091_v62, 4  ;;  %v2125_v13 = vrot.slane %v2092_v23, 4 }
 0x143   : > { %v2127_v2 = vrot.slane %v2093_v45, 4  ;;  %v2128_v11 = vrot.slane %v2094_v14, 4  ;;  %v2130_v40 = vrot.slane %v2095_v25, 4  ;;  %v2131_v55 = vrot.slane %v2096_v32, 4 }
 0x144   : > { %v2123_v59 = vsel %vm2044_vm3, %v2121_v57, %v2122_v6  ;;  %v2126_v5 = vsel %vm2044_vm3, %v2124_v54, %v2125_v13  ;;  %v2133_v8 = vrot.slane %v2097_v7, 4  ;;  %v2134_v49 = vrot.slane %v2098_v0, 4 }
 0x145   : > { %v2129_v60 = vsel %vm2044_vm3, %v2127_v2, %v2128_v11  ;;  %v2132_v29 = vsel %vm2044_vm3, %v2130_v40, %v2131_v55  ;;  %v2136_v35 = vrot.slane %v2099_v41, 4  ;;  %v2137_v19 = vrot.slane %v2100_v44, 4  ;;  %v7455_v44 = vld [vmem:[#allocation15_spill] sm:$0xff] }
 0x146   : > { %v2135_v20 = vsel %vm2044_vm3, %v2133_v8, %v2134_v49  ;;  %v2139_v24 = vrot.slane %v2101_v9, 4  ;;  %v2140_v50 = vrot.slane %v2102_v3, 4  ;;  %v2142_v62 = vrot.slane %v2103_v34, 4  ;;  %v5865_v40 = vld [vmem:[%s3993_s4 + $0x88] sm:$0x3f] }
 0x147   : > { %v5803_v23 = vadd.f32 %v2065_v46, %v5607_v1  ;;  %v5806_v45 = vadd.f32 %v2068_v18, %v5610_v15  ;;  %v2138_v14 = vsel %vm2044_vm3, %v2136_v35, %v2137_v19  ;;  %v2143_v25 = vrot.slane %v2104_v22, 4  ;;  %v5829_v35 = vld [vmem:[%s7129_s1 + $0x10] sm:$0xff]  ;;  %v7457_v8 = vld [vmem:[#allocation19_spill] sm:$0xff] }
 0x148   : > { %v2141_v32 = vsel %vm2044_vm3, %v2139_v24, %v2140_v50  ;;  %v5811_v7 = vadd.f32 %v2123_v59, %v5659_v33  ;;  %v5814_v0 = vadd.f32 %v2126_v5, %v5662_v30  ;;  %v5817_v41 = vadd.f32 %v2129_v60, %v5665_v61  ;;  %7452 = vst [vmem:[#allocation23_spill] sm:$0xff] %v5829_v35  ;;  %v7453_v33 = vld [vmem:[#allocation14_spill] sm:$0xff]  ;;  %v7456_v59 = vld [vmem:[#allocation21_spill] sm:$0xff] }
 0x149   : > { %v2144_v1 = vsel %vm2044_vm3, %v2142_v62, %v2143_v25  ;;  %v5821_v46 = vadd.f32 %v2132_v29, %v5669_v4  ;;  %v5824_v15 = vadd.f32 %v2135_v20, %v5672_v42  ;;  %v2164_v30 = vrot.slane %v5829_v35, %v7453_v33  ;;  %v5845_v42 = vld [vmem:[%s7129_s1 + $0x18] sm:$0xff] }
 0x14a   : > { %v5834_v18 = vadd.f32 %v2138_v14, %v5675_v43  ;;  %v5837_v61 = vadd.f32 %v2141_v32, %v5727_v48  ;;  %v5840_v4 = vadd.f32 %v2144_v1, %v5730_v56  ;;  %7454 = vst [vmem:[#allocation2_spill] sm:$0xff] %v5845_v42  ;;  %v5849_v9 = vrot.slane %v5845_v42, %v7455_v44 }
 0x14b   : > { %v2165_v3 = vmul.f32 %v5689_v28, %v2164_v30  ;;  %v2166_v43 = vmul.f32 %v7446_v39, %v2164_v30  ;;  %v2167_v48 = vmul.f32 %v5696_v36, %v2164_v30  ;;  %v2168_v34 = vmul.f32 %v7448_v12, %v2164_v30 }
 0x14c   : > { %v2169_v56 = vmul.f32 %v5703_v27, %v2164_v30  ;;  %v2170_v22 = vmul.f32 %v5768_v38, %v2164_v30  ;;  %v2171_v57 = vmul.f32 %v5535_v26, %v2164_v30  ;;  %v2172_v6 = vmul.f32 %v5775_v21, %v2164_v30 }
 0x14d   : > { %v2173_v54 = vmul.f32 %v5617_v17, %v2164_v30  ;;  %v2174_v13 = vmul.f32 %v5782_v53, %v2164_v30  ;;  %v2175_v2 = vmul.f32 %v5622_v58, %v2164_v30  ;;  %v2176_v39 = vmul.f32 %v5789_v31, %v2164_v30 }
 0x14e   : > { %v2177_v11 = vmul.f32 %v5627_v37, %v2164_v30  ;;  %v2178_v55 = vmul.f32 %v5865_v40, %v2164_v30  ;;  %v2179_v5 = vmul.f32 %v7456_v59, %v2164_v30  ;;  %v2180_v49 = vmul.f32 %v7457_v8, %v2164_v30 }
 0x14f   : > { %v2197_v60 = vrot.slane %v2165_v3, 4  ;;  %v2198_v29 = vrot.slane %v2166_v43, 4  ;;  %v2200_v19 = vrot.slane %v2167_v48, 4  ;;  %v2201_v20 = vrot.slane %v2168_v34, 4 }
 0x150   : > { %v2203_v24 = vrot.slane %v2169_v56, 4  ;;  %v2204_v50 = vrot.slane %v2170_v22, 4  ;;  %v2206_v62 = vrot.slane %v2171_v57, 4  ;;  %v2207_v14 = vrot.slane %v2172_v6, 4  ;;  %v5879_v57 = vld [vmem:[%s7129_s1 + $0x20] sm:$0xff] }
 0x151   : > { %v2199_v25 = vsel %vm2044_vm3, %v2197_v60, %v2198_v29  ;;  %v2202_v32 = vsel %vm2044_vm3, %v2200_v19, %v2201_v20  ;;  %v2209_v1 = vrot.slane %v2173_v54, 4  ;;  %v2210_v44 = vrot.slane %v2174_v13, 4  ;;  %7458 = vst [vmem:[#allocation28_spill] sm:$0xff] %v5879_v57  ;;  %v7459_v6 = vld [vmem:[#allocation6_spill] sm:$0xff]  ;;  %v7460_v13 = vld [vmem:[#allocation7_spill] sm:$0xff] }
 0x152   : > { %v2205_v42 = vsel %vm2044_vm3, %v2203_v24, %v2204_v50  ;;  %v2208_v33 = vsel %vm2044_vm3, %v2206_v62, %v2207_v14  ;;  %v2212_v35 = vrot.slane %v2175_v2, 4  ;;  %v2213_v30 = vrot.slane %v2176_v39, 4  ;;  %v5936_v24 = vld [vmem:[%s3993_s4 + $0x98] sm:$0x3f]  ;;  %v5941_v62 = vld [vmem:[%s3993_s4 + $0xa0] sm:$0xff] }
 0x153   : > { %v2211_v3 = vsel %vm2044_vm3, %v2209_v1, %v2210_v44  ;;  %v2215_v43 = vrot.slane %v2177_v11, 4  ;;  %v2216_v48 = vrot.slane %v2178_v55, 4  ;;  %v2218_v34 = vrot.slane %v2179_v5, 4  ;;  %7463 = vst [vmem:[#allocation30_spill] sm:$0xff] %v5936_v24  ;;  %7464 = vst [vmem:[#allocation20_spill] sm:$0xff] %v5941_v62 }
 0x154   : > { %v2214_v56 = vsel %vm2044_vm3, %v2212_v35, %v2213_v30  ;;  %v2219_v22 = vrot.slane %v2180_v49, 4  ;;  %v5883_v54 = vrot.slane %v5879_v57, %v7459_v6  ;;  %v5887_v2 = vrot.slane %v5879_v57, %v7460_v13 }
 0x155   : > { %v2217_v44 = vsel %vm2044_vm3, %v2215_v43, %v2216_v48  ;;  %v5891_v39 = vadd.f32 %v2199_v25, %v5735_v51  ;;  %v5894_v35 = vadd.f32 %v2202_v32, %v5738_v52  ;;  %v5897_v11 = vadd.f32 %v2205_v42, %v5741_v63  ;;  %v7465_v25 = vld [vmem:[#allocation4_spill] sm:$0xff] }
 0x156   : > { %7461 = vst [vmem:[#allocation18_spill] sm:$0xff] %v5887_v2  ;;  %v2220_v55 = vsel %vm2044_vm3, %v2218_v34, %v2219_v22  ;;  %v5901_v5 = vadd.f32 %v2208_v33, %v5745_v16  ;;  %v5904_v8 = vadd.f32 %v2211_v3, %v5748_v47  ;;  %v5907_v49 = vadd.f32 %v2214_v56, %v5751_v10 }
 0x157   : > { %v2241_v51 = vmul.f32 %v5696_v36, %v5849_v9  ;;  %v2242_v52 = vmul.f32 %v7448_v12, %v5849_v9  ;;  %v2243_v63 = vmul.f32 %v5703_v27, %v5849_v9  ;;  %v2244_v16 = vmul.f32 %v5768_v38, %v5849_v9 }
 0x158   : > { %7462 = vst [vmem:[#allocation29_spill] sm:$0xff] %v5907_v49  ;;  %v2245_v47 = vmul.f32 %v5535_v26, %v5849_v9  ;;  %v2246_v10 = vmul.f32 %v5775_v21, %v5849_v9  ;;  %v2247_v33 = vmul.f32 %v5617_v17, %v5849_v9  ;;  %v2248_v42 = vmul.f32 %v5782_v53, %v5849_v9 }
 0x159   : > { %v2249_v12 = vmul.f32 %v5622_v58, %v5849_v9  ;;  %v2250_v60 = vmul.f32 %v5789_v31, %v5849_v9  ;;  %v2251_v29 = vmul.f32 %v5627_v37, %v5849_v9  ;;  %v2252_v19 = vmul.f32 %v5865_v40, %v5849_v9 }
 0x15a   : > { %v2253_v20 = vmul.f32 %v7456_v59, %v5849_v9  ;;  %v2254_v50 = vmul.f32 %v5936_v24, %v5849_v9  ;;  %v2255_v14 = vmul.f32 %v5941_v62, %v5849_v9  ;;  %v2256_v32 = vmul.f32 %v7465_v25, %v5849_v9 }
 0x15b   : > { %v2273_v1 = vrot.slane %v2241_v51, 4  ;;  %v2274_v30 = vrot.slane %v2242_v52, 4  ;;  %v2276_v3 = vrot.slane %v2243_v63, 4  ;;  %v2277_v43 = vrot.slane %v2244_v16, 4 }
 0x15c   : > { %v2279_v48 = vrot.slane %v2245_v47, 4  ;;  %v2280_v34 = vrot.slane %v2246_v10, 4  ;;  %v2282_v56 = vrot.slane %v2247_v33, 4  ;;  %v2283_v22 = vrot.slane %v2248_v42, 4 }
 0x15d   : > { %v2275_v13 = vsel %vm2044_vm3, %v2273_v1, %v2274_v30  ;;  %v2278_v6 = vsel %vm2044_vm3, %v2276_v3, %v2277_v43  ;;  %v2285_v57 = vrot.slane %v2249_v12, 4  ;;  %v2286_v36 = vrot.slane %v2250_v60, 4 }
 0x15e   : > { %v2281_v28 = vsel %vm2044_vm3, %v2279_v48, %v2280_v34  ;;  %v2284_v2 = vsel %vm2044_vm3, %v2282_v56, %v2283_v22  ;;  %v2288_v49 = vrot.slane %v2251_v29, 4  ;;  %v2289_v9 = vrot.slane %v2252_v19, 4 }
 0x15f   : > { %v2287_v51 = vsel %vm2044_vm3, %v2285_v57, %v2286_v36  ;;  %v2291_v52 = vrot.slane %v2253_v20, 4  ;;  %v2292_v63 = vrot.slane %v2254_v50, 4  ;;  %v2294_v16 = vrot.slane %v2255_v14, 4  ;;  %v6008_v50 = vld [vmem:[%s3993_s4 + $0xb0] sm:$0xff] }
 0x160   : > { %v5953_v47 = vadd.f32 %v2217_v44, %v5803_v23  ;;  %v5956_v10 = vadd.f32 %v2220_v55, %v5806_v45  ;;  %v2290_v33 = vsel %vm2044_vm3, %v2288_v49, %v2289_v9  ;;  %v2295_v42 = vrot.slane %v2256_v32, 4  ;;  %7466 = vst [vmem:[#allocation5_spill] sm:$0xff] %v6008_v50  ;;  %v7467_v32 = vld [vmem:[#allocation24_spill] sm:$0xff] }
 0x161   : > { %v2293_v12 = vsel %vm2044_vm3, %v2291_v52, %v2292_v63  ;;  %v5961_v60 = vadd.f32 %v2275_v13, %v5811_v7  ;;  %v5964_v29 = vadd.f32 %v2278_v6, %v5814_v0  ;;  %v5967_v36 = vadd.f32 %v2281_v28, %v5817_v41 }
 0x162   : > { %v2296_v23 = vsel %vm2044_vm3, %v2294_v16, %v2295_v42  ;;  %v5971_v57 = vadd.f32 %v2284_v2, %v5821_v46  ;;  %v5974_v45 = vadd.f32 %v2287_v51, %v5824_v15  ;;  %v5977_v44 = vadd.f32 %v2290_v33, %v5834_v18 }
 0x163   : > { %v2317_v7 = vmul.f32 %v5703_v27, %v5883_v54  ;;  %v2318_v0 = vmul.f32 %v5768_v38, %v5883_v54  ;;  %v2319_v28 = vmul.f32 %v5535_v26, %v5883_v54  ;;  %v2320_v41 = vmul.f32 %v5775_v21, %v5883_v54 }
 0x164   : > { %v2321_v46 = vmul.f32 %v5617_v17, %v5883_v54  ;;  %v2322_v15 = vmul.f32 %v5782_v53, %v5883_v54  ;;  %v2323_v18 = vmul.f32 %v5622_v58, %v5883_v54  ;;  %v2324_v6 = vmul.f32 %v5789_v31, %v5883_v54 }
 0x165   : > { %v2325_v13 = vmul.f32 %v5627_v37, %v5883_v54  ;;  %v2326_v2 = vmul.f32 %v5865_v40, %v5883_v54  ;;  %v2327_v55 = vmul.f32 %v7456_v59, %v5883_v54  ;;  %v2328_v49 = vmul.f32 %v5936_v24, %v5883_v54 }
 0x166   : > { %v2329_v19 = vmul.f32 %v5941_v62, %v5883_v54  ;;  %v2330_v20 = vmul.f32 %v7465_v25, %v5883_v54  ;;  %v2331_v14 = vmul.f32 %v6008_v50, %v5883_v54  ;;  %v2332_v1 = vmul.f32 %v7467_v32, %v5883_v54 }
 0x167   : > { %v2349_v30 = vrot.slane %v2317_v7, 4  ;;  %v2350_v3 = vrot.slane %v2318_v0, 4  ;;  %v2352_v43 = vrot.slane %v2319_v28, 4  ;;  %v2353_v48 = vrot.slane %v2320_v41, 4 }
 0x168   : > { %v2355_v34 = vrot.slane %v2321_v46, 4  ;;  %v2356_v56 = vrot.slane %v2322_v15, 4  ;;  %v2358_v22 = vrot.slane %v2323_v18, 4  ;;  %v2359_v9 = vrot.slane %v2324_v6, 4 }
 0x169   : > { %v2351_v51 = vsel %vm2044_vm3, %v2349_v30, %v2350_v3  ;;  %v2354_v52 = vsel %vm2044_vm3, %v2352_v43, %v2353_v48  ;;  %v2361_v63 = vrot.slane %v2325_v13, 4  ;;  %v2362_v16 = vrot.slane %v2326_v2, 4 }
 0x16a   : > { %v2357_v33 = vsel %vm2044_vm3, %v2355_v34, %v2356_v56  ;;  %v2360_v42 = vsel %vm2044_vm3, %v2358_v22, %v2359_v9  ;;  %v2364_v38 = vrot.slane %v2327_v55, 4  ;;  %v2365_v54 = vrot.slane %v2328_v49, 4  ;;  %v6075_v22 = vld [vmem:[%s3993_s4 + $0xc0] sm:$0xff] }
 0x16b   : > { %v2363_v7 = vsel %vm2044_vm3, %v2361_v63, %v2362_v16  ;;  %v2367_v0 = vrot.slane %v2329_v19, 4  ;;  %v2368_v28 = vrot.slane %v2330_v20, 4  ;;  %v2370_v41 = vrot.slane %v2331_v14, 4  ;;  %7470 = vst [vmem:[#allocation34_spill] sm:$0xff] %v6075_v22 }
 0x16c   : > { %v6020_v46 = vadd.f32 %v2293_v12, %v5837_v61  ;;  %v6023_v15 = vadd.f32 %v2296_v23, %v5840_v4  ;;  %v2366_v18 = vsel %vm2044_vm3, %v2364_v38, %v2365_v54  ;;  %v2371_v6 = vrot.slane %v2332_v1, 4  ;;  %v7468_v38 = vld [vmem:[#allocation29_spill] sm:$0xff] }
 0x16d   : > { %v2369_v13 = vsel %vm2044_vm3, %v2367_v0, %v2368_v28  ;;  %v6028_v2 = vadd.f32 %v2351_v51, %v5891_v39  ;;  %v6031_v55 = vadd.f32 %v2354_v52, %v5894_v35  ;;  %v6034_v49 = vadd.f32 %v2357_v33, %v5897_v11  ;;  %v7469_v39 = vld [vmem:[#allocation18_spill] sm:$0xff]  ;;  %v7471_v51 = vld [vmem:[#allocation31_spill] sm:$0xff] }
 0x16e   : > { %v2372_v61 = vsel %vm2044_vm3, %v2370_v41, %v2371_v6  ;;  %v6038_v12 = vadd.f32 %v2360_v42, %v5901_v5  ;;  %v6041_v4 = vadd.f32 %v2363_v7, %v5904_v8  ;;  %v6044_v23 = vadd.f32 %v2366_v18, %v7468_v38 }
 0x16f   : > { %v2393_v19 = vmul.f32 %v5535_v26, %v7469_v39  ;;  %v2394_v35 = vmul.f32 %v5775_v21, %v7469_v39  ;;  %v2395_v11 = vmul.f32 %v5617_v17, %v7469_v39  ;;  %v2396_v5 = vmul.f32 %v5782_v53, %v7469_v39 }
 0x170   : > { %v2397_v8 = vmul.f32 %v5622_v58, %v7469_v39  ;;  %v2398_v20 = vmul.f32 %v5789_v31, %v7469_v39  ;;  %v2399_v14 = vmul.f32 %v5627_v37, %v7469_v39  ;;  %v2400_v1 = vmul.f32 %v5865_v40, %v7469_v39 }
 0x171   : > { %v2401_v30 = vmul.f32 %v7456_v59, %v7469_v39  ;;  %v2402_v3 = vmul.f32 %v5936_v24, %v7469_v39  ;;  %v2403_v43 = vmul.f32 %v5941_v62, %v7469_v39  ;;  %v2404_v48 = vmul.f32 %v7465_v25, %v7469_v39 }
 0x172   : > { %v2405_v34 = vmul.f32 %v6008_v50, %v7469_v39  ;;  %v2406_v56 = vmul.f32 %v7467_v32, %v7469_v39  ;;  %v2407_v9 = vmul.f32 %v6075_v22, %v7469_v39  ;;  %v2408_v52 = vmul.f32 %v7471_v51, %v7469_v39 }
 0x173   : > { %v2425_v63 = vrot.slane %v2393_v19, 4  ;;  %v2426_v16 = vrot.slane %v2394_v35, 4  ;;  %v2428_v33 = vrot.slane %v2395_v11, 4  ;;  %v2429_v42 = vrot.slane %v2396_v5, 4 }
 0x174   : > { %v2431_v54 = vrot.slane %v2397_v8, 4  ;;  %v2432_v7 = vrot.slane %v2398_v20, 4  ;;  %v2434_v0 = vrot.slane %v2399_v14, 4  ;;  %v2435_v28 = vrot.slane %v2400_v1, 4 }
 0x175   : > { %v2427_v41 = vsel %vm2044_vm3, %v2425_v63, %v2426_v16  ;;  %v2430_v18 = vsel %vm2044_vm3, %v2428_v33, %v2429_v42  ;;  %v2437_v6 = vrot.slane %v2401_v30, 4  ;;  %v2438_v38 = vrot.slane %v2402_v3, 4 }
 0x176   : > { %v2433_v21 = vsel %vm2044_vm3, %v2431_v54, %v2432_v7  ;;  %v2436_v26 = vsel %vm2044_vm3, %v2434_v0, %v2435_v28  ;;  %v2440_v27 = vrot.slane %v2403_v43, 4  ;;  %v2441_v39 = vrot.slane %v2404_v48, 4  ;;  %v6150_v28 = vld [vmem:[%s3993_s4 + $0xd0] sm:$0xff] }
 0x177   : > { %v2439_v19 = vsel %vm2044_vm3, %v2437_v6, %v2438_v38  ;;  %v2443_v35 = vrot.slane %v2405_v34, 4  ;;  %v2444_v11 = vrot.slane %v2406_v56, 4  ;;  %v2446_v5 = vrot.slane %v2407_v9, 4  ;;  %7476 = vst [vmem:[#allocation22_spill] sm:$0xff] %v6150_v28 }
 0x178   : > { %v6087_v8 = vadd.f32 %v2369_v13, %v5953_v47  ;;  %v6090_v20 = vadd.f32 %v2372_v61, %v5956_v10  ;;  %v2442_v14 = vsel %vm2044_vm3, %v2440_v27, %v2441_v39  ;;  %v2447_v1 = vrot.slane %v2408_v52, 4  ;;  %v6113_v27 = vld [vmem:[%s7129_s1 + $0x28] sm:$0xff] }
 0x179   : > { %v2445_v30 = vsel %vm2044_vm3, %v2443_v35, %v2444_v11  ;;  %v6095_v3 = vadd.f32 %v2427_v41, %v5961_v60  ;;  %v6098_v43 = vadd.f32 %v2430_v18, %v5964_v29  ;;  %v6101_v48 = vadd.f32 %v2433_v21, %v5967_v36  ;;  %7472 = vst [vmem:[#allocation10_spill] sm:$0xff] %v6113_v27  ;;  %v7473_v60 = vld [vmem:[#allocation8_spill] sm:$0xff]  ;;  %v6129_v36 = vld [vmem:[%s7129_s1] sm:$0xff]  ;;  %v7477_v18 = vld [vmem:[#allocation33_spill] sm:$0xff] }
 0x17a   : > { %v2448_v47 = vsel %vm2044_vm3, %v2446_v5, %v2447_v1  ;;  %v6105_v13 = vadd.f32 %v2436_v26, %v5971_v57  ;;  %v6108_v10 = vadd.f32 %v2439_v19, %v5974_v45  ;;  %v2468_v29 = vrot.slane %v6113_v27, %v7473_v60  ;;  %7474 = vst [vmem:[#allocation11_spill] sm:$0xff] %v6129_v36  ;;  %v7475_v57 = vld [vmem:[#allocation9_spill] sm:$0xff] }
 0x17b   : > { %v6118_v61 = vadd.f32 %v2442_v14, %v5977_v44  ;;  %v6121_v21 = vadd.f32 %v2445_v30, %v6020_v46  ;;  %v6124_v26 = vadd.f32 %v2448_v47, %v6023_v15  ;;  %v6133_v45 = vrot.slane %v6129_v36, %v7475_v57 }
 0x17c   : > { %v2469_v34 = vmul.f32 %v5617_v17, %v2468_v29  ;;  %v2470_v44 = vmul.f32 %v5782_v53, %v2468_v29  ;;  %v2471_v46 = vmul.f32 %v5622_v58, %v2468_v29  ;;  %v2472_v56 = vmul.f32 %v5789_v31, %v2468_v29 }
 0x17d   : > { %v2473_v15 = vmul.f32 %v5627_v37, %v2468_v29  ;;  %v2474_v9 = vmul.f32 %v5865_v40, %v2468_v29  ;;  %v2475_v52 = vmul.f32 %v7456_v59, %v2468_v29  ;;  %v2476_v63 = vmul.f32 %v5936_v24, %v2468_v29 }
 0x17e   : > { %v2477_v16 = vmul.f32 %v5941_v62, %v2468_v29  ;;  %v2478_v33 = vmul.f32 %v7465_v25, %v2468_v29  ;;  %v2479_v42 = vmul.f32 %v6008_v50, %v2468_v29  ;;  %v2480_v54 = vmul.f32 %v7467_v32, %v2468_v29 }
 0x17f   : > { %v2481_v7 = vmul.f32 %v6075_v22, %v2468_v29  ;;  %v2482_v0 = vmul.f32 %v7471_v51, %v2468_v29  ;;  %v2483_v41 = vmul.f32 %v6150_v28, %v2468_v29  ;;  %v2484_v6 = vmul.f32 %v7477_v18, %v2468_v29 }
 0x180   : > { %v2501_v38 = vrot.slane %v2469_v34, 4  ;;  %v2502_v39 = vrot.slane %v2470_v44, 4  ;;  %v2504_v19 = vrot.slane %v2471_v46, 4  ;;  %v2505_v35 = vrot.slane %v2472_v56, 4 }
 0x181   : > { %v2507_v11 = vrot.slane %v2473_v15, 4  ;;  %v2508_v25 = vrot.slane %v2474_v9, 4  ;;  %v2510_v5 = vrot.slane %v2475_v52, 4  ;;  %v2511_v14 = vrot.slane %v2476_v63, 4  ;;  %v6166_v63 = vld [vmem:[%s7129_s1 + $0x8] sm:$0xff] }
 0x182   : > { %v2503_v32 = vsel %vm2044_vm3, %v2501_v38, %v2502_v39  ;;  %v2506_v1 = vsel %vm2044_vm3, %v2504_v19, %v2505_v35  ;;  %v2513_v30 = vrot.slane %v2477_v16, 4  ;;  %v2514_v51 = vrot.slane %v2478_v33, 4  ;;  %7478 = vst [vmem:[#allocation19_spill] sm:$0xff] %v6166_v63  ;;  %v7479_v16 = vld [vmem:[#allocation12_spill] sm:$0xff]  ;;  %v6205_v38 = vld [vmem:[%s3993_s4 + $0x18] sm:$0x3f] }
 0x183   : > { %v2509_v47 = vsel %vm2044_vm3, %v2507_v11, %v2508_v25  ;;  %v2512_v28 = vsel %vm2044_vm3, %v2510_v5, %v2511_v14  ;;  %v2516_v57 = vrot.slane %v2479_v42, 4  ;;  %v2517_v29 = vrot.slane %v2480_v54, 4  ;;  %7485 = vst [vmem:[#allocation31_spill] sm:$0xff] %v6205_v38  ;;  %v6212_v19 = vld [vmem:[%s3993_s4 + $0x28] sm:$0x3f]  ;;  %v7488_v11 = vld [vmem:[#allocation25_spill] sm:$0xff] }
 0x184   : > { %v2515_v34 = vsel %vm2044_vm3, %v2513_v30, %v2514_v51  ;;  %v2519_v44 = vrot.slane %v2481_v7, 4  ;;  %v2520_v46 = vrot.slane %v2482_v0, 4  ;;  %v2522_v56 = vrot.slane %v2483_v41, 4  ;;  %7487 = vst [vmem:[#allocation33_spill] sm:$0xff] %v6212_v19  ;;  %v6219_v5 = vld [vmem:[%s3993_s4 + $0x38] sm:$0x3f] }
 0x185   : > { %v2518_v15 = vsel %vm2044_vm3, %v2516_v57, %v2517_v29  ;;  %v2523_v9 = vrot.slane %v2484_v6, 4  ;;  %v6161_v52 = vadd.f32 %v2503_v32, %v6028_v2  ;;  %v6170_v33 = vrot.slane %v6166_v63, %v7479_v16  ;;  %v6198_v6 = vld [vmem:[%s3993_s4 + $0x8] sm:$0x3f]  ;;  %v7490_v32 = vld [vmem:[#allocation26_spill] sm:$0xff]  ;;  %v7491_v30 = vld [vmem:[#allocation16_spill] sm:$0xff] }
 0x186   : > { %v2521_v42 = vsel %vm2044_vm3, %v2519_v44, %v2520_v46  ;;  %v6174_v54 = vadd.f32 %v2506_v1, %v6031_v55  ;;  %v6177_v57 = vadd.f32 %v2509_v47, %v6034_v49  ;;  %v6180_v2 = vadd.f32 %v2512_v28, %v6038_v12  ;;  %v6193_v55 = vld [vmem:[%s3993_s4] sm:$0xff]  ;;  %7483 = vst [vmem:[#allocation18_spill] sm:$0xff] %v6198_v6  ;;  %v7484_v28 = vld [vmem:[#allocation32_spill] sm:$0xff]  ;;  %v7492_v47 = vld [vmem:[#allocation27_spill] sm:$0xff] }
 0x187   : > { %v2524_v7 = vsel %vm2044_vm3, %v2522_v56, %v2523_v9  ;;  %v6184_v0 = vadd.f32 %v2515_v34, %v6041_v4  ;;  %v6187_v41 = vadd.f32 %v2518_v15, %v6044_v23  ;;  %v6190_v18 = vadd.f32 %v2521_v42, %v6087_v8  ;;  %7482 = vst [vmem:[#allocation29_spill] sm:$0xff] %v6193_v55  ;;  %v7486_v8 = vld [vmem:[#allocation3_spill] sm:$0xff]  ;;  %v7493_v34 = vld [vmem:[#allocation17_spill] sm:$0xff] }
 0x188   : > { %v2545_v49 = vmul.f32 %v6193_v55, %v6133_v45  ;;  %v2546_v12 = vmul.f32 %v6198_v6, %v6133_v45  ;;  %v2547_v4 = vmul.f32 %v7484_v28, %v6133_v45  ;;  %v2548_v23 = vmul.f32 %v6205_v38, %v6133_v45  ;;  %7489 = vst [vmem:[#allocation32_spill] sm:$0xff] %v6219_v5 }
 0x189   : > { %7480 = vst [vmem:[#allocation4_spill] sm:$0xff] %v6187_v41  ;;  %7481 = vst [vmem:[#allocation24_spill] sm:$0xff] %v6190_v18  ;;  %v2549_v39 = vmul.f32 %v7486_v8, %v6133_v45  ;;  %v2550_v35 = vmul.f32 %v6212_v19, %v6133_v45  ;;  %v2551_v25 = vmul.f32 %v7488_v11, %v6133_v45 }
 0x18a   : > { %v2552_v14 = vmul.f32 %v6219_v5, %v6133_v45  ;;  %v2553_v1 = vmul.f32 %v7490_v32, %v6133_v45  ;;  %v2554_v51 = vmul.f32 %v7491_v30, %v6133_v45  ;;  %v2555_v29 = vmul.f32 %v7492_v47, %v6133_v45 }
 0x18b   : > { %v2556_v44 = vmul.f32 %v7493_v34, %v6133_v45  ;;  %v2557_v46 = vmul.f32 %v5617_v17, %v6133_v45  ;;  %v2558_v56 = vmul.f32 %v5782_v53, %v6133_v45  ;;  %v2559_v15 = vmul.f32 %v5622_v58, %v6133_v45 }
 0x18c   : > { %v2560_v9 = vmul.f32 %v5789_v31, %v6133_v45  ;;  %v2578_v42 = vrot.slane %v2545_v49, 5  ;;  %v2579_v16 = vrot.slane %v2546_v12, 5  ;;  %v2581_v6 = vrot.slane %v2547_v4, 5 }
 0x18d   : > { %v2582_v55 = vrot.slane %v2548_v23, 5  ;;  %v2584_v63 = vrot.slane %v2549_v39, 5  ;;  %v2585_v36 = vrot.slane %v2550_v35, 5  ;;  %v2587_v60 = vrot.slane %v2551_v25, 5 }
 0x18e   : > { %v2588_v22 = vrot.slane %v2552_v14, 5  ;;  %v2580_v50 = vsel %vm2577_vm4, %v2578_v42, %v2579_v16  ;;  %v2590_v27 = vrot.slane %v2553_v1, 5  ;;  %v2591_v24 = vrot.slane %v2554_v51, 5 }
 0x18f   : > { %v2583_v62 = vsel %vm2577_vm4, %v2581_v6, %v2582_v55  ;;  %v2586_v59 = vsel %vm2577_vm4, %v2584_v63, %v2585_v36  ;;  %v2593_v41 = vrot.slane %v2555_v29, 5  ;;  %v2594_v45 = vrot.slane %v2556_v44, 5 }
 0x190   : > { %v2589_v18 = vsel %vm2577_vm4, %v2587_v60, %v2588_v22  ;;  %v2592_v49 = vsel %vm2577_vm4, %v2590_v27, %v2591_v24  ;;  %v2596_v12 = vrot.slane %v2557_v46, 5  ;;  %v2597_v4 = vrot.slane %v2558_v56, 5 }
 0x191   : > { %v2599_v23 = vrot.slane %v2559_v15, 5  ;;  %v2540_v39 = vadd.f32 %v2524_v7, %v6090_v20  ;;  %v2595_v35 = vsel %vm2577_vm4, %v2593_v41, %v2594_v45  ;;  %v2600_v16 = vrot.slane %v2560_v9, 5 }
 0x192   : > { %v6247_v55 = vadd.f32 %v2580_v50, %v6095_v3  ;;  %v2598_v6 = vsel %vm2577_vm4, %v2596_v12, %v2597_v4  ;;  %v6251_v36 = vadd.f32 %v2583_v62, %v6098_v43  ;;  %v6254_v22 = vadd.f32 %v2586_v59, %v6101_v48 }
 0x193   : > { %v6257_v24 = vadd.f32 %v2589_v18, %v6105_v13  ;;  %v2601_v27 = vsel %vm2577_vm4, %v2599_v23, %v2600_v16  ;;  %v6261_v20 = vadd.f32 %v2592_v49, %v6108_v10  ;;  %v6264_v60 = vadd.f32 %v2595_v35, %v6118_v61 }
 0x194   : > { %v6267_v50 = vadd.f32 %v2598_v6, %v6121_v21  ;;  %v2622_v62 = vmul.f32 %v7484_v28, %v6170_v33  ;;  %v2623_v59 = vmul.f32 %v6205_v38, %v6170_v33  ;;  %v2624_v3 = vmul.f32 %v7486_v8, %v6170_v33 }
 0x195   : > { %v2625_v43 = vmul.f32 %v6212_v19, %v6170_v33  ;;  %v2626_v48 = vmul.f32 %v7488_v11, %v6170_v33  ;;  %v2627_v13 = vmul.f32 %v6219_v5, %v6170_v33  ;;  %v2628_v10 = vmul.f32 %v7490_v32, %v6170_v33 }
 0x196   : > { %v2629_v61 = vmul.f32 %v7491_v30, %v6170_v33  ;;  %v2630_v21 = vmul.f32 %v7492_v47, %v6170_v33  ;;  %v2631_v63 = vmul.f32 %v7493_v34, %v6170_v33  ;;  %v2632_v7 = vmul.f32 %v5617_v17, %v6170_v33 }
 0x197   : > { %v2633_v41 = vmul.f32 %v5782_v53, %v6170_v33  ;;  %v2634_v18 = vmul.f32 %v5622_v58, %v6170_v33  ;;  %v2635_v28 = vmul.f32 %v5789_v31, %v6170_v33  ;;  %v2636_v25 = vmul.f32 %v5627_v37, %v6170_v33 }
 0x198   : > { %v2637_v14 = vmul.f32 %v5865_v40, %v6170_v33  ;;  %v2654_v1 = vrot.slane %v2622_v62, 5  ;;  %v2655_v51 = vrot.slane %v2623_v59, 5  ;;  %v2657_v47 = vrot.slane %v2624_v3, 5 }
 0x199   : > { %v2658_v29 = vrot.slane %v2625_v43, 5  ;;  %v2660_v44 = vrot.slane %v2626_v48, 5  ;;  %v2661_v46 = vrot.slane %v2627_v13, 5  ;;  %v2663_v56 = vrot.slane %v2628_v10, 5 }
 0x19a   : > { %v2664_v15 = vrot.slane %v2629_v61, 5  ;;  %v2656_v9 = vsel %vm2577_vm4, %v2654_v1, %v2655_v51  ;;  %v2666_v45 = vrot.slane %v2630_v21, 5  ;;  %v2667_v49 = vrot.slane %v2631_v63, 5  ;;  %v7494_v63 = vld [vmem:[#allocation4_spill] sm:$0xff]  ;;  %v7500_v1 = vld [vmem:[#allocation15_spill] sm:$0xff] }
 0x19b   : > { %v2659_v42 = vsel %vm2577_vm4, %v2657_v47, %v2658_v29  ;;  %v2662_v12 = vsel %vm2577_vm4, %v2660_v44, %v2661_v46  ;;  %v2669_v23 = vrot.slane %v2632_v7, 5  ;;  %v2670_v33 = vrot.slane %v2633_v41, 5  ;;  %v7495_v7 = vld [vmem:[#allocation13_spill] sm:$0xff]  ;;  %v7496_v41 = vld [vmem:[#allocation23_spill] sm:$0xff]  ;;  %v7501_v51 = vld [vmem:[#allocation28_spill] sm:$0xff] }
 0x19c   : > { %v2665_v4 = vsel %vm2577_vm4, %v2663_v56, %v2664_v15  ;;  %v2668_v35 = vsel %vm2577_vm4, %v2666_v45, %v2667_v49  ;;  %v2672_v16 = vrot.slane %v2634_v18, 5  ;;  %v2673_v6 = vrot.slane %v2635_v28, 5  ;;  %v6352_v15 = vld [vmem:[%s3993_s4 + $0x50] sm:$0xff] }
 0x19d   : > { %v2675_v62 = vrot.slane %v2636_v25, 5  ;;  %v6307_v59 = vadd.f32 %v2601_v27, %v6124_v26  ;;  %v2671_v3 = vsel %vm2577_vm4, %v2669_v23, %v2670_v33  ;;  %v2676_v43 = vrot.slane %v2637_v14, 5  ;;  %v7498_v25 = vld [vmem:[#allocation14_spill] sm:$0xff]  ;;  %v7502_v33 = vld [vmem:[#allocation21_spill] sm:$0xff] }
 0x19e   : > { %v6311_v48 = vadd.f32 %v2656_v9, %v6161_v52  ;;  %v2674_v13 = vsel %vm2577_vm4, %v2672_v16, %v2673_v6  ;;  %v6315_v10 = vadd.f32 %v2659_v42, %v6174_v54  ;;  %v6318_v61 = vadd.f32 %v2662_v12, %v6177_v57  ;;  %v7497_v54 = vld [vmem:[#allocation24_spill] sm:$0xff]  ;;  %v7499_v14 = vld [vmem:[#allocation2_spill] sm:$0xff] }
 0x19f   : > { %v6321_v21 = vadd.f32 %v2665_v4, %v6180_v2  ;;  %v2677_v26 = vsel %vm2577_vm4, %v2675_v62, %v2676_v43  ;;  %v6325_v27 = vadd.f32 %v2668_v35, %v6184_v0  ;;  %v6328_v52 = vadd.f32 %v2671_v3, %v7494_v63  ;;  %v7503_v16 = vld [vmem:[#allocation30_spill] sm:$0xff] }
 0x1a0   : > { %v2697_v18 = vrot.slane %v7496_v41, %v7495_v7  ;;  %v6333_v28 = vadd.f32 %v2674_v13, %v7497_v54  ;;  %v6335_v57 = vadd.f32 %v2677_v26, %v2540_v39  ;;  %v6339_v2 = vrot.slane %v7499_v14, %v7498_v25 }
 0x1a1   : > { %v6343_v47 = vrot.slane %v7501_v51, %v7500_v1 }
 0x1a2   : > { %v2698_v0 = vmul.f32 %v7486_v8, %v2697_v18  ;;  %v2699_v29 = vmul.f32 %v6212_v19, %v2697_v18  ;;  %v2700_v44 = vmul.f32 %v7488_v11, %v2697_v18  ;;  %v2701_v46 = vmul.f32 %v6219_v5, %v2697_v18 }
 0x1a3   : > { %v2702_v56 = vmul.f32 %v7490_v32, %v2697_v18  ;;  %v2703_v39 = vmul.f32 %v7491_v30, %v2697_v18  ;;  %v2704_v9 = vmul.f32 %v6352_v15, %v2697_v18  ;;  %v2705_v42 = vmul.f32 %v7493_v34, %v2697_v18 }
 0x1a4   : > { %v2706_v45 = vmul.f32 %v5617_v17, %v2697_v18  ;;  %v2707_v8 = vmul.f32 %v5782_v53, %v2697_v18  ;;  %v2708_v49 = vmul.f32 %v5622_v58, %v2697_v18  ;;  %v2709_v12 = vmul.f32 %v5789_v31, %v2697_v18 }
 0x1a5   : > { %v2710_v4 = vmul.f32 %v5627_v37, %v2697_v18  ;;  %v2711_v23 = vmul.f32 %v5865_v40, %v2697_v18  ;;  %v2712_v35 = vmul.f32 %v7502_v33, %v2697_v18  ;;  %v2713_v6 = vmul.f32 %v7503_v16, %v2697_v18 }
 0x1a6   : > { %v2730_v62 = vrot.slane %v2698_v0, 5  ;;  %v2731_v3 = vrot.slane %v2699_v29, 5  ;;  %v2733_v43 = vrot.slane %v2700_v44, 5  ;;  %v2734_v13 = vrot.slane %v2701_v46, 5 }
 0x1a7   : > { %v2736_v26 = vrot.slane %v2702_v56, 5  ;;  %v2737_v17 = vrot.slane %v2703_v39, 5  ;;  %v2739_v63 = vrot.slane %v2704_v9, 5  ;;  %v2740_v41 = vrot.slane %v2705_v42, 5  ;;  %v7504_v42 = vld [vmem:[#allocation6_spill] sm:$0xff] }
 0x1a8   : > { %v2732_v58 = vsel %vm2577_vm4, %v2730_v62, %v2731_v3  ;;  %v2735_v54 = vsel %vm2577_vm4, %v2733_v43, %v2734_v13  ;;  %v2742_v14 = vrot.slane %v2706_v45, 5  ;;  %v2743_v37 = vrot.slane %v2707_v8, 5  ;;  %v7505_v45 = vld [vmem:[#allocation10_spill] sm:$0xff]  ;;  %v6417_v43 = vld [vmem:[%s3993_s4 + $0x70] sm:$0xff] }
 0x1a9   : > { %v2738_v51 = vsel %vm2577_vm4, %v2736_v26, %v2737_v17  ;;  %v2741_v33 = vsel %vm2577_vm4, %v2739_v63, %v2740_v41  ;;  %v2745_v1 = vrot.slane %v2708_v49, 5  ;;  %v2746_v18 = vrot.slane %v2709_v12, 5  ;;  %v6424_v26 = vld [vmem:[%s3993_s4 + $0x80] sm:$0xff]  ;;  %v6431_v41 = vld [vmem:[%s3993_s4 + $0x90] sm:$0xff] }
 0x1aa   : > { %v2744_v0 = vsel %vm2577_vm4, %v2742_v14, %v2743_v37  ;;  %v2748_v29 = vrot.slane %v2710_v4, 5  ;;  %v2749_v44 = vrot.slane %v2711_v23, 5  ;;  %v2751_v46 = vrot.slane %v2712_v35, 5  ;;  %7506 = vst [vmem:[#allocation3_spill] sm:$0xff] %v6431_v41  ;;  %v7507_v14 = vld [vmem:[#allocation20_spill] sm:$0xff] }
 0x1ab   : > { %v2747_v56 = vsel %vm2577_vm4, %v2745_v1, %v2746_v18  ;;  %v2752_v39 = vrot.slane %v2713_v6, 5  ;;  %v6371_v9 = vadd.f32 %v2732_v58, %v6247_v55  ;;  %v6375_v8 = vrot.slane %v7505_v45, %v7504_v42  ;;  %v6410_v6 = vld [vmem:[%s3993_s4 + $0x60] sm:$0xff] }
 0x1ac   : > { %v2750_v62 = vsel %vm2577_vm4, %v2748_v29, %v2749_v44  ;;  %v6379_v49 = vadd.f32 %v2735_v54, %v6251_v36  ;;  %v6382_v12 = vadd.f32 %v2738_v51, %v6254_v22  ;;  %v6385_v1 = vadd.f32 %v2741_v33, %v6257_v24  ;;  %v6440_v51 = vld [vmem:[%s3993_s4 + $0xa8] sm:$0x3f] }
 0x1ad   : > { %v2753_v55 = vsel %vm2577_vm4, %v2751_v46, %v2752_v39  ;;  %v6389_v4 = vadd.f32 %v2744_v0, %v6261_v20  ;;  %v6392_v23 = vadd.f32 %v2747_v56, %v6264_v60  ;;  %v6395_v35 = vadd.f32 %v2750_v62, %v6267_v50  ;;  %7508 = vst [vmem:[#allocation25_spill] sm:$0xff] %v6440_v51 }
 0x1ae   : > { %v2774_v36 = vmul.f32 %v7488_v11, %v6339_v2  ;;  %v2775_v22 = vmul.f32 %v6219_v5, %v6339_v2  ;;  %v2776_v24 = vmul.f32 %v7490_v32, %v6339_v2  ;;  %v2777_v20 = vmul.f32 %v7491_v30, %v6339_v2 }
 0x1af   : > { %v2778_v60 = vmul.f32 %v6352_v15, %v6339_v2  ;;  %v2779_v50 = vmul.f32 %v7493_v34, %v6339_v2  ;;  %v2780_v11 = vmul.f32 %v6410_v6, %v6339_v2  ;;  %v2781_v3 = vmul.f32 %v5782_v53, %v6339_v2 }
 0x1b0   : > { %v2782_v32 = vmul.f32 %v6417_v43, %v6339_v2  ;;  %v2783_v13 = vmul.f32 %v5789_v31, %v6339_v2  ;;  %v2784_v17 = vmul.f32 %v6424_v26, %v6339_v2  ;;  %v2785_v63 = vmul.f32 %v5865_v40, %v6339_v2 }
 0x1b1   : > { %v2786_v58 = vmul.f32 %v6431_v41, %v6339_v2  ;;  %v2787_v54 = vmul.f32 %v7503_v16, %v6339_v2  ;;  %v2788_v37 = vmul.f32 %v7507_v14, %v6339_v2  ;;  %v2789_v33 = vmul.f32 %v6440_v51, %v6339_v2 }
 0x1b2   : > { %v2806_v18 = vrot.slane %v2774_v36, 5  ;;  %v2807_v0 = vrot.slane %v2775_v22, 5  ;;  %v2809_v29 = vrot.slane %v2776_v24, 5  ;;  %v2810_v44 = vrot.slane %v2777_v20, 5 }
 0x1b3   : > { %v2812_v46 = vrot.slane %v2778_v60, 5  ;;  %v2813_v56 = vrot.slane %v2779_v50, 5  ;;  %v2815_v39 = vrot.slane %v2780_v11, 5  ;;  %v2816_v42 = vrot.slane %v2781_v3, 5 }
 0x1b4   : > { %v2808_v62 = vsel %vm2577_vm4, %v2806_v18, %v2807_v0  ;;  %v2811_v25 = vsel %vm2577_vm4, %v2809_v29, %v2810_v44  ;;  %v2818_v7 = vrot.slane %v2782_v32, 5  ;;  %v2819_v5 = vrot.slane %v2783_v13, 5 }
 0x1b5   : > { %v2814_v19 = vsel %vm2577_vm4, %v2812_v46, %v2813_v56  ;;  %v2817_v38 = vsel %vm2577_vm4, %v2815_v39, %v2816_v42  ;;  %v2821_v45 = vrot.slane %v2784_v17, 5  ;;  %v2822_v2 = vrot.slane %v2785_v63, 5  ;;  %v6477_v17 = vld [vmem:[%s3993_s4 + $0x40] sm:$0xff] }
 0x1b6   : > { %v2820_v36 = vsel %vm2577_vm4, %v2818_v7, %v2819_v5  ;;  %v2824_v22 = vrot.slane %v2786_v58, 5  ;;  %v2825_v24 = vrot.slane %v2787_v54, 5  ;;  %v2827_v20 = vrot.slane %v2788_v37, 5  ;;  %v6510_v37 = vld [vmem:[%s3993_s4 + $0xb8] sm:$0x3f] }
 0x1b7   : > { %v6450_v60 = vadd.f32 %v2753_v55, %v6307_v59  ;;  %v2823_v50 = vsel %vm2577_vm4, %v2821_v45, %v2822_v2  ;;  %v2828_v11 = vrot.slane %v2789_v33, 5  ;;  %v6454_v3 = vadd.f32 %v2808_v62, %v6311_v48  ;;  %7510 = vst [vmem:[#allocation26_spill] sm:$0xff] %v6510_v37 }
 0x1b8   : > { %v2826_v32 = vsel %vm2577_vm4, %v2824_v22, %v2825_v24  ;;  %v6458_v13 = vadd.f32 %v2811_v25, %v6315_v10  ;;  %v6461_v5 = vadd.f32 %v2814_v19, %v6318_v61  ;;  %v6464_v7 = vadd.f32 %v2817_v38, %v6321_v21 }
 0x1b9   : > { %v2829_v59 = vsel %vm2577_vm4, %v2827_v20, %v2828_v11  ;;  %v6468_v55 = vadd.f32 %v2820_v36, %v6325_v27  ;;  %v6471_v45 = vadd.f32 %v2823_v50, %v6328_v52  ;;  %v6474_v48 = vadd.f32 %v2826_v32, %v6333_v28 }
 0x1ba   : > { %v2850_v19 = vmul.f32 %v6477_v17, %v6343_v47  ;;  %v2851_v38 = vmul.f32 %v7491_v30, %v6343_v47  ;;  %v2852_v10 = vmul.f32 %v6352_v15, %v6343_v47  ;;  %v2853_v61 = vmul.f32 %v7493_v34, %v6343_v47 }
 0x1bb   : > { %v2854_v21 = vmul.f32 %v6410_v6, %v6343_v47  ;;  %v2855_v27 = vmul.f32 %v5782_v53, %v6343_v47  ;;  %v2856_v52 = vmul.f32 %v6417_v43, %v6343_v47  ;;  %v2857_v28 = vmul.f32 %v5789_v31, %v6343_v47  ;;  %v7509_v31 = vld [vmem:[#allocation5_spill] sm:$0xff] }
 0x1bc   : > { %v2858_v30 = vmul.f32 %v6424_v26, %v6343_v47  ;;  %v2859_v25 = vmul.f32 %v5865_v40, %v6343_v47  ;;  %v2860_v34 = vmul.f32 %v6431_v41, %v6343_v47  ;;  %v2861_v63 = vmul.f32 %v7503_v16, %v6343_v47 }
 0x1bd   : > { %v2862_v53 = vmul.f32 %v7507_v14, %v6343_v47  ;;  %v2863_v58 = vmul.f32 %v6440_v51, %v6343_v47  ;;  %v2864_v54 = vmul.f32 %v7509_v31, %v6343_v47  ;;  %v2865_v33 = vmul.f32 %v6510_v37, %v6343_v47 }
 0x1be   : > { %v2882_v18 = vrot.slane %v2850_v19, 5  ;;  %v2883_v0 = vrot.slane %v2851_v38, 5  ;;  %v2885_v29 = vrot.slane %v2852_v10, 5  ;;  %v2886_v44 = vrot.slane %v2853_v61, 5 }
 0x1bf   : > { %v2888_v46 = vrot.slane %v2854_v21, 5  ;;  %v2889_v56 = vrot.slane %v2855_v27, 5  ;;  %v2891_v39 = vrot.slane %v2856_v52, 5  ;;  %v2892_v42 = vrot.slane %v2857_v28, 5 }
 0x1c0   : > { %v2884_v62 = vsel %vm2577_vm4, %v2882_v18, %v2883_v0  ;;  %v2887_v2 = vsel %vm2577_vm4, %v2885_v29, %v2886_v44  ;;  %v2894_v36 = vrot.slane %v2858_v30, 5  ;;  %v2895_v22 = vrot.slane %v2859_v25, 5 }
 0x1c1   : > { %v2890_v24 = vsel %vm2577_vm4, %v2888_v46, %v2889_v56  ;;  %v2893_v20 = vsel %vm2577_vm4, %v2891_v39, %v2892_v42  ;;  %v2897_v50 = vrot.slane %v2860_v34, 5  ;;  %v2898_v47 = vrot.slane %v2861_v63, 5  ;;  %v6549_v63 = vld [vmem:[%s3993_s4 + $0x58] sm:$0x3f]  ;;  %v6586_v42 = vld [vmem:[%s3993_s4 + $0xc8] sm:$0x3f] }
 0x1c2   : > { %v2896_v11 = vsel %vm2577_vm4, %v2894_v36, %v2895_v22  ;;  %v2900_v32 = vrot.slane %v2862_v53, 5  ;;  %v2901_v19 = vrot.slane %v2863_v58, 5  ;;  %v2903_v38 = vrot.slane %v2864_v54, 5  ;;  %7511 = vst [vmem:[#allocation16_spill] sm:$0xff] %v6549_v63  ;;  %v6563_v53 = vld [vmem:[%s3993_s4 + $0x78] sm:$0x3f] }
 0x1c3   : > { %v6520_v10 = vadd.f32 %v2829_v59, %v6335_v57  ;;  %v2899_v61 = vsel %vm2577_vm4, %v2897_v50, %v2898_v47  ;;  %v2904_v21 = vrot.slane %v2865_v33, 5  ;;  %v6524_v27 = vadd.f32 %v2884_v62, %v6371_v9  ;;  %7513 = vst [vmem:[#allocation27_spill] sm:$0xff] %v6586_v42 }
 0x1c4   : > { %v2902_v52 = vsel %vm2577_vm4, %v2900_v32, %v2901_v19  ;;  %v6528_v28 = vadd.f32 %v2887_v2, %v6379_v49  ;;  %v6531_v30 = vadd.f32 %v2890_v24, %v6382_v12  ;;  %v6534_v25 = vadd.f32 %v2893_v20, %v6385_v1 }
 0x1c5   : > { %v2905_v57 = vsel %vm2577_vm4, %v2903_v38, %v2904_v21  ;;  %v6538_v59 = vadd.f32 %v2896_v11, %v6389_v4  ;;  %v6541_v9 = vadd.f32 %v2899_v61, %v6392_v23  ;;  %v6544_v34 = vadd.f32 %v2902_v52, %v6395_v35  ;;  %v6556_v4 = vld [vmem:[%s3993_s4 + $0x68] sm:$0x3f] }
 0x1c6   : > { %v2926_v49 = vmul.f32 %v6352_v15, %v6375_v8  ;;  %v2927_v12 = vmul.f32 %v6549_v63, %v6375_v8  ;;  %v2928_v1 = vmul.f32 %v6410_v6, %v6375_v8  ;;  %v2929_v23 = vmul.f32 %v6556_v4, %v6375_v8 }
 0x1c7   : > { %v2930_v35 = vmul.f32 %v6417_v43, %v6375_v8  ;;  %v2931_v58 = vmul.f32 %v6563_v53, %v6375_v8  ;;  %v2932_v54 = vmul.f32 %v6424_v26, %v6375_v8  ;;  %v2933_v33 = vmul.f32 %v5865_v40, %v6375_v8  ;;  %v7512_v40 = vld [vmem:[#allocation34_spill] sm:$0xff] }
 0x1c8   : > { %v2934_v18 = vmul.f32 %v6431_v41, %v6375_v8  ;;  %v2935_v0 = vmul.f32 %v7503_v16, %v6375_v8  ;;  %v2936_v29 = vmul.f32 %v7507_v14, %v6375_v8  ;;  %v2937_v44 = vmul.f32 %v6440_v51, %v6375_v8 }
 0x1c9   : > { %v2938_v46 = vmul.f32 %v7509_v31, %v6375_v8  ;;  %v2939_v56 = vmul.f32 %v6510_v37, %v6375_v8  ;;  %v2940_v39 = vmul.f32 %v7512_v40, %v6375_v8  ;;  %v2941_v62 = vmul.f32 %v6586_v42, %v6375_v8 }
 0x1ca   : > { %v2958_v2 = vrot.slane %v2926_v49, 5  ;;  %v2959_v36 = vrot.slane %v2927_v12, 5  ;;  %v2961_v22 = vrot.slane %v2928_v1, 5  ;;  %v2962_v24 = vrot.slane %v2929_v23, 5 }
 0x1cb   : > { %v2964_v20 = vrot.slane %v2930_v35, 5  ;;  %v2965_v50 = vrot.slane %v2931_v58, 5  ;;  %v2967_v47 = vrot.slane %v2932_v54, 5  ;;  %v2968_v11 = vrot.slane %v2933_v33, 5 }
 0x1cc   : > { %v2960_v32 = vsel %vm2577_vm4, %v2958_v2, %v2959_v36  ;;  %v2963_v19 = vsel %vm2577_vm4, %v2961_v22, %v2962_v24  ;;  %v2970_v38 = vrot.slane %v2934_v18, 5  ;;  %v2971_v61 = vrot.slane %v2935_v0, 5  ;;  %v7518_v2 = vld [vmem:[#allocation9_spill] sm:$0xff]  ;;  %v7519_v36 = vld [vmem:[#allocation19_spill] sm:$0xff] }
 0x1cd   : > { %v2966_v21 = vsel %vm2577_vm4, %v2964_v20, %v2965_v50  ;;  %v2969_v52 = vsel %vm2577_vm4, %v2967_v47, %v2968_v11  ;;  %v2973_v63 = vrot.slane %v2936_v29, 5  ;;  %v2974_v8 = vrot.slane %v2937_v44, 5  ;;  %v6641_v20 = vld [vmem:[%s3993_s4 + $0x88] sm:$0x3f] }
 0x1ce   : > { %v2972_v49 = vsel %vm2577_vm4, %v2970_v38, %v2971_v61  ;;  %v2976_v12 = vrot.slane %v2938_v46, 5  ;;  %v2977_v1 = vrot.slane %v2939_v56, 5  ;;  %v2979_v23 = vrot.slane %v2940_v39, 5  ;;  %v7515_v46 = vld [vmem:[#allocation10_spill] sm:$0xff]  ;;  %v7516_v39 = vld [vmem:[#allocation8_spill] sm:$0xff] }
 0x1cf   : > { %v6596_v35 = vadd.f32 %v2905_v57, %v6450_v60  ;;  %v2975_v58 = vsel %vm2577_vm4, %v2973_v63, %v2974_v8  ;;  %v2980_v54 = vrot.slane %v2941_v62, 5  ;;  %v6600_v33 = vadd.f32 %v2960_v32, %v6454_v3  ;;  %v7514_v63 = vld [vmem:[#allocation7_spill] sm:$0xff]  ;;  %v7520_v8 = vld [vmem:[#allocation22_spill] sm:$0xff] }
 0x1d0   : > { %v2978_v18 = vsel %vm2577_vm4, %v2976_v12, %v2977_v1  ;;  %v6604_v0 = vadd.f32 %v2963_v19, %v6458_v13  ;;  %v6607_v29 = vadd.f32 %v2966_v21, %v6461_v5  ;;  %v6610_v44 = vadd.f32 %v2969_v52, %v6464_v7  ;;  %v7517_v7 = vld [vmem:[#allocation11_spill] sm:$0xff]  ;;  %v6654_v12 = vld [vmem:[%s3993_s4 + $0xd8] sm:$0x3f] }
 0x1d1   : > { %v2981_v60 = vsel %vm2577_vm4, %v2979_v23, %v2980_v54  ;;  %v6614_v57 = vadd.f32 %v2972_v49, %v6468_v55  ;;  %v6617_v3 = vadd.f32 %v2975_v58, %v6471_v45  ;;  %v3001_v56 = vrot.slane %v7515_v46, %v7514_v63  ;;  %7521 = vst [vmem:[#allocation17_spill] sm:$0xff] %v6654_v12 }
 0x1d2   : > { %v6622_v13 = vadd.f32 %v2978_v18, %v6474_v48  ;;  %v6625_v5 = vadd.f32 %v2981_v60, %v6520_v10  ;;  %v6629_v62 = vrot.slane %v7517_v7, %v7516_v39  ;;  %v6633_v55 = vrot.slane %v7519_v36, %v7518_v2 }
 0x1d3   : > { %v3002_v45 = vmul.f32 %v6410_v6, %v3001_v56  ;;  %v3003_v22 = vmul.f32 %v6556_v4, %v3001_v56  ;;  %v3004_v24 = vmul.f32 %v6417_v43, %v3001_v56  ;;  %v3005_v48 = vmul.f32 %v6563_v53, %v3001_v56 }
 0x1d4   : > { %v3006_v10 = vmul.f32 %v6424_v26, %v3001_v56  ;;  %v3007_v50 = vmul.f32 %v6641_v20, %v3001_v56  ;;  %v3008_v47 = vmul.f32 %v6431_v41, %v3001_v56  ;;  %v3009_v11 = vmul.f32 %v7503_v16, %v3001_v56 }
 0x1d5   : > { %v3010_v32 = vmul.f32 %v7507_v14, %v3001_v56  ;;  %v3011_v19 = vmul.f32 %v6440_v51, %v3001_v56  ;;  %v3012_v38 = vmul.f32 %v7509_v31, %v3001_v56  ;;  %v3013_v61 = vmul.f32 %v6510_v37, %v3001_v56 }
 0x1d6   : > { %v3014_v21 = vmul.f32 %v7512_v40, %v3001_v56  ;;  %v3015_v52 = vmul.f32 %v6586_v42, %v3001_v56  ;;  %v3016_v49 = vmul.f32 %v7520_v8, %v3001_v56  ;;  %v3017_v1 = vmul.f32 %v6654_v12, %v3001_v56 }
 0x1d7   : > { %v3034_v23 = vrot.slane %v3002_v45, 5  ;;  %v3035_v16 = vrot.slane %v3003_v22, 5  ;;  %v3037_v58 = vrot.slane %v3004_v24, 5  ;;  %v3038_v14 = vrot.slane %v3005_v48, 5 }
 0x1d8   : > { %v3040_v54 = vrot.slane %v3006_v10, 5  ;;  %v3041_v18 = vrot.slane %v3007_v50, 5  ;;  %v3043_v60 = vrot.slane %v3008_v47, 5  ;;  %v3044_v31 = vrot.slane %v3009_v11, 5 }
 0x1d9   : > { %v3036_v63 = vsel %vm2577_vm4, %v3034_v23, %v3035_v16  ;;  %v3039_v40 = vsel %vm2577_vm4, %v3037_v58, %v3038_v14  ;;  %v3046_v39 = vrot.slane %v3010_v32, 5  ;;  %v3047_v7 = vrot.slane %v3011_v19, 5  ;;  %v7525_v16 = vld [vmem:[#allocation31_spill] sm:$0xff]  ;;  %v7526_v14 = vld [vmem:[#allocation33_spill] sm:$0xff] }
 0x1da   : > { %v3042_v2 = vsel %vm2577_vm4, %v3040_v54, %v3041_v18  ;;  %v3045_v36 = vsel %vm2577_vm4, %v3043_v60, %v3044_v31  ;;  %v3049_v8 = vrot.slane %v3012_v38, 5  ;;  %v3050_v56 = vrot.slane %v3013_v61, 5  ;;  %v6705_v18 = vld [vmem:[%s3993_s4 + $0x30] sm:$0xff] }
 0x1db   : > { %v3048_v45 = vsel %vm2577_vm4, %v3046_v39, %v3047_v7  ;;  %v3052_v22 = vrot.slane %v3014_v21, 5  ;;  %v3053_v24 = vrot.slane %v3015_v52, 5  ;;  %v3055_v48 = vrot.slane %v3016_v49, 5  ;;  %v7522_v52 = vld [vmem:[#allocation29_spill] sm:$0xff]  ;;  %v7527_v60 = vld [vmem:[#allocation32_spill] sm:$0xff] }
 0x1dc   : > { %v3051_v10 = vsel %vm2577_vm4, %v3049_v8, %v3050_v56  ;;  %v3056_v50 = vrot.slane %v3017_v1, 5  ;;  %v6664_v47 = vadd.f32 %v3036_v63, %v6524_v27  ;;  %v6667_v11 = vadd.f32 %v3039_v40, %v6528_v28  ;;  %v6714_v40 = vld [vmem:[%s3993_s4 + $0x48] sm:$0x3f] }
 0x1dd   : > { %v3054_v32 = vsel %vm2577_vm4, %v3052_v22, %v3053_v24  ;;  %v6671_v19 = vadd.f32 %v3042_v2, %v6531_v30  ;;  %v6674_v38 = vadd.f32 %v3045_v36, %v6534_v25  ;;  %v6677_v61 = vadd.f32 %v3048_v45, %v6538_v59  ;;  %v7524_v25 = vld [vmem:[#allocation18_spill] sm:$0xff]  ;;  %v3867_v59 = vld [vmem:[%s3993_s4 + $0x10] sm:$0xff] }
 0x1de   : > { %v3057_v21 = vsel %vm2577_vm4, %v3055_v48, %v3056_v50  ;;  %v6681_v27 = vadd.f32 %v3051_v10, %v6541_v9  ;;  %v6684_v28 = vadd.f32 %v3054_v32, %v6544_v34  ;;  %v3078_v49 = vmul.f32 %v7522_v52, %v6629_v62  ;;  %v6698_v9 = vld [vmem:[%s3993_s4 + $0x20] sm:$0xff]  ;;  %v7528_v2 = vld [vmem:[#allocation16_spill] sm:$0xff] }
 0x1df   : > { %v6689_v30 = vadd.f32 %v3057_v21, %v6596_v35  ;;  %v3079_v1 = vmul.f32 %v7524_v25, %v6629_v62  ;;  %v3080_v23 = vmul.f32 %v3867_v59, %v6629_v62  ;;  %v3081_v58 = vmul.f32 %v7525_v16, %v6629_v62 }
 0x1e0   : > { %v3082_v34 = vmul.f32 %v6698_v9, %v6629_v62  ;;  %v3083_v54 = vmul.f32 %v7526_v14, %v6629_v62  ;;  %v3084_v35 = vmul.f32 %v6705_v18, %v6629_v62  ;;  %v3085_v31 = vmul.f32 %v7527_v60, %v6629_v62 }
 0x1e1   : > { %7523 = vst [vmem:[#allocation4_spill] sm:$0xff] %v6689_v30  ;;  %v3086_v63 = vmul.f32 %v6477_v17, %v6629_v62  ;;  %v3087_v39 = vmul.f32 %v6714_v40, %v6629_v62  ;;  %v3088_v7 = vmul.f32 %v6352_v15, %v6629_v62  ;;  %v3089_v36 = vmul.f32 %v7528_v2, %v6629_v62 }
 0x1e2   : > { %v3090_v8 = vmul.f32 %v6410_v6, %v6629_v62  ;;  %v3091_v56 = vmul.f32 %v6556_v4, %v6629_v62  ;;  %v3092_v45 = vmul.f32 %v6417_v43, %v6629_v62  ;;  %v3093_v22 = vmul.f32 %v6563_v53, %v6629_v62 }
 0x1e3   : > { %v3111_v24 = vrot.slane %v3078_v49, 6  ;;  %v3112_v48 = vrot.slane %v3079_v1, 6  ;;  %v3114_v10 = vrot.slane %v3080_v23, 6  ;;  %v3115_v50 = vrot.slane %v3081_v58, 6 }
 0x1e4   : > { %v3117_v32 = vrot.slane %v3082_v34, 6  ;;  %v3118_v21 = vrot.slane %v3083_v54, 6  ;;  %v3120_v52 = vrot.slane %v3084_v35, 6  ;;  %v3121_v25 = vrot.slane %v3085_v31, 6 }
 0x1e5   : > { %v3113_v12 = vsel %vm3110_vm5, %v3111_v24, %v3112_v48  ;;  %v3116_v42 = vsel %vm3110_vm5, %v3114_v10, %v3115_v50  ;;  %v3123_v37 = vrot.slane %v3086_v63, 6  ;;  %v3124_v51 = vrot.slane %v3087_v39, 6 }
 0x1e6   : > { %v3119_v41 = vsel %vm3110_vm5, %v3117_v32, %v3118_v21  ;;  %v3122_v46 = vsel %vm3110_vm5, %v3120_v52, %v3121_v25  ;;  %v3126_v30 = vrot.slane %v3088_v7, 6  ;;  %v3127_v62 = vrot.slane %v3089_v36, 6 }
 0x1e7   : > { %v3125_v49 = vsel %vm3110_vm5, %v3123_v37, %v3124_v51  ;;  %v3129_v1 = vrot.slane %v3090_v8, 6  ;;  %v3130_v23 = vrot.slane %v3091_v56, 6  ;;  %v3132_v58 = vrot.slane %v3092_v45, 6 }
 0x1e8   : > { %v3128_v34 = vsel %vm3110_vm5, %v3126_v30, %v3127_v62  ;;  %v3133_v54 = vrot.slane %v3093_v22, 6  ;;  %v6737_v35 = vadd.f32 %v3113_v12, %v6600_v33  ;;  %v6740_v31 = vadd.f32 %v3116_v42, %v6604_v0 }
 0x1e9   : > { %v3131_v63 = vsel %vm3110_vm5, %v3129_v1, %v3130_v23  ;;  %v6744_v39 = vadd.f32 %v3119_v41, %v6607_v29  ;;  %v6747_v7 = vadd.f32 %v3122_v46, %v6610_v44  ;;  %v6750_v51 = vadd.f32 %v3125_v49, %v6614_v57 }
 0x1ea   : > { %v3134_v37 = vsel %vm3110_vm5, %v3132_v58, %v3133_v54  ;;  %v6754_v30 = vadd.f32 %v3128_v34, %v6617_v3  ;;  %v6757_v33 = vadd.f32 %v3131_v63, %v6622_v13  ;;  %v3155_v42 = vmul.f32 %v3867_v59, %v6633_v55 }
 0x1eb   : > { %v6761_v0 = vadd.f32 %v3134_v37, %v6625_v5  ;;  %v3156_v41 = vmul.f32 %v7525_v16, %v6633_v55  ;;  %v3157_v29 = vmul.f32 %v6698_v9, %v6633_v55  ;;  %v3158_v44 = vmul.f32 %v7526_v14, %v6633_v55 }
 0x1ec   : > { %v3159_v57 = vmul.f32 %v6705_v18, %v6633_v55  ;;  %v3160_v3 = vmul.f32 %v7527_v60, %v6633_v55  ;;  %v3161_v46 = vmul.f32 %v6477_v17, %v6633_v55  ;;  %v3162_v13 = vmul.f32 %v6714_v40, %v6633_v55 }
 0x1ed   : > { %v3163_v5 = vmul.f32 %v6352_v15, %v6633_v55  ;;  %v3164_v12 = vmul.f32 %v7528_v2, %v6633_v55  ;;  %v3165_v59 = vmul.f32 %v6410_v6, %v6633_v55  ;;  %v3166_v16 = vmul.f32 %v6556_v4, %v6633_v55 }
 0x1ee   : > { %v3167_v36 = vmul.f32 %v6417_v43, %v6633_v55  ;;  %v3168_v8 = vmul.f32 %v6563_v53, %v6633_v55  ;;  %v3169_v56 = vmul.f32 %v6424_v26, %v6633_v55  ;;  %v3170_v45 = vmul.f32 %v6641_v20, %v6633_v55 }
 0x1ef   : > { %v3187_v22 = vrot.slane %v3155_v42, 6  ;;  %v3188_v24 = vrot.slane %v3156_v41, 6  ;;  %v3190_v48 = vrot.slane %v3157_v29, 6  ;;  %v3191_v10 = vrot.slane %v3158_v44, 6 }
 0x1f0   : > { %v3193_v50 = vrot.slane %v3159_v57, 6  ;;  %v3194_v32 = vrot.slane %v3160_v3, 6  ;;  %v3196_v21 = vrot.slane %v3161_v46, 6  ;;  %v3197_v52 = vrot.slane %v3162_v13, 6 }
 0x1f1   : > { %v3189_v25 = vsel %vm3110_vm5, %v3187_v22, %v3188_v24  ;;  %v3192_v62 = vsel %vm3110_vm5, %v3190_v48, %v3191_v10  ;;  %v3199_v49 = vrot.slane %v3163_v5, 6  ;;  %v3200_v1 = vrot.slane %v3164_v12, 6  ;;  %v7533_v22 = vld [vmem:[#allocation15_spill] sm:$0xff]  ;;  %v7534_v24 = vld [vmem:[#allocation10_spill] sm:$0xff] }
 0x1f2   : > { %v3195_v23 = vsel %vm3110_vm5, %v3193_v50, %v3194_v32  ;;  %v3198_v58 = vsel %vm3110_vm5, %v3196_v21, %v3197_v52  ;;  %v3202_v34 = vrot.slane %v3165_v59, 6  ;;  %v3203_v55 = vrot.slane %v3166_v16, 6 }
 0x1f3   : > { %v3201_v54 = vsel %vm3110_vm5, %v3199_v49, %v3200_v1  ;;  %v3205_v63 = vrot.slane %v3167_v36, 6  ;;  %v3206_v37 = vrot.slane %v3168_v8, 6  ;;  %v3208_v42 = vrot.slane %v3169_v56, 6  ;;  %v7530_v36 = vld [vmem:[#allocation4_spill] sm:$0xff]  ;;  %v7531_v8 = vld [vmem:[#allocation13_spill] sm:$0xff] }
 0x1f4   : > { %v3204_v41 = vsel %vm3110_vm5, %v3202_v34, %v3203_v55  ;;  %v3209_v29 = vrot.slane %v3170_v45, 6  ;;  %v6800_v44 = vadd.f32 %v3189_v25, %v6664_v47  ;;  %v6803_v57 = vadd.f32 %v3192_v62, %v6667_v11  ;;  %v3871_v11 = vld [vmem:[%s7129_s1 + $0x10] sm:$0xff]  ;;  %v7536_v55 = vld [vmem:[#allocation3_spill] sm:$0xff] }
 0x1f5   : > { %v3207_v3 = vsel %vm3110_vm5, %v3205_v63, %v3206_v37  ;;  %v6807_v46 = vadd.f32 %v3195_v23, %v6671_v19  ;;  %v6810_v13 = vadd.f32 %v3198_v58, %v6674_v38  ;;  %v6813_v5 = vadd.f32 %v3201_v54, %v6677_v61  ;;  %v7529_v19 = vld [vmem:[#allocation12_spill] sm:$0xff]  ;;  %v3872_v61 = vld [vmem:[%s7129_s1 + $0x18] sm:$0xff] }
 0x1f6   : > { %v3210_v12 = vsel %vm3110_vm5, %v3208_v42, %v3209_v29  ;;  %v6817_v59 = vadd.f32 %v3204_v41, %v6681_v27  ;;  %v6820_v47 = vadd.f32 %v3207_v3, %v6684_v28  ;;  %v3230_v16 = vrot.slane %v3871_v11, %v7529_v19  ;;  %v3873_v27 = vld [vmem:[%s7129_s1 + $0x20] sm:$0xff]  ;;  %v6861_v63 = vld [vmem:[%s3993_s4 + $0x98] sm:$0x3f] }
 0x1f7   : > { %v6827_v38 = vadd.f32 %v3210_v12, %v7530_v36  ;;  %v6833_v56 = vrot.slane %v3872_v61, %v7531_v8  ;;  %v7532_v28 = vld [vmem:[#allocation14_spill] sm:$0xff]  ;;  %v6843_v48 = vrot.slane %v7534_v24, %v7533_v22 }
 0x1f8   : > { %v6839_v45 = vrot.slane %v3873_v27, %v7532_v28  ;;  %v3231_v10 = vmul.f32 %v6698_v9, %v3230_v16  ;;  %v3232_v50 = vmul.f32 %v7526_v14, %v3230_v16  ;;  %v3233_v32 = vmul.f32 %v6705_v18, %v3230_v16 }
 0x1f9   : > { %7535 = vst [vmem:[#allocation23_spill] sm:$0xff] %v6843_v48  ;;  %v3234_v21 = vmul.f32 %v7527_v60, %v3230_v16  ;;  %v3235_v52 = vmul.f32 %v6477_v17, %v3230_v16  ;;  %v3236_v25 = vmul.f32 %v6714_v40, %v3230_v16  ;;  %v3237_v62 = vmul.f32 %v6352_v15, %v3230_v16 }
 0x1fa   : > { %v3238_v49 = vmul.f32 %v7528_v2, %v3230_v16  ;;  %v3239_v1 = vmul.f32 %v6410_v6, %v3230_v16  ;;  %v3240_v23 = vmul.f32 %v6556_v4, %v3230_v16  ;;  %v3241_v9 = vmul.f32 %v6417_v43, %v3230_v16 }
 0x1fb   : > { %v3242_v14 = vmul.f32 %v6563_v53, %v3230_v16  ;;  %v3243_v58 = vmul.f32 %v6424_v26, %v3230_v16  ;;  %v3244_v34 = vmul.f32 %v6641_v20, %v3230_v16  ;;  %v3245_v54 = vmul.f32 %v7536_v55, %v3230_v16 }
 0x1fc   : > { %v3246_v37 = vmul.f32 %v6861_v63, %v3230_v16  ;;  %v3263_v42 = vrot.slane %v3231_v10, 6  ;;  %v3264_v41 = vrot.slane %v3232_v50, 6  ;;  %v3266_v29 = vrot.slane %v3233_v32, 6 }
 0x1fd   : > { %v3267_v3 = vrot.slane %v3234_v21, 6  ;;  %v3269_v12 = vrot.slane %v3235_v52, 6  ;;  %v3270_v11 = vrot.slane %v3236_v25, 6  ;;  %v3272_v19 = vrot.slane %v3237_v62, 6 }
 0x1fe   : > { %v3273_v36 = vrot.slane %v3238_v49, 6  ;;  %v3265_v61 = vsel %vm3110_vm5, %v3263_v42, %v3264_v41  ;;  %v3275_v27 = vrot.slane %v3239_v1, 6  ;;  %v3276_v28 = vrot.slane %v3240_v23, 6 }
 0x1ff   : > { %v3268_v8 = vsel %vm3110_vm5, %v3266_v29, %v3267_v3  ;;  %v3271_v22 = vsel %vm3110_vm5, %v3269_v12, %v3270_v11  ;;  %v3278_v48 = vrot.slane %v3241_v9, 6  ;;  %v3279_v16 = vrot.slane %v3242_v14, 6  ;;  %v6925_v3 = vld [vmem:[%s3993_s4 + $0xa0] sm:$0xff]  ;;  %v7537_v11 = vld [vmem:[#allocation25_spill] sm:$0xff] }
 0x200   : > { %v3274_v24 = vsel %vm3110_vm5, %v3272_v19, %v3273_v36  ;;  %v3277_v10 = vsel %vm3110_vm5, %v3275_v27, %v3276_v28  ;;  %v3281_v50 = vrot.slane %v3243_v58, 6  ;;  %v3282_v32 = vrot.slane %v3244_v34, 6 }
 0x201   : > { %v3284_v21 = vrot.slane %v3245_v54, 6  ;;  %v3280_v52 = vsel %vm3110_vm5, %v3278_v48, %v3279_v16  ;;  %v3285_v25 = vrot.slane %v3246_v37, 6  ;;  %v6871_v62 = vadd.f32 %v3265_v61, %v6737_v35 }
 0x202   : > { %v6874_v49 = vadd.f32 %v3268_v8, %v6740_v31  ;;  %v3283_v1 = vsel %vm3110_vm5, %v3281_v50, %v3282_v32  ;;  %v6878_v23 = vadd.f32 %v3271_v22, %v6744_v39  ;;  %v6881_v9 = vadd.f32 %v3274_v24, %v6747_v7 }
 0x203   : > { %v6884_v14 = vadd.f32 %v3277_v10, %v6750_v51  ;;  %v3286_v48 = vsel %vm3110_vm5, %v3284_v21, %v3285_v25  ;;  %v6888_v58 = vadd.f32 %v3280_v52, %v6754_v30  ;;  %v6891_v35 = vadd.f32 %v3283_v1, %v6757_v33 }
 0x204   : > { %v3307_v31 = vmul.f32 %v6705_v18, %v6833_v56  ;;  %v6896_v39 = vadd.f32 %v3286_v48, %v6761_v0  ;;  %v3308_v7 = vmul.f32 %v7527_v60, %v6833_v56  ;;  %v3309_v51 = vmul.f32 %v6477_v17, %v6833_v56 }
 0x205   : > { %v3310_v30 = vmul.f32 %v6714_v40, %v6833_v56  ;;  %v3311_v33 = vmul.f32 %v6352_v15, %v6833_v56  ;;  %v3312_v34 = vmul.f32 %v7528_v2, %v6833_v56  ;;  %v3313_v18 = vmul.f32 %v6410_v6, %v6833_v56 }
 0x206   : > { %v3314_v0 = vmul.f32 %v6556_v4, %v6833_v56  ;;  %v3315_v60 = vmul.f32 %v6417_v43, %v6833_v56  ;;  %v3316_v54 = vmul.f32 %v6563_v53, %v6833_v56  ;;  %v3317_v37 = vmul.f32 %v6424_v26, %v6833_v56 }
 0x207   : > { %v3318_v42 = vmul.f32 %v6641_v20, %v6833_v56  ;;  %v3319_v41 = vmul.f32 %v7536_v55, %v6833_v56  ;;  %v3320_v29 = vmul.f32 %v6861_v63, %v6833_v56  ;;  %v3321_v12 = vmul.f32 %v6925_v3, %v6833_v56 }
 0x208   : > { %v3322_v19 = vmul.f32 %v7537_v11, %v6833_v56  ;;  %v3339_v36 = vrot.slane %v3307_v31, 6  ;;  %v3340_v61 = vrot.slane %v3308_v7, 6  ;;  %v3342_v8 = vrot.slane %v3309_v51, 6 }
 0x209   : > { %v3343_v27 = vrot.slane %v3310_v30, 6  ;;  %v3345_v28 = vrot.slane %v3311_v33, 6  ;;  %v3346_v22 = vrot.slane %v3312_v34, 6  ;;  %v3348_v24 = vrot.slane %v3313_v18, 6 }
 0x20a   : > { %v3349_v16 = vrot.slane %v3314_v0, 6  ;;  %v3341_v10 = vsel %vm3110_vm5, %v3339_v36, %v3340_v61  ;;  %v3351_v32 = vrot.slane %v3315_v60, 6  ;;  %v3352_v21 = vrot.slane %v3316_v54, 6 }
 0x20b   : > { %v3344_v50 = vsel %vm3110_vm5, %v3342_v8, %v3343_v27  ;;  %v3347_v52 = vsel %vm3110_vm5, %v3345_v28, %v3346_v22  ;;  %v3354_v1 = vrot.slane %v3317_v37, 6  ;;  %v3355_v56 = vrot.slane %v3318_v42, 6  ;;  %v6992_v27 = vld [vmem:[%s3993_s4 + $0xb0] sm:$0xff]  ;;  %v7538_v22 = vld [vmem:[#allocation26_spill] sm:$0xff] }
 0x20c   : > { %v3350_v25 = vsel %vm3110_vm5, %v3348_v24, %v3349_v16  ;;  %v3353_v48 = vsel %vm3110_vm5, %v3351_v32, %v3352_v21  ;;  %v3357_v31 = vrot.slane %v3319_v41, 6  ;;  %v3358_v7 = vrot.slane %v3320_v29, 6 }
 0x20d   : > { %v3360_v51 = vrot.slane %v3321_v12, 6  ;;  %v3356_v30 = vsel %vm3110_vm5, %v3354_v1, %v3355_v56  ;;  %v3361_v33 = vrot.slane %v3322_v19, 6  ;;  %v6938_v34 = vadd.f32 %v3341_v10, %v6800_v44 }
 0x20e   : > { %v6941_v18 = vadd.f32 %v3344_v50, %v6803_v57  ;;  %v3359_v0 = vsel %vm3110_vm5, %v3357_v31, %v3358_v7  ;;  %v6945_v60 = vadd.f32 %v3347_v52, %v6807_v46  ;;  %v6948_v54 = vadd.f32 %v3350_v25, %v6810_v13 }
 0x20f   : > { %v6951_v37 = vadd.f32 %v3353_v48, %v6813_v5  ;;  %v3362_v42 = vsel %vm3110_vm5, %v3360_v51, %v3361_v33  ;;  %v6955_v41 = vadd.f32 %v3356_v30, %v6817_v59  ;;  %v6958_v44 = vadd.f32 %v3359_v0, %v6820_v47 }
 0x210   : > { %v3383_v57 = vmul.f32 %v6477_v17, %v6839_v45  ;;  %v6963_v46 = vadd.f32 %v3362_v42, %v6827_v38  ;;  %v3384_v13 = vmul.f32 %v6714_v40, %v6839_v45  ;;  %v3385_v5 = vmul.f32 %v6352_v15, %v6839_v45 }
 0x211   : > { %v3386_v59 = vmul.f32 %v7528_v2, %v6839_v45  ;;  %v3387_v47 = vmul.f32 %v6410_v6, %v6839_v45  ;;  %v3388_v29 = vmul.f32 %v6556_v4, %v6839_v45  ;;  %v3389_v17 = vmul.f32 %v6417_v43, %v6839_v45 }
 0x212   : > { %v3390_v38 = vmul.f32 %v6563_v53, %v6839_v45  ;;  %v3391_v40 = vmul.f32 %v6424_v26, %v6839_v45  ;;  %v3392_v12 = vmul.f32 %v6641_v20, %v6839_v45  ;;  %v3393_v19 = vmul.f32 %v7536_v55, %v6839_v45 }
 0x213   : > { %v3394_v36 = vmul.f32 %v6861_v63, %v6839_v45  ;;  %v3395_v61 = vmul.f32 %v6925_v3, %v6839_v45  ;;  %v3396_v8 = vmul.f32 %v7537_v11, %v6839_v45  ;;  %v3397_v28 = vmul.f32 %v6992_v27, %v6839_v45 }
 0x214   : > { %v3398_v24 = vmul.f32 %v7538_v22, %v6839_v45  ;;  %v3415_v16 = vrot.slane %v3383_v57, 6  ;;  %v3416_v10 = vrot.slane %v3384_v13, 6  ;;  %v3418_v50 = vrot.slane %v3385_v5, 6 }
 0x215   : > { %v3419_v32 = vrot.slane %v3386_v59, 6  ;;  %v3421_v21 = vrot.slane %v3387_v47, 6  ;;  %v3422_v52 = vrot.slane %v3388_v29, 6  ;;  %v3424_v25 = vrot.slane %v3389_v17, 6 }
 0x216   : > { %v3425_v1 = vrot.slane %v3390_v38, 6  ;;  %v3417_v56 = vsel %vm3110_vm5, %v3415_v16, %v3416_v10  ;;  %v3427_v31 = vrot.slane %v3391_v40, 6  ;;  %v3428_v7 = vrot.slane %v3392_v12, 6 }
 0x217   : > { %v3420_v48 = vsel %vm3110_vm5, %v3418_v50, %v3419_v32  ;;  %v3423_v51 = vsel %vm3110_vm5, %v3421_v21, %v3422_v52  ;;  %v3430_v33 = vrot.slane %v3393_v19, 6  ;;  %v3431_v45 = vrot.slane %v3394_v36, 6  ;;  %v3877_v32 = vld [vmem:[%s3993_s4 + $0xc0] sm:$0xff]  ;;  %v7540_v52 = vld [vmem:[#allocation27_spill] sm:$0xff] }
 0x218   : > { %v3426_v30 = vsel %vm3110_vm5, %v3424_v25, %v3425_v1  ;;  %v3429_v0 = vsel %vm3110_vm5, %v3427_v31, %v3428_v7  ;;  %v3433_v42 = vrot.slane %v3395_v61, 6  ;;  %v3434_v57 = vrot.slane %v3396_v8, 6 }
 0x219   : > { %v3436_v13 = vrot.slane %v3397_v28, 6  ;;  %v3432_v5 = vsel %vm3110_vm5, %v3430_v33, %v3431_v45  ;;  %v3437_v59 = vrot.slane %v3398_v24, 6  ;;  %v7005_v47 = vadd.f32 %v3417_v56, %v6871_v62 }
 0x21a   : > { %v7008_v29 = vadd.f32 %v3420_v48, %v6874_v49  ;;  %v3435_v17 = vsel %vm3110_vm5, %v3433_v42, %v3434_v57  ;;  %v7012_v38 = vadd.f32 %v3423_v51, %v6878_v23  ;;  %v7015_v40 = vadd.f32 %v3426_v30, %v6881_v9  ;;  %v7539_v49 = vld [vmem:[#allocation23_spill] sm:$0xff] }
 0x21b   : > { %v7018_v12 = vadd.f32 %v3429_v0, %v6884_v14  ;;  %v3438_v19 = vsel %vm3110_vm5, %v3436_v13, %v3437_v59  ;;  %v7022_v36 = vadd.f32 %v3432_v5, %v6888_v58  ;;  %v7025_v62 = vadd.f32 %v3435_v17, %v6891_v35 }
 0x21c   : > { %v3459_v61 = vmul.f32 %v6352_v15, %v7539_v49  ;;  %v7030_v23 = vadd.f32 %v3438_v19, %v6896_v39  ;;  %v3460_v9 = vmul.f32 %v7528_v2, %v7539_v49  ;;  %v3461_v14 = vmul.f32 %v6410_v6, %v7539_v49  ;;  %v3759_v19 = vld [vmem:[%s7129_s1 + $0x30] ss:$0 sm:$0xff] }
 0x21d   : > { %v3462_v58 = vmul.f32 %v6556_v4, %v7539_v49  ;;  %v3463_v35 = vmul.f32 %v6417_v43, %v7539_v49  ;;  %v3464_v8 = vmul.f32 %v6563_v53, %v7539_v49  ;;  %v3465_v15 = vmul.f32 %v6424_v26, %v7539_v49 }
 0x21e   : > { %v3466_v39 = vmul.f32 %v6641_v20, %v7539_v49  ;;  %v3467_v2 = vmul.f32 %v7536_v55, %v7539_v49  ;;  %v3468_v28 = vmul.f32 %v6861_v63, %v7539_v49  ;;  %v3469_v24 = vmul.f32 %v6925_v3, %v7539_v49 }
 0x21f   : > { %v3470_v16 = vmul.f32 %v7537_v11, %v7539_v49  ;;  %v3471_v10 = vmul.f32 %v6992_v27, %v7539_v49  ;;  %v3472_v50 = vmul.f32 %v7538_v22, %v7539_v49  ;;  %v3473_v21 = vmul.f32 %v3877_v32, %v7539_v49 }
 0x220   : > { %v3474_v25 = vmul.f32 %v7540_v52, %v7539_v49  ;;  %v3491_v1 = vrot.slane %v3459_v61, 6  ;;  %v3492_v56 = vrot.slane %v3460_v9, 6  ;;  %v3494_v48 = vrot.slane %v3461_v14, 6 }
 0x221   : > { %v3495_v31 = vrot.slane %v3462_v58, 6  ;;  %v3497_v7 = vrot.slane %v3463_v35, 6  ;;  %v3498_v51 = vrot.slane %v3464_v8, 6  ;;  %v3500_v30 = vrot.slane %v3465_v15, 6 }
 0x222   : > { %v3501_v33 = vrot.slane %v3466_v39, 6  ;;  %v3493_v45 = vsel %vm3110_vm5, %v3491_v1, %v3492_v56  ;;  %v3503_v42 = vrot.slane %v3467_v2, 6  ;;  %v3504_v57 = vrot.slane %v3468_v28, 6 }
 0x223   : > { %v3496_v0 = vsel %vm3110_vm5, %v3494_v48, %v3495_v31  ;;  %v3499_v13 = vsel %vm3110_vm5, %v3497_v7, %v3498_v51  ;;  %v3506_v59 = vrot.slane %v3469_v24, 6  ;;  %v3507_v17 = vrot.slane %v3470_v16, 6 }
 0x224   : > { %v3502_v5 = vsel %vm3110_vm5, %v3500_v30, %v3501_v33  ;;  %v3505_v49 = vsel %vm3110_vm5, %v3503_v42, %v3504_v57  ;;  %v3509_v61 = vrot.slane %v3471_v10, 6  ;;  %v3510_v9 = vrot.slane %v3472_v50, 6 }
 0x225   : > { %v3512_v14 = vrot.slane %v3473_v21, 6  ;;  %v3508_v58 = vsel %vm3110_vm5, %v3506_v59, %v3507_v17  ;;  %v3513_v35 = vrot.slane %v3474_v25, 6  ;;  %v3523_v8 = vadd.f32 %v3493_v45, %v6938_v34 }
 0x226   : > { %v3524_v15 = vadd.f32 %v3496_v0, %v6941_v18  ;;  %v3511_v39 = vsel %vm3110_vm5, %v3509_v61, %v3510_v9  ;;  %v3525_v2 = vadd.f32 %v3499_v13, %v6945_v60  ;;  %v3526_v28 = vadd.f32 %v3502_v5, %v6948_v54  ;;  %v3760_v9 = vld [vmem:[%s7130_s2] ss:$0 sm:$0xff] }
 0x227   : > { %v3527_v24 = vadd.f32 %v3505_v49, %v6951_v37  ;;  %v3514_v16 = vsel %vm3110_vm5, %v3512_v14, %v3513_v35  ;;  %v3528_v10 = vadd.f32 %v3508_v58, %v6955_v41  ;;  %v3529_v50 = vadd.f32 %v3511_v39, %v6958_v44 }
 0x228   : > { %v3535_v21 = vmul.f32 %v6410_v6, %v3759_v19  ;;  %v3530_v34 = vadd.f32 %v3514_v16, %v6963_v46  ;;  %v3536_v18 = vmul.f32 %v6556_v4, %v3759_v19  ;;  %v3537_v25 = vmul.f32 %v6417_v43, %v3759_v19 }
 0x229   : > { %v3538_v60 = vmul.f32 %v6563_v53, %v3759_v19  ;;  %v3539_v54 = vmul.f32 %v6424_v26, %v3759_v19  ;;  %v3540_v37 = vmul.f32 %v6641_v20, %v3759_v19  ;;  %v3541_v1 = vmul.f32 %v7536_v55, %v3759_v19  ;;  %v3878_v53 = vld [vmem:[%s3993_s4 + $0xd0] sm:$0xff]  ;;  %v7541_v26 = vld [vmem:[#allocation17_spill] sm:$0xff]  ;;  %s3763_s4 = sshll.u32 %s7547_s12, 6 }
 0x22a   : > { %v3542_v41 = vmul.f32 %v6861_v63, %v3759_v19  ;;  %v3543_v44 = vmul.f32 %v6925_v3, %v3759_v19  ;;  %v3544_v6 = vmul.f32 %v7537_v11, %v3759_v19  ;;  %v3545_v46 = vmul.f32 %v6992_v27, %v3759_v19  ;;  %s232_s22 = scalar_lea.vmem %s7131_s3, %s3763_s4 }
 0x22b   : > { %v3546_v4 = vmul.f32 %v7538_v22, %v3759_v19  ;;  %v3547_v56 = vmul.f32 %v3877_v32, %v3759_v19  ;;  %v3548_v43 = vmul.f32 %v7540_v52, %v3759_v19  ;;  %v3549_v48 = vmul.f32 %v3878_v53, %v3759_v19 }
 0x22c   : > { %v3550_v31 = vmul.f32 %v7541_v26, %v3759_v19  ;;  %v3567_v20 = vrot.slane %v3535_v21, 6  ;;  %v3568_v7 = vrot.slane %v3536_v18, 6  ;;  %v3570_v55 = vrot.slane %v3537_v25, 6 }
 0x22d   : > { %v3571_v51 = vrot.slane %v3538_v60, 6  ;;  %v3573_v63 = vrot.slane %v3539_v54, 6  ;;  %v3574_v30 = vrot.slane %v3540_v37, 6  ;;  %v3576_v3 = vrot.slane %v3541_v1, 6 }
 0x22e   : > { %v3577_v33 = vrot.slane %v3542_v41, 6  ;;  %v3569_v11 = vsel %vm3110_vm5, %v3567_v20, %v3568_v7  ;;  %v3579_v22 = vrot.slane %v3543_v44, 6  ;;  %v3580_v32 = vrot.slane %v3544_v6, 6 }
 0x22f   : > { %v3572_v27 = vsel %vm3110_vm5, %v3570_v55, %v3571_v51  ;;  %v3575_v52 = vsel %vm3110_vm5, %v3573_v63, %v3574_v30  ;;  %v3582_v0 = vrot.slane %v3545_v46, 6  ;;  %v3583_v42 = vrot.slane %v3546_v4, 6 }
 0x230   : > { %v3578_v45 = vsel %vm3110_vm5, %v3576_v3, %v3577_v33  ;;  %v3581_v57 = vsel %vm3110_vm5, %v3579_v22, %v3580_v32  ;;  %v3585_v13 = vrot.slane %v3547_v56, 6  ;;  %v3586_v5 = vrot.slane %v3548_v43, 6 }
 0x231   : > { %v3588_v59 = vrot.slane %v3549_v48, 6  ;;  %v3584_v17 = vsel %vm3110_vm5, %v3582_v0, %v3583_v42  ;;  %v3589_v19 = vrot.slane %v3550_v31, 6  ;;  %v3599_v49 = vadd.f32 %v3569_v11, %v7005_v47 }
 0x232   : > { %v3600_v61 = vadd.f32 %v3572_v27, %v7008_v29  ;;  %v3587_v14 = vsel %vm3110_vm5, %v3585_v13, %v3586_v5  ;;  %v3601_v58 = vadd.f32 %v3575_v52, %v7012_v38  ;;  %v3602_v35 = vadd.f32 %v3578_v45, %v7015_v40 }
 0x233   : > { %v3603_v39 = vadd.f32 %v3581_v57, %v7018_v12  ;;  %v3590_v16 = vsel %vm3110_vm5, %v3588_v59, %v3589_v19  ;;  %v3604_v21 = vadd.f32 %v3584_v17, %v7022_v36  ;;  %v3605_v47 = vadd.f32 %v3587_v14, %v7025_v62 }
 0x234   : > { %v3607_v29 = vadd.f32 %v3599_v49, %v3523_v8  ;;  %v3606_v18 = vadd.f32 %v3590_v16, %v7030_v23  ;;  %v3608_v25 = vadd.f32 %v3600_v61, %v3524_v15  ;;  %v3609_v60 = vadd.f32 %v3601_v58, %v3525_v2 }
 0x235   : > { %v3610_v54 = vadd.f32 %v3602_v35, %v3526_v28  ;;  %v3611_v38 = vadd.f32 %v3603_v39, %v3527_v24  ;;  %v3612_v40 = vadd.f32 %v3604_v21, %v3528_v10  ;;  %v3613_v37 = vadd.f32 %v3605_v47, %v3529_v50 }
 0x236   : > { %v3621_v12 = vadd.f32 %v3760_v9, %v3607_v29  ;;  %v3614_v1 = vadd.f32 %v3606_v18, %v3530_v34  ;;  %v3622_v41 = vadd.f32 %v3760_v9, %v3608_v25  ;;  %v3623_v44 = vadd.f32 %v3760_v9, %v3609_v60 }
 0x237   : > { %v3624_v36 = vadd.f32 %v3760_v9, %v3610_v54  ;;  %v3625_v6 = vadd.f32 %v3760_v9, %v3611_v38  ;;  %v3626_v62 = vadd.f32 %v3760_v9, %v3612_v40  ;;  %v3627_v8 = vadd.f32 %v3760_v9, %v3613_v37 }
 0x238   : > { %v3628_v23 = vadd.f32 %v3760_v9, %v3614_v1  ;;  %3630 = vst.msk [vmem:[%s232_s22] sm:$0xff] %vm3629_vm6, %v3621_v12  ;;  %3631 = vst.msk [vmem:[%s232_s22 + $0x8] sm:$0xff] %vm3629_vm6, %v3622_v41 }
 0x239   : > { %3632 = vst.msk [vmem:[%s232_s22 + $0x10] sm:$0xff] %vm3629_vm6, %v3623_v44  ;;  %3633 = vst.msk [vmem:[%s232_s22 + $0x18] sm:$0xff] %vm3629_vm6, %v3624_v36 }
 0x23a   : > { %3634 = vst.msk [vmem:[%s232_s22 + $0x20] sm:$0xff] %vm3629_vm6, %v3625_v6  ;;  %3635 = vst.msk [vmem:[%s232_s22 + $0x28] sm:$0xff] %vm3629_vm6, %v3626_v62 }
 0x23b   : > { %3636 = vst.msk [vmem:[%s232_s22 + $0x30] sm:$0xff] %vm3629_vm6, %v3627_v8  ;;  %3637 = vst.msk [vmem:[%s232_s22 + $0x38] sm:$0xff] %vm3629_vm6, %v3628_v23 }
 0x23c PF: > { %s13_s14 = sadd.s32 1, %s3901_s14   ;;  %s7542_s12 = smov %s3897_s13 }
 0x23d   : > { %p10_p5 = scmp.ge.s32.totalorder %s13_s14, 4   ;;  %s7543_s13 = smov %s7545_s15 }
 0x23f   :  { %12 = sbr.rel (!%p10_p5) target bundleno = 2 (0x2), region = 68 }

</bundles_post_ra>
